<compile_context>
chip_gen: v7x
topology: tpu7x:2x2x1
jax: 0.10.0
libtpu: 0.0.40
codegen_flags: <defaults>
</compile_context>

<pallas_src>
import jax
import jax.numpy as jnp
from jax import lax
from jax.experimental import pallas as pl
from jax.experimental.pallas import tpu as pltpu


def _gru_decoder_kernel(
    x_ref,                                             # (Bp, S, E)
    wi1r_ref, wi1z_ref, wi1n_ref,                      # (E, E) each
    wh1r_ref, wh1z_ref, wh1n_ref,                      # (E, E) each
    bi1r_ref, bi1z_ref, bi1n_ref,                      # (1, E) each
    bh1r_ref, bh1z_ref, bh1n_ref,                      # (1, E) each
    wi2r_ref, wi2z_ref, wi2n_ref,                      # (E, H) each
    wh2r_ref, wh2z_ref, wh2n_ref,                      # (H, H) each
    bi2r_ref, bi2z_ref, bi2n_ref,                      # (1, H) each
    bh2r_ref, bh2z_ref, bh2n_ref,                      # (1, H) each
    wfc_ref, bfc_ref,                                  # (H, Fp), (1, Fp)
    y_ref,                                             # (Bp, S, Fp)
):
    Bp, S, E = x_ref.shape
    H = wh2r_ref.shape[0]
    Fp = y_ref.shape[2]

    def gru_step(h_prev, gx_r, gx_z, gx_n, wh_r, wh_z, wh_n, bh_r, bh_z, bh_n):
        # Only the h_prev @ W_hh matmuls remain on the serial dependency chain.
        gh_r = jnp.dot(h_prev, wh_r, preferred_element_type=jnp.float32) + bh_r
        gh_z = jnp.dot(h_prev, wh_z, preferred_element_type=jnp.float32) + bh_z
        gh_n = jnp.dot(h_prev, wh_n, preferred_element_type=jnp.float32) + bh_n
        r = jax.nn.sigmoid(gx_r + gh_r)
        z = jax.nn.sigmoid(gx_z + gh_z)
        n = jnp.tanh(gx_n + r * gh_n)
        return (1.0 - z) * n + z * h_prev

    # ---------------- Layer 1: GRU(E -> E) ----------------
    # Hoisted input projections: one big matmul per gate, bias folded in.
    x_tm = x_ref[...].astype(jnp.float32).transpose(1, 0, 2)       # (S, Bp, E)
    x_flat = x_tm.reshape(S * Bp, E)

    gx1_r = (jnp.dot(x_flat, wi1r_ref[...], preferred_element_type=jnp.float32)
             + bi1r_ref[...]).reshape(S, Bp, E)
    gx1_z = (jnp.dot(x_flat, wi1z_ref[...], preferred_element_type=jnp.float32)
             + bi1z_ref[...]).reshape(S, Bp, E)
    gx1_n = (jnp.dot(x_flat, wi1n_ref[...], preferred_element_type=jnp.float32)
             + bi1n_ref[...]).reshape(S, Bp, E)

    wh1r = wh1r_ref[...]
    wh1z = wh1z_ref[...]
    wh1n = wh1n_ref[...]
    # Broadcast the hidden biases once (hoisted out of the unrolled loop).
    bh1r = jnp.broadcast_to(bh1r_ref[...], (Bp, E))
    bh1z = jnp.broadcast_to(bh1z_ref[...], (Bp, E))
    bh1n = jnp.broadcast_to(bh1n_ref[...], (Bp, E))

    h1 = jnp.zeros((Bp, E), jnp.float32)                 # PyTorch default h0 = 0
    h1_steps = []
    for t in range(S):                                   # statically unrolled
        h1 = gru_step(h1, gx1_r[t], gx1_z[t], gx1_n[t],
                      wh1r, wh1z, wh1n, bh1r, bh1z, bh1n)
        h1_steps.append(h1)
    h1_seq = jnp.stack(h1_steps, axis=0)                 # (S, Bp, E) time-major

    # ---------------- Layer 2: GRU(E -> H) ----------------
    h1_flat = h1_seq.reshape(S * Bp, E)
    gx2_r = (jnp.dot(h1_flat, wi2r_ref[...], preferred_element_type=jnp.float32)
             + bi2r_ref[...]).reshape(S, Bp, H)
    gx2_z = (jnp.dot(h1_flat, wi2z_ref[...], preferred_element_type=jnp.float32)
             + bi2z_ref[...]).reshape(S, Bp, H)
    gx2_n = (jnp.dot(h1_flat, wi2n_ref[...], preferred_element_type=jnp.float32)
             + bi2n_ref[...]).reshape(S, Bp, H)

    wh2r = wh2r_ref[...]
    wh2z = wh2z_ref[...]
    wh2n = wh2n_ref[...]
    bh2r = jnp.broadcast_to(bh2r_ref[...], (Bp, H))
    bh2z = jnp.broadcast_to(bh2z_ref[...], (Bp, H))
    bh2n = jnp.broadcast_to(bh2n_ref[...], (Bp, H))

    h2 = jnp.zeros((Bp, H), jnp.float32)
    h2_steps = []
    for t in range(S):                                   # statically unrolled
        h2 = gru_step(h2, gx2_r[t], gx2_z[t], gx2_n[t],
                      wh2r, wh2z, wh2n, bh2r, bh2z, bh2n)
        h2_steps.append(h2)
    h2_seq = jnp.stack(h2_steps, axis=0)                 # (S, Bp, H)

    # ---------------- FC head: one matmul + one bulk lane-dense store ----------------
    h2_flat = h2_seq.reshape(S * Bp, H)
    y = (jnp.dot(h2_flat, wfc_ref[...], preferred_element_type=jnp.float32)
         + bfc_ref[...])                                 # (S*Bp, Fp)
    y = y.reshape(S, Bp, Fp).transpose(1, 0, 2)          # -> batch-first (Bp, S, Fp)
    y_ref[...] = y.astype(y_ref.dtype)


def init_decoder_params(key, seq_len, n_features, embedding_dim=32):
    """Deterministic PyTorch-shaped params (uniform(-1/sqrt(h), 1/sqrt(h)))."""
    E = embedding_dim
    H = embedding_dim * 2
    keys = jax.random.split(key, 11)

    def u(k, shape, hid):
        bound = 1.0 / jnp.sqrt(jnp.float32(hid))
        return jax.random.uniform(k, shape, jnp.float32, -bound, bound)

    params = {
        # GRU1: input E -> hidden E
        "w_ih1": u(keys[0], (3 * E, E), E),
        "w_hh1": u(keys[1], (3 * E, E), E),
        "b_ih1": u(keys[2], (3 * E,), E),
        "b_hh1": u(keys[3], (3 * E,), E),
        # GRU2: input E -> hidden H
        "w_ih2": u(keys[4], (3 * H, E), H),
        "w_hh2": u(keys[5], (3 * H, H), H),
        "b_ih2": u(keys[6], (3 * H,), H),
        "b_hh2": u(keys[7], (3 * H,), H),
        # fc: H -> n_features
        "w_fc": u(keys[8], (n_features, H), H),
        "b_fc": u(keys[9], (n_features,), H),
    }
    return params


def _split_gates_w(w):
    """(3*hid, in) fused PyTorch weight -> three (in, hid) per-gate matrices."""
    hid = w.shape[0] // 3
    return w[0:hid].T, w[hid:2 * hid].T, w[2 * hid:3 * hid].T


def _split_gates_b(b):
    """(3*hid,) fused bias -> three (1, hid) per-gate rows."""
    hid = b.shape[0] // 3
    return (b[0:hid].reshape(1, -1),
            b[hid:2 * hid].reshape(1, -1),
            b[2 * hid:3 * hid].reshape(1, -1))


def decoder_forward_pallas(x, params, n_features):
    """x: (B, S, E) float32 -> (B, S, n_features) float32."""
    B, S, E = x.shape
    H = 2 * E
    F = n_features

    Bp = ((B + 7) // 8) * 8          # pad batch (sublanes) to a multiple of 8
    Fp = ((F + 127) // 128) * 128    # pad features (lanes) to a multiple of 128

    x_p = jnp.zeros((Bp, S, E), x.dtype).at[:B].set(x)

    wi1r, wi1z, wi1n = _split_gates_w(params["w_ih1"])
    wh1r, wh1z, wh1n = _split_gates_w(params["w_hh1"])
    bi1r, bi1z, bi1n = _split_gates_b(params["b_ih1"])
    bh1r, bh1z, bh1n = _split_gates_b(params["b_hh1"])

    wi2r, wi2z, wi2n = _split_gates_w(params["w_ih2"])
    wh2r, wh2z, wh2n = _split_gates_w(params["w_hh2"])
    bi2r, bi2z, bi2n = _split_gates_b(params["b_ih2"])
    bh2r, bh2z, bh2n = _split_gates_b(params["b_hh2"])

    wfc_p = jnp.zeros((H, Fp), jnp.float32).at[:, :F].set(params["w_fc"].T)
    bfc_p = jnp.zeros((1, Fp), jnp.float32).at[:, :F].set(params["b_fc"].reshape(1, -1))

    args = (
        x_p,
        wi1r, wi1z, wi1n, wh1r, wh1z, wh1n,
        bi1r, bi1z, bi1n, bh1r, bh1z, bh1n,
        wi2r, wi2z, wi2n, wh2r, wh2z, wh2n,
        bi2r, bi2z, bi2n, bh2r, bh2z, bh2n,
        wfc_p, bfc_p,
    )

    vmem_spec = pl.BlockSpec(memory_space=pltpu.MemorySpace.VMEM)

    out = pl.pallas_call(
        _gru_decoder_kernel,
        out_shape=jax.ShapeDtypeStruct((Bp, S, Fp), x.dtype),
        in_specs=[vmem_spec] * len(args),
        out_specs=vmem_spec,
    )(*args)

    # TODO(synk): for large B, add a batch-parallel grid (dimension_semantics=
    # ("parallel",)) to use both v7x TensorCores, and S-chunked BlockSpecs if
    # the resident sequences outgrow v7x's 64 MiB VMEM.
    return out[:B, :, :F]


def decoder_forward_ref(x, params, n_features):
    """Pure-JAX reference (lax.scan) mirroring PyTorch nn.GRU semantics."""
    B, S, E = x.shape
    H = 2 * E

    def gru_layer(x_seq, w_ih, w_hh, b_ih, b_hh, hid):
        def step(h, x_t):
            gx = x_t @ w_ih.T + b_ih
            gh = h @ w_hh.T + b_hh
            r = jax.nn.sigmoid(gx[:, :hid] + gh[:, :hid])
            z = jax.nn.sigmoid(gx[:, hid:2 * hid] + gh[:, hid:2 * hid])
            n = jnp.tanh(gx[:, 2 * hid:] + r * gh[:, 2 * hid:])
            h_new = (1.0 - z) * n + z * h
            return h_new, h_new

        h0 = jnp.zeros((B, hid), jnp.float32)
        _, ys = lax.scan(step, h0, jnp.transpose(x_seq, (1, 0, 2)))
        return jnp.transpose(ys, (1, 0, 2))

    h1 = gru_layer(x, params["w_ih1"], params["w_hh1"],
                   params["b_ih1"], params["b_hh1"], E)
    h2 = gru_layer(h1, params["w_ih2"], params["w_hh2"],
                   params["b_ih2"], params["b_hh2"], H)
    return h2 @ params["w_fc"].T + params["b_fc"]


if __name__ == "__main__":
    B, S, F, E = 2, 8, 4, 32   # batch, seq_len, n_features, embedding_dim

    key = jax.random.PRNGKey(0)
    k_param, k_x = jax.random.split(key)
    params = init_decoder_params(k_param, seq_len=S, n_features=F, embedding_dim=E)
    x = jax.random.normal(k_x, (B, S, E), jnp.float32)

    y = decoder_forward_pallas(x, params, F)
    y = jax.block_until_ready(y)

    y_ref = decoder_forward_ref(x, params, F)
    assert y.shape == (B, S, F)
    assert jnp.allclose(y, y_ref, atol=1e-4, rtol=1e-4), \
        f"max abs diff = {jnp.max(jnp.abs(y - y_ref))}"

    print("KERNEL_OK")
</pallas_src>

<mosaic_0001>
module attributes {stable_mosaic.version = 11 : i64} {
  func.func @_gru_decoder_kernel(%arg0: memref<8x8x32xf32, #tpu.memory_space<vmem>>, %arg1: memref<32x32xf32, #tpu.memory_space<vmem>>, %arg2: memref<32x32xf32, #tpu.memory_space<vmem>>, %arg3: memref<32x32xf32, #tpu.memory_space<vmem>>, %arg4: memref<32x32xf32, #tpu.memory_space<vmem>>, %arg5: memref<32x32xf32, #tpu.memory_space<vmem>>, %arg6: memref<32x32xf32, #tpu.memory_space<vmem>>, %arg7: memref<1x32xf32, #tpu.memory_space<vmem>>, %arg8: memref<1x32xf32, #tpu.memory_space<vmem>>, %arg9: memref<1x32xf32, #tpu.memory_space<vmem>>, %arg10: memref<1x32xf32, #tpu.memory_space<vmem>>, %arg11: memref<1x32xf32, #tpu.memory_space<vmem>>, %arg12: memref<1x32xf32, #tpu.memory_space<vmem>>, %arg13: memref<32x64xf32, #tpu.memory_space<vmem>>, %arg14: memref<32x64xf32, #tpu.memory_space<vmem>>, %arg15: memref<32x64xf32, #tpu.memory_space<vmem>>, %arg16: memref<64x64xf32, #tpu.memory_space<vmem>>, %arg17: memref<64x64xf32, #tpu.memory_space<vmem>>, %arg18: memref<64x64xf32, #tpu.memory_space<vmem>>, %arg19: memref<1x64xf32, #tpu.memory_space<vmem>>, %arg20: memref<1x64xf32, #tpu.memory_space<vmem>>, %arg21: memref<1x64xf32, #tpu.memory_space<vmem>>, %arg22: memref<1x64xf32, #tpu.memory_space<vmem>>, %arg23: memref<1x64xf32, #tpu.memory_space<vmem>>, %arg24: memref<1x64xf32, #tpu.memory_space<vmem>>, %arg25: memref<64x128xf32, #tpu.memory_space<vmem>>, %arg26: memref<1x128xf32, #tpu.memory_space<vmem>>, %arg27: memref<8x8x128xf32, #tpu.memory_space<vmem>>) attributes {dimension_semantics = [], scalar_prefetch = 0 : i64, scratch_operands = 0 : i64, tpu.core_type = #tpu.core_type<tc>} {
    %c0 = arith.constant 0 : index
    %c0_0 = arith.constant 0 : index
    %c0_1 = arith.constant 0 : index
    %0 = vector.load %arg0[%c0, %c0_0, %c0_1] : memref<8x8x32xf32, #tpu.memory_space<vmem>>, vector<8x8x32xf32>
    %1 = tpu.transpose %0, [1, 0, 2] : vector<8x8x32xf32> -> vector<8x8x32xf32>
    %2 = vector.shape_cast %1 : vector<8x8x32xf32> to vector<64x32xf32>
    %c0_2 = arith.constant 0 : index
    %c0_3 = arith.constant 0 : index
    %3 = vector.load %arg1[%c0_2, %c0_3] : memref<32x32xf32, #tpu.memory_space<vmem>>, vector<32x32xf32>
    %cst = arith.constant dense<0.000000e+00> : vector<64x32xf32>
    %4 = tpu.matmul %2, %3, %cst {dimension_numbers = #tpu.dot_dimension_numbers<[1], [0], [0], [1], [0, 0, 1, 1], [], []>} : vector<64x32xf32>, vector<32x32xf32>, vector<64x32xf32> -> vector<64x32xf32>
    %c0_4 = arith.constant 0 : index
    %c0_5 = arith.constant 0 : index
    %5 = vector.load %arg7[%c0_4, %c0_5] : memref<1x32xf32, #tpu.memory_space<vmem>>, vector<1x32xf32>
    %6 = vector.broadcast %5 : vector<1x32xf32> to vector<64x32xf32>
    %7 = arith.addf %4, %6 : vector<64x32xf32>
    %8 = vector.shape_cast %7 : vector<64x32xf32> to vector<8x8x32xf32>
    %c0_6 = arith.constant 0 : index
    %c0_7 = arith.constant 0 : index
    %9 = vector.load %arg2[%c0_6, %c0_7] : memref<32x32xf32, #tpu.memory_space<vmem>>, vector<32x32xf32>
    %cst_8 = arith.constant dense<0.000000e+00> : vector<64x32xf32>
    %10 = tpu.matmul %2, %9, %cst_8 {dimension_numbers = #tpu.dot_dimension_numbers<[1], [0], [0], [1], [0, 0, 1, 1], [], []>} : vector<64x32xf32>, vector<32x32xf32>, vector<64x32xf32> -> vector<64x32xf32>
    %c0_9 = arith.constant 0 : index
    %c0_10 = arith.constant 0 : index
    %11 = vector.load %arg8[%c0_9, %c0_10] : memref<1x32xf32, #tpu.memory_space<vmem>>, vector<1x32xf32>
    %12 = vector.broadcast %11 : vector<1x32xf32> to vector<64x32xf32>
    %13 = arith.addf %10, %12 : vector<64x32xf32>
    %14 = vector.shape_cast %13 : vector<64x32xf32> to vector<8x8x32xf32>
    %c0_11 = arith.constant 0 : index
    %c0_12 = arith.constant 0 : index
    %15 = vector.load %arg3[%c0_11, %c0_12] : memref<32x32xf32, #tpu.memory_space<vmem>>, vector<32x32xf32>
    %cst_13 = arith.constant dense<0.000000e+00> : vector<64x32xf32>
    %16 = tpu.matmul %2, %15, %cst_13 {dimension_numbers = #tpu.dot_dimension_numbers<[1], [0], [0], [1], [0, 0, 1, 1], [], []>} : vector<64x32xf32>, vector<32x32xf32>, vector<64x32xf32> -> vector<64x32xf32>
    %c0_14 = arith.constant 0 : index
    %c0_15 = arith.constant 0 : index
    %17 = vector.load %arg9[%c0_14, %c0_15] : memref<1x32xf32, #tpu.memory_space<vmem>>, vector<1x32xf32>
    %18 = vector.broadcast %17 : vector<1x32xf32> to vector<64x32xf32>
    %19 = arith.addf %16, %18 : vector<64x32xf32>
    %20 = vector.shape_cast %19 : vector<64x32xf32> to vector<8x8x32xf32>
    %c0_16 = arith.constant 0 : index
    %c0_17 = arith.constant 0 : index
    %21 = vector.load %arg4[%c0_16, %c0_17] : memref<32x32xf32, #tpu.memory_space<vmem>>, vector<32x32xf32>
    %c0_18 = arith.constant 0 : index
    %c0_19 = arith.constant 0 : index
    %22 = vector.load %arg5[%c0_18, %c0_19] : memref<32x32xf32, #tpu.memory_space<vmem>>, vector<32x32xf32>
    %c0_20 = arith.constant 0 : index
    %c0_21 = arith.constant 0 : index
    %23 = vector.load %arg6[%c0_20, %c0_21] : memref<32x32xf32, #tpu.memory_space<vmem>>, vector<32x32xf32>
    %c0_22 = arith.constant 0 : index
    %c0_23 = arith.constant 0 : index
    %24 = vector.load %arg10[%c0_22, %c0_23] : memref<1x32xf32, #tpu.memory_space<vmem>>, vector<1x32xf32>
    %25 = vector.shape_cast %24 : vector<1x32xf32> to vector<1x32xf32>
    %26 = vector.broadcast %25 : vector<1x32xf32> to vector<8x32xf32>
    %c0_24 = arith.constant 0 : index
    %c0_25 = arith.constant 0 : index
    %27 = vector.load %arg11[%c0_24, %c0_25] : memref<1x32xf32, #tpu.memory_space<vmem>>, vector<1x32xf32>
    %28 = vector.shape_cast %27 : vector<1x32xf32> to vector<1x32xf32>
    %29 = vector.broadcast %28 : vector<1x32xf32> to vector<8x32xf32>
    %c0_26 = arith.constant 0 : index
    %c0_27 = arith.constant 0 : index
    %30 = vector.load %arg12[%c0_26, %c0_27] : memref<1x32xf32, #tpu.memory_space<vmem>>, vector<1x32xf32>
    %31 = vector.shape_cast %30 : vector<1x32xf32> to vector<1x32xf32>
    %32 = vector.broadcast %31 : vector<1x32xf32> to vector<8x32xf32>
    %cst_28 = arith.constant 0.000000e+00 : f32
    %33 = vector.broadcast %cst_28 : f32 to vector<8x32xf32>
    %34 = vector.extract_strided_slice %8 {offsets = [0, 0, 0], sizes = [1, 8, 32], strides = [1, 1, 1]} : vector<8x8x32xf32> to vector<1x8x32xf32>
    %35 = vector.shape_cast %34 : vector<1x8x32xf32> to vector<8x32xf32>
    %36 = vector.extract_strided_slice %14 {offsets = [0, 0, 0], sizes = [1, 8, 32], strides = [1, 1, 1]} : vector<8x8x32xf32> to vector<1x8x32xf32>
    %37 = vector.shape_cast %36 : vector<1x8x32xf32> to vector<8x32xf32>
    %38 = vector.extract_strided_slice %20 {offsets = [0, 0, 0], sizes = [1, 8, 32], strides = [1, 1, 1]} : vector<8x8x32xf32> to vector<1x8x32xf32>
    %39 = vector.shape_cast %38 : vector<1x8x32xf32> to vector<8x32xf32>
    %cst_29 = arith.constant dense<0.000000e+00> : vector<8x32xf32>
    %40 = tpu.matmul %33, %21, %cst_29 {dimension_numbers = #tpu.dot_dimension_numbers<[1], [0], [0], [1], [0, 0, 1, 1], [], []>} : vector<8x32xf32>, vector<32x32xf32>, vector<8x32xf32> -> vector<8x32xf32>
    %41 = arith.addf %40, %26 : vector<8x32xf32>
    %cst_30 = arith.constant dense<0.000000e+00> : vector<8x32xf32>
    %42 = tpu.matmul %33, %22, %cst_30 {dimension_numbers = #tpu.dot_dimension_numbers<[1], [0], [0], [1], [0, 0, 1, 1], [], []>} : vector<8x32xf32>, vector<32x32xf32>, vector<8x32xf32> -> vector<8x32xf32>
    %43 = arith.addf %42, %29 : vector<8x32xf32>
    %cst_31 = arith.constant dense<0.000000e+00> : vector<8x32xf32>
    %44 = tpu.matmul %33, %23, %cst_31 {dimension_numbers = #tpu.dot_dimension_numbers<[1], [0], [0], [1], [0, 0, 1, 1], [], []>} : vector<8x32xf32>, vector<32x32xf32>, vector<8x32xf32> -> vector<8x32xf32>
    %45 = arith.addf %44, %32 : vector<8x32xf32>
    %46 = arith.addf %35, %41 : vector<8x32xf32>
    %47 = arith.negf %46 : vector<8x32xf32>
    %48 = math.exp %47 : vector<8x32xf32>
    %cst_32 = arith.constant 1.000000e+00 : f32
    %49 = vector.broadcast %cst_32 : f32 to vector<8x32xf32>
    %50 = arith.addf %49, %48 : vector<8x32xf32>
    %51 = arith.divf %49, %50 : vector<8x32xf32>
    %52 = arith.addf %37, %43 : vector<8x32xf32>
    %53 = arith.negf %52 : vector<8x32xf32>
    %54 = math.exp %53 : vector<8x32xf32>
    %cst_33 = arith.constant 1.000000e+00 : f32
    %55 = vector.broadcast %cst_33 : f32 to vector<8x32xf32>
    %56 = arith.addf %55, %54 : vector<8x32xf32>
    %57 = arith.divf %55, %56 : vector<8x32xf32>
    %58 = arith.mulf %51, %45 : vector<8x32xf32>
    %59 = arith.addf %39, %58 : vector<8x32xf32>
    %60 = math.tanh %59 : vector<8x32xf32>
    %cst_34 = arith.constant 1.000000e+00 : f32
    %61 = vector.broadcast %cst_34 : f32 to vector<8x32xf32>
    %62 = arith.subf %61, %57 : vector<8x32xf32>
    %63 = arith.mulf %62, %60 : vector<8x32xf32>
    %64 = arith.mulf %57, %33 : vector<8x32xf32>
    %65 = arith.addf %63, %64 : vector<8x32xf32>
    %66 = vector.extract_strided_slice %8 {offsets = [1, 0, 0], sizes = [1, 8, 32], strides = [1, 1, 1]} : vector<8x8x32xf32> to vector<1x8x32xf32>
    %67 = vector.shape_cast %66 : vector<1x8x32xf32> to vector<8x32xf32>
    %68 = vector.extract_strided_slice %14 {offsets = [1, 0, 0], sizes = [1, 8, 32], strides = [1, 1, 1]} : vector<8x8x32xf32> to vector<1x8x32xf32>
    %69 = vector.shape_cast %68 : vector<1x8x32xf32> to vector<8x32xf32>
    %70 = vector.extract_strided_slice %20 {offsets = [1, 0, 0], sizes = [1, 8, 32], strides = [1, 1, 1]} : vector<8x8x32xf32> to vector<1x8x32xf32>
    %71 = vector.shape_cast %70 : vector<1x8x32xf32> to vector<8x32xf32>
    %cst_35 = arith.constant dense<0.000000e+00> : vector<8x32xf32>
    %72 = tpu.matmul %65, %21, %cst_35 {dimension_numbers = #tpu.dot_dimension_numbers<[1], [0], [0], [1], [0, 0, 1, 1], [], []>} : vector<8x32xf32>, vector<32x32xf32>, vector<8x32xf32> -> vector<8x32xf32>
    %73 = arith.addf %72, %26 : vector<8x32xf32>
    %cst_36 = arith.constant dense<0.000000e+00> : vector<8x32xf32>
    %74 = tpu.matmul %65, %22, %cst_36 {dimension_numbers = #tpu.dot_dimension_numbers<[1], [0], [0], [1], [0, 0, 1, 1], [], []>} : vector<8x32xf32>, vector<32x32xf32>, vector<8x32xf32> -> vector<8x32xf32>
    %75 = arith.addf %74, %29 : vector<8x32xf32>
    %cst_37 = arith.constant dense<0.000000e+00> : vector<8x32xf32>
    %76 = tpu.matmul %65, %23, %cst_37 {dimension_numbers = #tpu.dot_dimension_numbers<[1], [0], [0], [1], [0, 0, 1, 1], [], []>} : vector<8x32xf32>, vector<32x32xf32>, vector<8x32xf32> -> vector<8x32xf32>
    %77 = arith.addf %76, %32 : vector<8x32xf32>
    %78 = arith.addf %67, %73 : vector<8x32xf32>
    %79 = arith.negf %78 : vector<8x32xf32>
    %80 = math.exp %79 : vector<8x32xf32>
    %cst_38 = arith.constant 1.000000e+00 : f32
    %81 = vector.broadcast %cst_38 : f32 to vector<8x32xf32>
    %82 = arith.addf %81, %80 : vector<8x32xf32>
    %83 = arith.divf %81, %82 : vector<8x32xf32>
    %84 = arith.addf %69, %75 : vector<8x32xf32>
    %85 = arith.negf %84 : vector<8x32xf32>
    %86 = math.exp %85 : vector<8x32xf32>
    %cst_39 = arith.constant 1.000000e+00 : f32
    %87 = vector.broadcast %cst_39 : f32 to vector<8x32xf32>
    %88 = arith.addf %87, %86 : vector<8x32xf32>
    %89 = arith.divf %87, %88 : vector<8x32xf32>
    %90 = arith.mulf %83, %77 : vector<8x32xf32>
    %91 = arith.addf %71, %90 : vector<8x32xf32>
    %92 = math.tanh %91 : vector<8x32xf32>
    %cst_40 = arith.constant 1.000000e+00 : f32
    %93 = vector.broadcast %cst_40 : f32 to vector<8x32xf32>
    %94 = arith.subf %93, %89 : vector<8x32xf32>
    %95 = arith.mulf %94, %92 : vector<8x32xf32>
    %96 = arith.mulf %89, %65 : vector<8x32xf32>
    %97 = arith.addf %95, %96 : vector<8x32xf32>
    %98 = vector.extract_strided_slice %8 {offsets = [2, 0, 0], sizes = [1, 8, 32], strides = [1, 1, 1]} : vector<8x8x32xf32> to vector<1x8x32xf32>
    %99 = vector.shape_cast %98 : vector<1x8x32xf32> to vector<8x32xf32>
    %100 = vector.extract_strided_slice %14 {offsets = [2, 0, 0], sizes = [1, 8, 32], strides = [1, 1, 1]} : vector<8x8x32xf32> to vector<1x8x32xf32>
    %101 = vector.shape_cast %100 : vector<1x8x32xf32> to vector<8x32xf32>
    %102 = vector.extract_strided_slice %20 {offsets = [2, 0, 0], sizes = [1, 8, 32], strides = [1, 1, 1]} : vector<8x8x32xf32> to vector<1x8x32xf32>
    %103 = vector.shape_cast %102 : vector<1x8x32xf32> to vector<8x32xf32>
    %cst_41 = arith.constant dense<0.000000e+00> : vector<8x32xf32>
    %104 = tpu.matmul %97, %21, %cst_41 {dimension_numbers = #tpu.dot_dimension_numbers<[1], [0], [0], [1], [0, 0, 1, 1], [], []>} : vector<8x32xf32>, vector<32x32xf32>, vector<8x32xf32> -> vector<8x32xf32>
    %105 = arith.addf %104, %26 : vector<8x32xf32>
    %cst_42 = arith.constant dense<0.000000e+00> : vector<8x32xf32>
    %106 = tpu.matmul %97, %22, %cst_42 {dimension_numbers = #tpu.dot_dimension_numbers<[1], [0], [0], [1], [0, 0, 1, 1], [], []>} : vector<8x32xf32>, vector<32x32xf32>, vector<8x32xf32> -> vector<8x32xf32>
    %107 = arith.addf %106, %29 : vector<8x32xf32>
    %cst_43 = arith.constant dense<0.000000e+00> : vector<8x32xf32>
    %108 = tpu.matmul %97, %23, %cst_43 {dimension_numbers = #tpu.dot_dimension_numbers<[1], [0], [0], [1], [0, 0, 1, 1], [], []>} : vector<8x32xf32>, vector<32x32xf32>, vector<8x32xf32> -> vector<8x32xf32>
    %109 = arith.addf %108, %32 : vector<8x32xf32>
    %110 = arith.addf %99, %105 : vector<8x32xf32>
    %111 = arith.negf %110 : vector<8x32xf32>
    %112 = math.exp %111 : vector<8x32xf32>
    %cst_44 = arith.constant 1.000000e+00 : f32
    %113 = vector.broadcast %cst_44 : f32 to vector<8x32xf32>
    %114 = arith.addf %113, %112 : vector<8x32xf32>
    %115 = arith.divf %113, %114 : vector<8x32xf32>
    %116 = arith.addf %101, %107 : vector<8x32xf32>
    %117 = arith.negf %116 : vector<8x32xf32>
    %118 = math.exp %117 : vector<8x32xf32>
    %cst_45 = arith.constant 1.000000e+00 : f32
    %119 = vector.broadcast %cst_45 : f32 to vector<8x32xf32>
    %120 = arith.addf %119, %118 : vector<8x32xf32>
    %121 = arith.divf %119, %120 : vector<8x32xf32>
    %122 = arith.mulf %115, %109 : vector<8x32xf32>
    %123 = arith.addf %103, %122 : vector<8x32xf32>
    %124 = math.tanh %123 : vector<8x32xf32>
    %cst_46 = arith.constant 1.000000e+00 : f32
    %125 = vector.broadcast %cst_46 : f32 to vector<8x32xf32>
    %126 = arith.subf %125, %121 : vector<8x32xf32>
    %127 = arith.mulf %126, %124 : vector<8x32xf32>
    %128 = arith.mulf %121, %97 : vector<8x32xf32>
    %129 = arith.addf %127, %128 : vector<8x32xf32>
    %130 = vector.extract_strided_slice %8 {offsets = [3, 0, 0], sizes = [1, 8, 32], strides = [1, 1, 1]} : vector<8x8x32xf32> to vector<1x8x32xf32>
    %131 = vector.shape_cast %130 : vector<1x8x32xf32> to vector<8x32xf32>
    %132 = vector.extract_strided_slice %14 {offsets = [3, 0, 0], sizes = [1, 8, 32], strides = [1, 1, 1]} : vector<8x8x32xf32> to vector<1x8x32xf32>
    %133 = vector.shape_cast %132 : vector<1x8x32xf32> to vector<8x32xf32>
    %134 = vector.extract_strided_slice %20 {offsets = [3, 0, 0], sizes = [1, 8, 32], strides = [1, 1, 1]} : vector<8x8x32xf32> to vector<1x8x32xf32>
    %135 = vector.shape_cast %134 : vector<1x8x32xf32> to vector<8x32xf32>
    %cst_47 = arith.constant dense<0.000000e+00> : vector<8x32xf32>
    %136 = tpu.matmul %129, %21, %cst_47 {dimension_numbers = #tpu.dot_dimension_numbers<[1], [0], [0], [1], [0, 0, 1, 1], [], []>} : vector<8x32xf32>, vector<32x32xf32>, vector<8x32xf32> -> vector<8x32xf32>
    %137 = arith.addf %136, %26 : vector<8x32xf32>
    %cst_48 = arith.constant dense<0.000000e+00> : vector<8x32xf32>
    %138 = tpu.matmul %129, %22, %cst_48 {dimension_numbers = #tpu.dot_dimension_numbers<[1], [0], [0], [1], [0, 0, 1, 1], [], []>} : vector<8x32xf32>, vector<32x32xf32>, vector<8x32xf32> -> vector<8x32xf32>
    %139 = arith.addf %138, %29 : vector<8x32xf32>
    %cst_49 = arith.constant dense<0.000000e+00> : vector<8x32xf32>
    %140 = tpu.matmul %129, %23, %cst_49 {dimension_numbers = #tpu.dot_dimension_numbers<[1], [0], [0], [1], [0, 0, 1, 1], [], []>} : vector<8x32xf32>, vector<32x32xf32>, vector<8x32xf32> -> vector<8x32xf32>
    %141 = arith.addf %140, %32 : vector<8x32xf32>
    %142 = arith.addf %131, %137 : vector<8x32xf32>
    %143 = arith.negf %142 : vector<8x32xf32>
    %144 = math.exp %143 : vector<8x32xf32>
    %cst_50 = arith.constant 1.000000e+00 : f32
    %145 = vector.broadcast %cst_50 : f32 to vector<8x32xf32>
    %146 = arith.addf %145, %144 : vector<8x32xf32>
    %147 = arith.divf %145, %146 : vector<8x32xf32>
    %148 = arith.addf %133, %139 : vector<8x32xf32>
    %149 = arith.negf %148 : vector<8x32xf32>
    %150 = math.exp %149 : vector<8x32xf32>
    %cst_51 = arith.constant 1.000000e+00 : f32
    %151 = vector.broadcast %cst_51 : f32 to vector<8x32xf32>
    %152 = arith.addf %151, %150 : vector<8x32xf32>
    %153 = arith.divf %151, %152 : vector<8x32xf32>
    %154 = arith.mulf %147, %141 : vector<8x32xf32>
    %155 = arith.addf %135, %154 : vector<8x32xf32>
    %156 = math.tanh %155 : vector<8x32xf32>
    %cst_52 = arith.constant 1.000000e+00 : f32
    %157 = vector.broadcast %cst_52 : f32 to vector<8x32xf32>
    %158 = arith.subf %157, %153 : vector<8x32xf32>
    %159 = arith.mulf %158, %156 : vector<8x32xf32>
    %160 = arith.mulf %153, %129 : vector<8x32xf32>
    %161 = arith.addf %159, %160 : vector<8x32xf32>
    %162 = vector.extract_strided_slice %8 {offsets = [4, 0, 0], sizes = [1, 8, 32], strides = [1, 1, 1]} : vector<8x8x32xf32> to vector<1x8x32xf32>
    %163 = vector.shape_cast %162 : vector<1x8x32xf32> to vector<8x32xf32>
    %164 = vector.extract_strided_slice %14 {offsets = [4, 0, 0], sizes = [1, 8, 32], strides = [1, 1, 1]} : vector<8x8x32xf32> to vector<1x8x32xf32>
    %165 = vector.shape_cast %164 : vector<1x8x32xf32> to vector<8x32xf32>
    %166 = vector.extract_strided_slice %20 {offsets = [4, 0, 0], sizes = [1, 8, 32], strides = [1, 1, 1]} : vector<8x8x32xf32> to vector<1x8x32xf32>
    %167 = vector.shape_cast %166 : vector<1x8x32xf32> to vector<8x32xf32>
    %cst_53 = arith.constant dense<0.000000e+00> : vector<8x32xf32>
    %168 = tpu.matmul %161, %21, %cst_53 {dimension_numbers = #tpu.dot_dimension_numbers<[1], [0], [0], [1], [0, 0, 1, 1], [], []>} : vector<8x32xf32>, vector<32x32xf32>, vector<8x32xf32> -> vector<8x32xf32>
    %169 = arith.addf %168, %26 : vector<8x32xf32>
    %cst_54 = arith.constant dense<0.000000e+00> : vector<8x32xf32>
    %170 = tpu.matmul %161, %22, %cst_54 {dimension_numbers = #tpu.dot_dimension_numbers<[1], [0], [0], [1], [0, 0, 1, 1], [], []>} : vector<8x32xf32>, vector<32x32xf32>, vector<8x32xf32> -> vector<8x32xf32>
    %171 = arith.addf %170, %29 : vector<8x32xf32>
    %cst_55 = arith.constant dense<0.000000e+00> : vector<8x32xf32>
    %172 = tpu.matmul %161, %23, %cst_55 {dimension_numbers = #tpu.dot_dimension_numbers<[1], [0], [0], [1], [0, 0, 1, 1], [], []>} : vector<8x32xf32>, vector<32x32xf32>, vector<8x32xf32> -> vector<8x32xf32>
    %173 = arith.addf %172, %32 : vector<8x32xf32>
    %174 = arith.addf %163, %169 : vector<8x32xf32>
    %175 = arith.negf %174 : vector<8x32xf32>
    %176 = math.exp %175 : vector<8x32xf32>
    %cst_56 = arith.constant 1.000000e+00 : f32
    %177 = vector.broadcast %cst_56 : f32 to vector<8x32xf32>
    %178 = arith.addf %177, %176 : vector<8x32xf32>
    %179 = arith.divf %177, %178 : vector<8x32xf32>
    %180 = arith.addf %165, %171 : vector<8x32xf32>
    %181 = arith.negf %180 : vector<8x32xf32>
    %182 = math.exp %181 : vector<8x32xf32>
    %cst_57 = arith.constant 1.000000e+00 : f32
    %183 = vector.broadcast %cst_57 : f32 to vector<8x32xf32>
    %184 = arith.addf %183, %182 : vector<8x32xf32>
    %185 = arith.divf %183, %184 : vector<8x32xf32>
    %186 = arith.mulf %179, %173 : vector<8x32xf32>
    %187 = arith.addf %167, %186 : vector<8x32xf32>
    %188 = math.tanh %187 : vector<8x32xf32>
    %cst_58 = arith.constant 1.000000e+00 : f32
    %189 = vector.broadcast %cst_58 : f32 to vector<8x32xf32>
    %190 = arith.subf %189, %185 : vector<8x32xf32>
    %191 = arith.mulf %190, %188 : vector<8x32xf32>
    %192 = arith.mulf %185, %161 : vector<8x32xf32>
    %193 = arith.addf %191, %192 : vector<8x32xf32>
    %194 = vector.extract_strided_slice %8 {offsets = [5, 0, 0], sizes = [1, 8, 32], strides = [1, 1, 1]} : vector<8x8x32xf32> to vector<1x8x32xf32>
    %195 = vector.shape_cast %194 : vector<1x8x32xf32> to vector<8x32xf32>
    %196 = vector.extract_strided_slice %14 {offsets = [5, 0, 0], sizes = [1, 8, 32], strides = [1, 1, 1]} : vector<8x8x32xf32> to vector<1x8x32xf32>
    %197 = vector.shape_cast %196 : vector<1x8x32xf32> to vector<8x32xf32>
    %198 = vector.extract_strided_slice %20 {offsets = [5, 0, 0], sizes = [1, 8, 32], strides = [1, 1, 1]} : vector<8x8x32xf32> to vector<1x8x32xf32>
    %199 = vector.shape_cast %198 : vector<1x8x32xf32> to vector<8x32xf32>
    %cst_59 = arith.constant dense<0.000000e+00> : vector<8x32xf32>
    %200 = tpu.matmul %193, %21, %cst_59 {dimension_numbers = #tpu.dot_dimension_numbers<[1], [0], [0], [1], [0, 0, 1, 1], [], []>} : vector<8x32xf32>, vector<32x32xf32>, vector<8x32xf32> -> vector<8x32xf32>
    %201 = arith.addf %200, %26 : vector<8x32xf32>
    %cst_60 = arith.constant dense<0.000000e+00> : vector<8x32xf32>
    %202 = tpu.matmul %193, %22, %cst_60 {dimension_numbers = #tpu.dot_dimension_numbers<[1], [0], [0], [1], [0, 0, 1, 1], [], []>} : vector<8x32xf32>, vector<32x32xf32>, vector<8x32xf32> -> vector<8x32xf32>
    %203 = arith.addf %202, %29 : vector<8x32xf32>
    %cst_61 = arith.constant dense<0.000000e+00> : vector<8x32xf32>
    %204 = tpu.matmul %193, %23, %cst_61 {dimension_numbers = #tpu.dot_dimension_numbers<[1], [0], [0], [1], [0, 0, 1, 1], [], []>} : vector<8x32xf32>, vector<32x32xf32>, vector<8x32xf32> -> vector<8x32xf32>
    %205 = arith.addf %204, %32 : vector<8x32xf32>
    %206 = arith.addf %195, %201 : vector<8x32xf32>
    %207 = arith.negf %206 : vector<8x32xf32>
    %208 = math.exp %207 : vector<8x32xf32>
    %cst_62 = arith.constant 1.000000e+00 : f32
    %209 = vector.broadcast %cst_62 : f32 to vector<8x32xf32>
    %210 = arith.addf %209, %208 : vector<8x32xf32>
    %211 = arith.divf %209, %210 : vector<8x32xf32>
    %212 = arith.addf %197, %203 : vector<8x32xf32>
    %213 = arith.negf %212 : vector<8x32xf32>
    %214 = math.exp %213 : vector<8x32xf32>
    %cst_63 = arith.constant 1.000000e+00 : f32
    %215 = vector.broadcast %cst_63 : f32 to vector<8x32xf32>
    %216 = arith.addf %215, %214 : vector<8x32xf32>
    %217 = arith.divf %215, %216 : vector<8x32xf32>
    %218 = arith.mulf %211, %205 : vector<8x32xf32>
    %219 = arith.addf %199, %218 : vector<8x32xf32>
    %220 = math.tanh %219 : vector<8x32xf32>
    %cst_64 = arith.constant 1.000000e+00 : f32
    %221 = vector.broadcast %cst_64 : f32 to vector<8x32xf32>
    %222 = arith.subf %221, %217 : vector<8x32xf32>
    %223 = arith.mulf %222, %220 : vector<8x32xf32>
    %224 = arith.mulf %217, %193 : vector<8x32xf32>
    %225 = arith.addf %223, %224 : vector<8x32xf32>
    %226 = vector.extract_strided_slice %8 {offsets = [6, 0, 0], sizes = [1, 8, 32], strides = [1, 1, 1]} : vector<8x8x32xf32> to vector<1x8x32xf32>
    %227 = vector.shape_cast %226 : vector<1x8x32xf32> to vector<8x32xf32>
    %228 = vector.extract_strided_slice %14 {offsets = [6, 0, 0], sizes = [1, 8, 32], strides = [1, 1, 1]} : vector<8x8x32xf32> to vector<1x8x32xf32>
    %229 = vector.shape_cast %228 : vector<1x8x32xf32> to vector<8x32xf32>
    %230 = vector.extract_strided_slice %20 {offsets = [6, 0, 0], sizes = [1, 8, 32], strides = [1, 1, 1]} : vector<8x8x32xf32> to vector<1x8x32xf32>
    %231 = vector.shape_cast %230 : vector<1x8x32xf32> to vector<8x32xf32>
    %cst_65 = arith.constant dense<0.000000e+00> : vector<8x32xf32>
    %232 = tpu.matmul %225, %21, %cst_65 {dimension_numbers = #tpu.dot_dimension_numbers<[1], [0], [0], [1], [0, 0, 1, 1], [], []>} : vector<8x32xf32>, vector<32x32xf32>, vector<8x32xf32> -> vector<8x32xf32>
    %233 = arith.addf %232, %26 : vector<8x32xf32>
    %cst_66 = arith.constant dense<0.000000e+00> : vector<8x32xf32>
    %234 = tpu.matmul %225, %22, %cst_66 {dimension_numbers = #tpu.dot_dimension_numbers<[1], [0], [0], [1], [0, 0, 1, 1], [], []>} : vector<8x32xf32>, vector<32x32xf32>, vector<8x32xf32> -> vector<8x32xf32>
    %235 = arith.addf %234, %29 : vector<8x32xf32>
    %cst_67 = arith.constant dense<0.000000e+00> : vector<8x32xf32>
    %236 = tpu.matmul %225, %23, %cst_67 {dimension_numbers = #tpu.dot_dimension_numbers<[1], [0], [0], [1], [0, 0, 1, 1], [], []>} : vector<8x32xf32>, vector<32x32xf32>, vector<8x32xf32> -> vector<8x32xf32>
    %237 = arith.addf %236, %32 : vector<8x32xf32>
    %238 = arith.addf %227, %233 : vector<8x32xf32>
    %239 = arith.negf %238 : vector<8x32xf32>
    %240 = math.exp %239 : vector<8x32xf32>
    %cst_68 = arith.constant 1.000000e+00 : f32
    %241 = vector.broadcast %cst_68 : f32 to vector<8x32xf32>
    %242 = arith.addf %241, %240 : vector<8x32xf32>
    %243 = arith.divf %241, %242 : vector<8x32xf32>
    %244 = arith.addf %229, %235 : vector<8x32xf32>
    %245 = arith.negf %244 : vector<8x32xf32>
    %246 = math.exp %245 : vector<8x32xf32>
    %cst_69 = arith.constant 1.000000e+00 : f32
    %247 = vector.broadcast %cst_69 : f32 to vector<8x32xf32>
    %248 = arith.addf %247, %246 : vector<8x32xf32>
    %249 = arith.divf %247, %248 : vector<8x32xf32>
    %250 = arith.mulf %243, %237 : vector<8x32xf32>
    %251 = arith.addf %231, %250 : vector<8x32xf32>
    %252 = math.tanh %251 : vector<8x32xf32>
    %cst_70 = arith.constant 1.000000e+00 : f32
    %253 = vector.broadcast %cst_70 : f32 to vector<8x32xf32>
    %254 = arith.subf %253, %249 : vector<8x32xf32>
    %255 = arith.mulf %254, %252 : vector<8x32xf32>
    %256 = arith.mulf %249, %225 : vector<8x32xf32>
    %257 = arith.addf %255, %256 : vector<8x32xf32>
    %258 = vector.extract_strided_slice %8 {offsets = [7, 0, 0], sizes = [1, 8, 32], strides = [1, 1, 1]} : vector<8x8x32xf32> to vector<1x8x32xf32>
    %259 = vector.shape_cast %258 : vector<1x8x32xf32> to vector<8x32xf32>
    %260 = vector.extract_strided_slice %14 {offsets = [7, 0, 0], sizes = [1, 8, 32], strides = [1, 1, 1]} : vector<8x8x32xf32> to vector<1x8x32xf32>
    %261 = vector.shape_cast %260 : vector<1x8x32xf32> to vector<8x32xf32>
    %262 = vector.extract_strided_slice %20 {offsets = [7, 0, 0], sizes = [1, 8, 32], strides = [1, 1, 1]} : vector<8x8x32xf32> to vector<1x8x32xf32>
    %263 = vector.shape_cast %262 : vector<1x8x32xf32> to vector<8x32xf32>
    %cst_71 = arith.constant dense<0.000000e+00> : vector<8x32xf32>
    %264 = tpu.matmul %257, %21, %cst_71 {dimension_numbers = #tpu.dot_dimension_numbers<[1], [0], [0], [1], [0, 0, 1, 1], [], []>} : vector<8x32xf32>, vector<32x32xf32>, vector<8x32xf32> -> vector<8x32xf32>
    %265 = arith.addf %264, %26 : vector<8x32xf32>
    %cst_72 = arith.constant dense<0.000000e+00> : vector<8x32xf32>
    %266 = tpu.matmul %257, %22, %cst_72 {dimension_numbers = #tpu.dot_dimension_numbers<[1], [0], [0], [1], [0, 0, 1, 1], [], []>} : vector<8x32xf32>, vector<32x32xf32>, vector<8x32xf32> -> vector<8x32xf32>
    %267 = arith.addf %266, %29 : vector<8x32xf32>
    %cst_73 = arith.constant dense<0.000000e+00> : vector<8x32xf32>
    %268 = tpu.matmul %257, %23, %cst_73 {dimension_numbers = #tpu.dot_dimension_numbers<[1], [0], [0], [1], [0, 0, 1, 1], [], []>} : vector<8x32xf32>, vector<32x32xf32>, vector<8x32xf32> -> vector<8x32xf32>
    %269 = arith.addf %268, %32 : vector<8x32xf32>
    %270 = arith.addf %259, %265 : vector<8x32xf32>
    %271 = arith.negf %270 : vector<8x32xf32>
    %272 = math.exp %271 : vector<8x32xf32>
    %cst_74 = arith.constant 1.000000e+00 : f32
    %273 = vector.broadcast %cst_74 : f32 to vector<8x32xf32>
    %274 = arith.addf %273, %272 : vector<8x32xf32>
    %275 = arith.divf %273, %274 : vector<8x32xf32>
    %276 = arith.addf %261, %267 : vector<8x32xf32>
    %277 = arith.negf %276 : vector<8x32xf32>
    %278 = math.exp %277 : vector<8x32xf32>
    %cst_75 = arith.constant 1.000000e+00 : f32
    %279 = vector.broadcast %cst_75 : f32 to vector<8x32xf32>
    %280 = arith.addf %279, %278 : vector<8x32xf32>
    %281 = arith.divf %279, %280 : vector<8x32xf32>
    %282 = arith.mulf %275, %269 : vector<8x32xf32>
    %283 = arith.addf %263, %282 : vector<8x32xf32>
    %284 = math.tanh %283 : vector<8x32xf32>
    %cst_76 = arith.constant 1.000000e+00 : f32
    %285 = vector.broadcast %cst_76 : f32 to vector<8x32xf32>
    %286 = arith.subf %285, %281 : vector<8x32xf32>
    %287 = arith.mulf %286, %284 : vector<8x32xf32>
    %288 = arith.mulf %281, %257 : vector<8x32xf32>
    %289 = arith.addf %287, %288 : vector<8x32xf32>
    %290 = vector.shape_cast %65 : vector<8x32xf32> to vector<1x8x32xf32>
    %291 = vector.shape_cast %97 : vector<8x32xf32> to vector<1x8x32xf32>
    %292 = vector.shape_cast %129 : vector<8x32xf32> to vector<1x8x32xf32>
    %293 = vector.shape_cast %161 : vector<8x32xf32> to vector<1x8x32xf32>
    %294 = vector.shape_cast %193 : vector<8x32xf32> to vector<1x8x32xf32>
    %295 = vector.shape_cast %225 : vector<8x32xf32> to vector<1x8x32xf32>
    %296 = vector.shape_cast %257 : vector<8x32xf32> to vector<1x8x32xf32>
    %297 = vector.shape_cast %289 : vector<8x32xf32> to vector<1x8x32xf32>
    %298 = tpu.concatenate %290, %291, %292, %293, %294, %295, %296, %297 in 0 : vector<1x8x32xf32>, vector<1x8x32xf32>, vector<1x8x32xf32>, vector<1x8x32xf32>, vector<1x8x32xf32>, vector<1x8x32xf32>, vector<1x8x32xf32>, vector<1x8x32xf32> -> vector<8x8x32xf32>
    %299 = vector.shape_cast %298 : vector<8x8x32xf32> to vector<64x32xf32>
    %c0_77 = arith.constant 0 : index
    %c0_78 = arith.constant 0 : index
    %300 = vector.load %arg13[%c0_77, %c0_78] : memref<32x64xf32, #tpu.memory_space<vmem>>, vector<32x64xf32>
    %cst_79 = arith.constant dense<0.000000e+00> : vector<64x64xf32>
    %301 = tpu.matmul %299, %300, %cst_79 {dimension_numbers = #tpu.dot_dimension_numbers<[1], [0], [0], [1], [0, 0, 1, 1], [], []>} : vector<64x32xf32>, vector<32x64xf32>, vector<64x64xf32> -> vector<64x64xf32>
    %c0_80 = arith.constant 0 : index
    %c0_81 = arith.constant 0 : index
    %302 = vector.load %arg19[%c0_80, %c0_81] : memref<1x64xf32, #tpu.memory_space<vmem>>, vector<1x64xf32>
    %303 = vector.broadcast %302 : vector<1x64xf32> to vector<64x64xf32>
    %304 = arith.addf %301, %303 : vector<64x64xf32>
    %305 = vector.shape_cast %304 : vector<64x64xf32> to vector<8x8x64xf32>
    %c0_82 = arith.constant 0 : index
    %c0_83 = arith.constant 0 : index
    %306 = vector.load %arg14[%c0_82, %c0_83] : memref<32x64xf32, #tpu.memory_space<vmem>>, vector<32x64xf32>
    %cst_84 = arith.constant dense<0.000000e+00> : vector<64x64xf32>
    %307 = tpu.matmul %299, %306, %cst_84 {dimension_numbers = #tpu.dot_dimension_numbers<[1], [0], [0], [1], [0, 0, 1, 1], [], []>} : vector<64x32xf32>, vector<32x64xf32>, vector<64x64xf32> -> vector<64x64xf32>
    %c0_85 = arith.constant 0 : index
    %c0_86 = arith.constant 0 : index
    %308 = vector.load %arg20[%c0_85, %c0_86] : memref<1x64xf32, #tpu.memory_space<vmem>>, vector<1x64xf32>
    %309 = vector.broadcast %308 : vector<1x64xf32> to vector<64x64xf32>
    %310 = arith.addf %307, %309 : vector<64x64xf32>
    %311 = vector.shape_cast %310 : vector<64x64xf32> to vector<8x8x64xf32>
    %c0_87 = arith.constant 0 : index
    %c0_88 = arith.constant 0 : index
    %312 = vector.load %arg15[%c0_87, %c0_88] : memref<32x64xf32, #tpu.memory_space<vmem>>, vector<32x64xf32>
    %cst_89 = arith.constant dense<0.000000e+00> : vector<64x64xf32>
    %313 = tpu.matmul %299, %312, %cst_89 {dimension_numbers = #tpu.dot_dimension_numbers<[1], [0], [0], [1], [0, 0, 1, 1], [], []>} : vector<64x32xf32>, vector<32x64xf32>, vector<64x64xf32> -> vector<64x64xf32>
    %c0_90 = arith.constant 0 : index
    %c0_91 = arith.constant 0 : index
    %314 = vector.load %arg21[%c0_90, %c0_91] : memref<1x64xf32, #tpu.memory_space<vmem>>, vector<1x64xf32>
    %315 = vector.broadcast %314 : vector<1x64xf32> to vector<64x64xf32>
    %316 = arith.addf %313, %315 : vector<64x64xf32>
    %317 = vector.shape_cast %316 : vector<64x64xf32> to vector<8x8x64xf32>
    %c0_92 = arith.constant 0 : index
    %c0_93 = arith.constant 0 : index
    %318 = vector.load %arg16[%c0_92, %c0_93] : memref<64x64xf32, #tpu.memory_space<vmem>>, vector<64x64xf32>
    %c0_94 = arith.constant 0 : index
    %c0_95 = arith.constant 0 : index
    %319 = vector.load %arg17[%c0_94, %c0_95] : memref<64x64xf32, #tpu.memory_space<vmem>>, vector<64x64xf32>
    %c0_96 = arith.constant 0 : index
    %c0_97 = arith.constant 0 : index
    %320 = vector.load %arg18[%c0_96, %c0_97] : memref<64x64xf32, #tpu.memory_space<vmem>>, vector<64x64xf32>
    %c0_98 = arith.constant 0 : index
    %c0_99 = arith.constant 0 : index
    %321 = vector.load %arg22[%c0_98, %c0_99] : memref<1x64xf32, #tpu.memory_space<vmem>>, vector<1x64xf32>
    %322 = vector.shape_cast %321 : vector<1x64xf32> to vector<1x64xf32>
    %323 = vector.broadcast %322 : vector<1x64xf32> to vector<8x64xf32>
    %c0_100 = arith.constant 0 : index
    %c0_101 = arith.constant 0 : index
    %324 = vector.load %arg23[%c0_100, %c0_101] : memref<1x64xf32, #tpu.memory_space<vmem>>, vector<1x64xf32>
    %325 = vector.shape_cast %324 : vector<1x64xf32> to vector<1x64xf32>
    %326 = vector.broadcast %325 : vector<1x64xf32> to vector<8x64xf32>
    %c0_102 = arith.constant 0 : index
    %c0_103 = arith.constant 0 : index
    %327 = vector.load %arg24[%c0_102, %c0_103] : memref<1x64xf32, #tpu.memory_space<vmem>>, vector<1x64xf32>
    %328 = vector.shape_cast %327 : vector<1x64xf32> to vector<1x64xf32>
    %329 = vector.broadcast %328 : vector<1x64xf32> to vector<8x64xf32>
    %cst_104 = arith.constant 0.000000e+00 : f32
    %330 = vector.broadcast %cst_104 : f32 to vector<8x64xf32>
    %331 = vector.extract_strided_slice %305 {offsets = [0, 0, 0], sizes = [1, 8, 64], strides = [1, 1, 1]} : vector<8x8x64xf32> to vector<1x8x64xf32>
    %332 = vector.shape_cast %331 : vector<1x8x64xf32> to vector<8x64xf32>
    %333 = vector.extract_strided_slice %311 {offsets = [0, 0, 0], sizes = [1, 8, 64], strides = [1, 1, 1]} : vector<8x8x64xf32> to vector<1x8x64xf32>
    %334 = vector.shape_cast %333 : vector<1x8x64xf32> to vector<8x64xf32>
    %335 = vector.extract_strided_slice %317 {offsets = [0, 0, 0], sizes = [1, 8, 64], strides = [1, 1, 1]} : vector<8x8x64xf32> to vector<1x8x64xf32>
    %336 = vector.shape_cast %335 : vector<1x8x64xf32> to vector<8x64xf32>
    %cst_105 = arith.constant dense<0.000000e+00> : vector<8x64xf32>
    %337 = tpu.matmul %330, %318, %cst_105 {dimension_numbers = #tpu.dot_dimension_numbers<[1], [0], [0], [1], [0, 0, 1, 1], [], []>} : vector<8x64xf32>, vector<64x64xf32>, vector<8x64xf32> -> vector<8x64xf32>
    %338 = arith.addf %337, %323 : vector<8x64xf32>
    %cst_106 = arith.constant dense<0.000000e+00> : vector<8x64xf32>
    %339 = tpu.matmul %330, %319, %cst_106 {dimension_numbers = #tpu.dot_dimension_numbers<[1], [0], [0], [1], [0, 0, 1, 1], [], []>} : vector<8x64xf32>, vector<64x64xf32>, vector<8x64xf32> -> vector<8x64xf32>
    %340 = arith.addf %339, %326 : vector<8x64xf32>
    %cst_107 = arith.constant dense<0.000000e+00> : vector<8x64xf32>
    %341 = tpu.matmul %330, %320, %cst_107 {dimension_numbers = #tpu.dot_dimension_numbers<[1], [0], [0], [1], [0, 0, 1, 1], [], []>} : vector<8x64xf32>, vector<64x64xf32>, vector<8x64xf32> -> vector<8x64xf32>
    %342 = arith.addf %341, %329 : vector<8x64xf32>
    %343 = arith.addf %332, %338 : vector<8x64xf32>
    %344 = arith.negf %343 : vector<8x64xf32>
    %345 = math.exp %344 : vector<8x64xf32>
    %cst_108 = arith.constant 1.000000e+00 : f32
    %346 = vector.broadcast %cst_108 : f32 to vector<8x64xf32>
    %347 = arith.addf %346, %345 : vector<8x64xf32>
    %348 = arith.divf %346, %347 : vector<8x64xf32>
    %349 = arith.addf %334, %340 : vector<8x64xf32>
    %350 = arith.negf %349 : vector<8x64xf32>
    %351 = math.exp %350 : vector<8x64xf32>
    %cst_109 = arith.constant 1.000000e+00 : f32
    %352 = vector.broadcast %cst_109 : f32 to vector<8x64xf32>
    %353 = arith.addf %352, %351 : vector<8x64xf32>
    %354 = arith.divf %352, %353 : vector<8x64xf32>
    %355 = arith.mulf %348, %342 : vector<8x64xf32>
    %356 = arith.addf %336, %355 : vector<8x64xf32>
    %357 = math.tanh %356 : vector<8x64xf32>
    %cst_110 = arith.constant 1.000000e+00 : f32
    %358 = vector.broadcast %cst_110 : f32 to vector<8x64xf32>
    %359 = arith.subf %358, %354 : vector<8x64xf32>
    %360 = arith.mulf %359, %357 : vector<8x64xf32>
    %361 = arith.mulf %354, %330 : vector<8x64xf32>
    %362 = arith.addf %360, %361 : vector<8x64xf32>
    %363 = vector.extract_strided_slice %305 {offsets = [1, 0, 0], sizes = [1, 8, 64], strides = [1, 1, 1]} : vector<8x8x64xf32> to vector<1x8x64xf32>
    %364 = vector.shape_cast %363 : vector<1x8x64xf32> to vector<8x64xf32>
    %365 = vector.extract_strided_slice %311 {offsets = [1, 0, 0], sizes = [1, 8, 64], strides = [1, 1, 1]} : vector<8x8x64xf32> to vector<1x8x64xf32>
    %366 = vector.shape_cast %365 : vector<1x8x64xf32> to vector<8x64xf32>
    %367 = vector.extract_strided_slice %317 {offsets = [1, 0, 0], sizes = [1, 8, 64], strides = [1, 1, 1]} : vector<8x8x64xf32> to vector<1x8x64xf32>
    %368 = vector.shape_cast %367 : vector<1x8x64xf32> to vector<8x64xf32>
    %cst_111 = arith.constant dense<0.000000e+00> : vector<8x64xf32>
    %369 = tpu.matmul %362, %318, %cst_111 {dimension_numbers = #tpu.dot_dimension_numbers<[1], [0], [0], [1], [0, 0, 1, 1], [], []>} : vector<8x64xf32>, vector<64x64xf32>, vector<8x64xf32> -> vector<8x64xf32>
    %370 = arith.addf %369, %323 : vector<8x64xf32>
    %cst_112 = arith.constant dense<0.000000e+00> : vector<8x64xf32>
    %371 = tpu.matmul %362, %319, %cst_112 {dimension_numbers = #tpu.dot_dimension_numbers<[1], [0], [0], [1], [0, 0, 1, 1], [], []>} : vector<8x64xf32>, vector<64x64xf32>, vector<8x64xf32> -> vector<8x64xf32>
    %372 = arith.addf %371, %326 : vector<8x64xf32>
    %cst_113 = arith.constant dense<0.000000e+00> : vector<8x64xf32>
    %373 = tpu.matmul %362, %320, %cst_113 {dimension_numbers = #tpu.dot_dimension_numbers<[1], [0], [0], [1], [0, 0, 1, 1], [], []>} : vector<8x64xf32>, vector<64x64xf32>, vector<8x64xf32> -> vector<8x64xf32>
    %374 = arith.addf %373, %329 : vector<8x64xf32>
    %375 = arith.addf %364, %370 : vector<8x64xf32>
    %376 = arith.negf %375 : vector<8x64xf32>
    %377 = math.exp %376 : vector<8x64xf32>
    %cst_114 = arith.constant 1.000000e+00 : f32
    %378 = vector.broadcast %cst_114 : f32 to vector<8x64xf32>
    %379 = arith.addf %378, %377 : vector<8x64xf32>
    %380 = arith.divf %378, %379 : vector<8x64xf32>
    %381 = arith.addf %366, %372 : vector<8x64xf32>
    %382 = arith.negf %381 : vector<8x64xf32>
    %383 = math.exp %382 : vector<8x64xf32>
    %cst_115 = arith.constant 1.000000e+00 : f32
    %384 = vector.broadcast %cst_115 : f32 to vector<8x64xf32>
    %385 = arith.addf %384, %383 : vector<8x64xf32>
    %386 = arith.divf %384, %385 : vector<8x64xf32>
    %387 = arith.mulf %380, %374 : vector<8x64xf32>
    %388 = arith.addf %368, %387 : vector<8x64xf32>
    %389 = math.tanh %388 : vector<8x64xf32>
    %cst_116 = arith.constant 1.000000e+00 : f32
    %390 = vector.broadcast %cst_116 : f32 to vector<8x64xf32>
    %391 = arith.subf %390, %386 : vector<8x64xf32>
    %392 = arith.mulf %391, %389 : vector<8x64xf32>
    %393 = arith.mulf %386, %362 : vector<8x64xf32>
    %394 = arith.addf %392, %393 : vector<8x64xf32>
    %395 = vector.extract_strided_slice %305 {offsets = [2, 0, 0], sizes = [1, 8, 64], strides = [1, 1, 1]} : vector<8x8x64xf32> to vector<1x8x64xf32>
    %396 = vector.shape_cast %395 : vector<1x8x64xf32> to vector<8x64xf32>
    %397 = vector.extract_strided_slice %311 {offsets = [2, 0, 0], sizes = [1, 8, 64], strides = [1, 1, 1]} : vector<8x8x64xf32> to vector<1x8x64xf32>
    %398 = vector.shape_cast %397 : vector<1x8x64xf32> to vector<8x64xf32>
    %399 = vector.extract_strided_slice %317 {offsets = [2, 0, 0], sizes = [1, 8, 64], strides = [1, 1, 1]} : vector<8x8x64xf32> to vector<1x8x64xf32>
    %400 = vector.shape_cast %399 : vector<1x8x64xf32> to vector<8x64xf32>
    %cst_117 = arith.constant dense<0.000000e+00> : vector<8x64xf32>
    %401 = tpu.matmul %394, %318, %cst_117 {dimension_numbers = #tpu.dot_dimension_numbers<[1], [0], [0], [1], [0, 0, 1, 1], [], []>} : vector<8x64xf32>, vector<64x64xf32>, vector<8x64xf32> -> vector<8x64xf32>
    %402 = arith.addf %401, %323 : vector<8x64xf32>
    %cst_118 = arith.constant dense<0.000000e+00> : vector<8x64xf32>
    %403 = tpu.matmul %394, %319, %cst_118 {dimension_numbers = #tpu.dot_dimension_numbers<[1], [0], [0], [1], [0, 0, 1, 1], [], []>} : vector<8x64xf32>, vector<64x64xf32>, vector<8x64xf32> -> vector<8x64xf32>
    %404 = arith.addf %403, %326 : vector<8x64xf32>
    %cst_119 = arith.constant dense<0.000000e+00> : vector<8x64xf32>
    %405 = tpu.matmul %394, %320, %cst_119 {dimension_numbers = #tpu.dot_dimension_numbers<[1], [0], [0], [1], [0, 0, 1, 1], [], []>} : vector<8x64xf32>, vector<64x64xf32>, vector<8x64xf32> -> vector<8x64xf32>
    %406 = arith.addf %405, %329 : vector<8x64xf32>
    %407 = arith.addf %396, %402 : vector<8x64xf32>
    %408 = arith.negf %407 : vector<8x64xf32>
    %409 = math.exp %408 : vector<8x64xf32>
    %cst_120 = arith.constant 1.000000e+00 : f32
    %410 = vector.broadcast %cst_120 : f32 to vector<8x64xf32>
    %411 = arith.addf %410, %409 : vector<8x64xf32>
    %412 = arith.divf %410, %411 : vector<8x64xf32>
    %413 = arith.addf %398, %404 : vector<8x64xf32>
    %414 = arith.negf %413 : vector<8x64xf32>
    %415 = math.exp %414 : vector<8x64xf32>
    %cst_121 = arith.constant 1.000000e+00 : f32
    %416 = vector.broadcast %cst_121 : f32 to vector<8x64xf32>
    %417 = arith.addf %416, %415 : vector<8x64xf32>
    %418 = arith.divf %416, %417 : vector<8x64xf32>
    %419 = arith.mulf %412, %406 : vector<8x64xf32>
    %420 = arith.addf %400, %419 : vector<8x64xf32>
    %421 = math.tanh %420 : vector<8x64xf32>
    %cst_122 = arith.constant 1.000000e+00 : f32
    %422 = vector.broadcast %cst_122 : f32 to vector<8x64xf32>
    %423 = arith.subf %422, %418 : vector<8x64xf32>
    %424 = arith.mulf %423, %421 : vector<8x64xf32>
    %425 = arith.mulf %418, %394 : vector<8x64xf32>
    %426 = arith.addf %424, %425 : vector<8x64xf32>
    %427 = vector.extract_strided_slice %305 {offsets = [3, 0, 0], sizes = [1, 8, 64], strides = [1, 1, 1]} : vector<8x8x64xf32> to vector<1x8x64xf32>
    %428 = vector.shape_cast %427 : vector<1x8x64xf32> to vector<8x64xf32>
    %429 = vector.extract_strided_slice %311 {offsets = [3, 0, 0], sizes = [1, 8, 64], strides = [1, 1, 1]} : vector<8x8x64xf32> to vector<1x8x64xf32>
    %430 = vector.shape_cast %429 : vector<1x8x64xf32> to vector<8x64xf32>
    %431 = vector.extract_strided_slice %317 {offsets = [3, 0, 0], sizes = [1, 8, 64], strides = [1, 1, 1]} : vector<8x8x64xf32> to vector<1x8x64xf32>
    %432 = vector.shape_cast %431 : vector<1x8x64xf32> to vector<8x64xf32>
    %cst_123 = arith.constant dense<0.000000e+00> : vector<8x64xf32>
    %433 = tpu.matmul %426, %318, %cst_123 {dimension_numbers = #tpu.dot_dimension_numbers<[1], [0], [0], [1], [0, 0, 1, 1], [], []>} : vector<8x64xf32>, vector<64x64xf32>, vector<8x64xf32> -> vector<8x64xf32>
    %434 = arith.addf %433, %323 : vector<8x64xf32>
    %cst_124 = arith.constant dense<0.000000e+00> : vector<8x64xf32>
    %435 = tpu.matmul %426, %319, %cst_124 {dimension_numbers = #tpu.dot_dimension_numbers<[1], [0], [0], [1], [0, 0, 1, 1], [], []>} : vector<8x64xf32>, vector<64x64xf32>, vector<8x64xf32> -> vector<8x64xf32>
    %436 = arith.addf %435, %326 : vector<8x64xf32>
    %cst_125 = arith.constant dense<0.000000e+00> : vector<8x64xf32>
    %437 = tpu.matmul %426, %320, %cst_125 {dimension_numbers = #tpu.dot_dimension_numbers<[1], [0], [0], [1], [0, 0, 1, 1], [], []>} : vector<8x64xf32>, vector<64x64xf32>, vector<8x64xf32> -> vector<8x64xf32>
    %438 = arith.addf %437, %329 : vector<8x64xf32>
    %439 = arith.addf %428, %434 : vector<8x64xf32>
    %440 = arith.negf %439 : vector<8x64xf32>
    %441 = math.exp %440 : vector<8x64xf32>
    %cst_126 = arith.constant 1.000000e+00 : f32
    %442 = vector.broadcast %cst_126 : f32 to vector<8x64xf32>
    %443 = arith.addf %442, %441 : vector<8x64xf32>
    %444 = arith.divf %442, %443 : vector<8x64xf32>
    %445 = arith.addf %430, %436 : vector<8x64xf32>
    %446 = arith.negf %445 : vector<8x64xf32>
    %447 = math.exp %446 : vector<8x64xf32>
    %cst_127 = arith.constant 1.000000e+00 : f32
    %448 = vector.broadcast %cst_127 : f32 to vector<8x64xf32>
    %449 = arith.addf %448, %447 : vector<8x64xf32>
    %450 = arith.divf %448, %449 : vector<8x64xf32>
    %451 = arith.mulf %444, %438 : vector<8x64xf32>
    %452 = arith.addf %432, %451 : vector<8x64xf32>
    %453 = math.tanh %452 : vector<8x64xf32>
    %cst_128 = arith.constant 1.000000e+00 : f32
    %454 = vector.broadcast %cst_128 : f32 to vector<8x64xf32>
    %455 = arith.subf %454, %450 : vector<8x64xf32>
    %456 = arith.mulf %455, %453 : vector<8x64xf32>
    %457 = arith.mulf %450, %426 : vector<8x64xf32>
    %458 = arith.addf %456, %457 : vector<8x64xf32>
    %459 = vector.extract_strided_slice %305 {offsets = [4, 0, 0], sizes = [1, 8, 64], strides = [1, 1, 1]} : vector<8x8x64xf32> to vector<1x8x64xf32>
    %460 = vector.shape_cast %459 : vector<1x8x64xf32> to vector<8x64xf32>
    %461 = vector.extract_strided_slice %311 {offsets = [4, 0, 0], sizes = [1, 8, 64], strides = [1, 1, 1]} : vector<8x8x64xf32> to vector<1x8x64xf32>
    %462 = vector.shape_cast %461 : vector<1x8x64xf32> to vector<8x64xf32>
    %463 = vector.extract_strided_slice %317 {offsets = [4, 0, 0], sizes = [1, 8, 64], strides = [1, 1, 1]} : vector<8x8x64xf32> to vector<1x8x64xf32>
    %464 = vector.shape_cast %463 : vector<1x8x64xf32> to vector<8x64xf32>
    %cst_129 = arith.constant dense<0.000000e+00> : vector<8x64xf32>
    %465 = tpu.matmul %458, %318, %cst_129 {dimension_numbers = #tpu.dot_dimension_numbers<[1], [0], [0], [1], [0, 0, 1, 1], [], []>} : vector<8x64xf32>, vector<64x64xf32>, vector<8x64xf32> -> vector<8x64xf32>
    %466 = arith.addf %465, %323 : vector<8x64xf32>
    %cst_130 = arith.constant dense<0.000000e+00> : vector<8x64xf32>
    %467 = tpu.matmul %458, %319, %cst_130 {dimension_numbers = #tpu.dot_dimension_numbers<[1], [0], [0], [1], [0, 0, 1, 1], [], []>} : vector<8x64xf32>, vector<64x64xf32>, vector<8x64xf32> -> vector<8x64xf32>
    %468 = arith.addf %467, %326 : vector<8x64xf32>
    %cst_131 = arith.constant dense<0.000000e+00> : vector<8x64xf32>
    %469 = tpu.matmul %458, %320, %cst_131 {dimension_numbers = #tpu.dot_dimension_numbers<[1], [0], [0], [1], [0, 0, 1, 1], [], []>} : vector<8x64xf32>, vector<64x64xf32>, vector<8x64xf32> -> vector<8x64xf32>
    %470 = arith.addf %469, %329 : vector<8x64xf32>
    %471 = arith.addf %460, %466 : vector<8x64xf32>
    %472 = arith.negf %471 : vector<8x64xf32>
    %473 = math.exp %472 : vector<8x64xf32>
    %cst_132 = arith.constant 1.000000e+00 : f32
    %474 = vector.broadcast %cst_132 : f32 to vector<8x64xf32>
    %475 = arith.addf %474, %473 : vector<8x64xf32>
    %476 = arith.divf %474, %475 : vector<8x64xf32>
    %477 = arith.addf %462, %468 : vector<8x64xf32>
    %478 = arith.negf %477 : vector<8x64xf32>
    %479 = math.exp %478 : vector<8x64xf32>
    %cst_133 = arith.constant 1.000000e+00 : f32
    %480 = vector.broadcast %cst_133 : f32 to vector<8x64xf32>
    %481 = arith.addf %480, %479 : vector<8x64xf32>
    %482 = arith.divf %480, %481 : vector<8x64xf32>
    %483 = arith.mulf %476, %470 : vector<8x64xf32>
    %484 = arith.addf %464, %483 : vector<8x64xf32>
    %485 = math.tanh %484 : vector<8x64xf32>
    %cst_134 = arith.constant 1.000000e+00 : f32
    %486 = vector.broadcast %cst_134 : f32 to vector<8x64xf32>
    %487 = arith.subf %486, %482 : vector<8x64xf32>
    %488 = arith.mulf %487, %485 : vector<8x64xf32>
    %489 = arith.mulf %482, %458 : vector<8x64xf32>
    %490 = arith.addf %488, %489 : vector<8x64xf32>
    %491 = vector.extract_strided_slice %305 {offsets = [5, 0, 0], sizes = [1, 8, 64], strides = [1, 1, 1]} : vector<8x8x64xf32> to vector<1x8x64xf32>
    %492 = vector.shape_cast %491 : vector<1x8x64xf32> to vector<8x64xf32>
    %493 = vector.extract_strided_slice %311 {offsets = [5, 0, 0], sizes = [1, 8, 64], strides = [1, 1, 1]} : vector<8x8x64xf32> to vector<1x8x64xf32>
    %494 = vector.shape_cast %493 : vector<1x8x64xf32> to vector<8x64xf32>
    %495 = vector.extract_strided_slice %317 {offsets = [5, 0, 0], sizes = [1, 8, 64], strides = [1, 1, 1]} : vector<8x8x64xf32> to vector<1x8x64xf32>
    %496 = vector.shape_cast %495 : vector<1x8x64xf32> to vector<8x64xf32>
    %cst_135 = arith.constant dense<0.000000e+00> : vector<8x64xf32>
    %497 = tpu.matmul %490, %318, %cst_135 {dimension_numbers = #tpu.dot_dimension_numbers<[1], [0], [0], [1], [0, 0, 1, 1], [], []>} : vector<8x64xf32>, vector<64x64xf32>, vector<8x64xf32> -> vector<8x64xf32>
    %498 = arith.addf %497, %323 : vector<8x64xf32>
    %cst_136 = arith.constant dense<0.000000e+00> : vector<8x64xf32>
    %499 = tpu.matmul %490, %319, %cst_136 {dimension_numbers = #tpu.dot_dimension_numbers<[1], [0], [0], [1], [0, 0, 1, 1], [], []>} : vector<8x64xf32>, vector<64x64xf32>, vector<8x64xf32> -> vector<8x64xf32>
    %500 = arith.addf %499, %326 : vector<8x64xf32>
    %cst_137 = arith.constant dense<0.000000e+00> : vector<8x64xf32>
    %501 = tpu.matmul %490, %320, %cst_137 {dimension_numbers = #tpu.dot_dimension_numbers<[1], [0], [0], [1], [0, 0, 1, 1], [], []>} : vector<8x64xf32>, vector<64x64xf32>, vector<8x64xf32> -> vector<8x64xf32>
    %502 = arith.addf %501, %329 : vector<8x64xf32>
    %503 = arith.addf %492, %498 : vector<8x64xf32>
    %504 = arith.negf %503 : vector<8x64xf32>
    %505 = math.exp %504 : vector<8x64xf32>
    %cst_138 = arith.constant 1.000000e+00 : f32
    %506 = vector.broadcast %cst_138 : f32 to vector<8x64xf32>
    %507 = arith.addf %506, %505 : vector<8x64xf32>
    %508 = arith.divf %506, %507 : vector<8x64xf32>
    %509 = arith.addf %494, %500 : vector<8x64xf32>
    %510 = arith.negf %509 : vector<8x64xf32>
    %511 = math.exp %510 : vector<8x64xf32>
    %cst_139 = arith.constant 1.000000e+00 : f32
    %512 = vector.broadcast %cst_139 : f32 to vector<8x64xf32>
    %513 = arith.addf %512, %511 : vector<8x64xf32>
    %514 = arith.divf %512, %513 : vector<8x64xf32>
    %515 = arith.mulf %508, %502 : vector<8x64xf32>
    %516 = arith.addf %496, %515 : vector<8x64xf32>
    %517 = math.tanh %516 : vector<8x64xf32>
    %cst_140 = arith.constant 1.000000e+00 : f32
    %518 = vector.broadcast %cst_140 : f32 to vector<8x64xf32>
    %519 = arith.subf %518, %514 : vector<8x64xf32>
    %520 = arith.mulf %519, %517 : vector<8x64xf32>
    %521 = arith.mulf %514, %490 : vector<8x64xf32>
    %522 = arith.addf %520, %521 : vector<8x64xf32>
    %523 = vector.extract_strided_slice %305 {offsets = [6, 0, 0], sizes = [1, 8, 64], strides = [1, 1, 1]} : vector<8x8x64xf32> to vector<1x8x64xf32>
    %524 = vector.shape_cast %523 : vector<1x8x64xf32> to vector<8x64xf32>
    %525 = vector.extract_strided_slice %311 {offsets = [6, 0, 0], sizes = [1, 8, 64], strides = [1, 1, 1]} : vector<8x8x64xf32> to vector<1x8x64xf32>
    %526 = vector.shape_cast %525 : vector<1x8x64xf32> to vector<8x64xf32>
    %527 = vector.extract_strided_slice %317 {offsets = [6, 0, 0], sizes = [1, 8, 64], strides = [1, 1, 1]} : vector<8x8x64xf32> to vector<1x8x64xf32>
    %528 = vector.shape_cast %527 : vector<1x8x64xf32> to vector<8x64xf32>
    %cst_141 = arith.constant dense<0.000000e+00> : vector<8x64xf32>
    %529 = tpu.matmul %522, %318, %cst_141 {dimension_numbers = #tpu.dot_dimension_numbers<[1], [0], [0], [1], [0, 0, 1, 1], [], []>} : vector<8x64xf32>, vector<64x64xf32>, vector<8x64xf32> -> vector<8x64xf32>
    %530 = arith.addf %529, %323 : vector<8x64xf32>
    %cst_142 = arith.constant dense<0.000000e+00> : vector<8x64xf32>
    %531 = tpu.matmul %522, %319, %cst_142 {dimension_numbers = #tpu.dot_dimension_numbers<[1], [0], [0], [1], [0, 0, 1, 1], [], []>} : vector<8x64xf32>, vector<64x64xf32>, vector<8x64xf32> -> vector<8x64xf32>
    %532 = arith.addf %531, %326 : vector<8x64xf32>
    %cst_143 = arith.constant dense<0.000000e+00> : vector<8x64xf32>
    %533 = tpu.matmul %522, %320, %cst_143 {dimension_numbers = #tpu.dot_dimension_numbers<[1], [0], [0], [1], [0, 0, 1, 1], [], []>} : vector<8x64xf32>, vector<64x64xf32>, vector<8x64xf32> -> vector<8x64xf32>
    %534 = arith.addf %533, %329 : vector<8x64xf32>
    %535 = arith.addf %524, %530 : vector<8x64xf32>
    %536 = arith.negf %535 : vector<8x64xf32>
    %537 = math.exp %536 : vector<8x64xf32>
    %cst_144 = arith.constant 1.000000e+00 : f32
    %538 = vector.broadcast %cst_144 : f32 to vector<8x64xf32>
    %539 = arith.addf %538, %537 : vector<8x64xf32>
    %540 = arith.divf %538, %539 : vector<8x64xf32>
    %541 = arith.addf %526, %532 : vector<8x64xf32>
    %542 = arith.negf %541 : vector<8x64xf32>
    %543 = math.exp %542 : vector<8x64xf32>
    %cst_145 = arith.constant 1.000000e+00 : f32
    %544 = vector.broadcast %cst_145 : f32 to vector<8x64xf32>
    %545 = arith.addf %544, %543 : vector<8x64xf32>
    %546 = arith.divf %544, %545 : vector<8x64xf32>
    %547 = arith.mulf %540, %534 : vector<8x64xf32>
    %548 = arith.addf %528, %547 : vector<8x64xf32>
    %549 = math.tanh %548 : vector<8x64xf32>
    %cst_146 = arith.constant 1.000000e+00 : f32
    %550 = vector.broadcast %cst_146 : f32 to vector<8x64xf32>
    %551 = arith.subf %550, %546 : vector<8x64xf32>
    %552 = arith.mulf %551, %549 : vector<8x64xf32>
    %553 = arith.mulf %546, %522 : vector<8x64xf32>
    %554 = arith.addf %552, %553 : vector<8x64xf32>
    %555 = vector.extract_strided_slice %305 {offsets = [7, 0, 0], sizes = [1, 8, 64], strides = [1, 1, 1]} : vector<8x8x64xf32> to vector<1x8x64xf32>
    %556 = vector.shape_cast %555 : vector<1x8x64xf32> to vector<8x64xf32>
    %557 = vector.extract_strided_slice %311 {offsets = [7, 0, 0], sizes = [1, 8, 64], strides = [1, 1, 1]} : vector<8x8x64xf32> to vector<1x8x64xf32>
    %558 = vector.shape_cast %557 : vector<1x8x64xf32> to vector<8x64xf32>
    %559 = vector.extract_strided_slice %317 {offsets = [7, 0, 0], sizes = [1, 8, 64], strides = [1, 1, 1]} : vector<8x8x64xf32> to vector<1x8x64xf32>
    %560 = vector.shape_cast %559 : vector<1x8x64xf32> to vector<8x64xf32>
    %cst_147 = arith.constant dense<0.000000e+00> : vector<8x64xf32>
    %561 = tpu.matmul %554, %318, %cst_147 {dimension_numbers = #tpu.dot_dimension_numbers<[1], [0], [0], [1], [0, 0, 1, 1], [], []>} : vector<8x64xf32>, vector<64x64xf32>, vector<8x64xf32> -> vector<8x64xf32>
    %562 = arith.addf %561, %323 : vector<8x64xf32>
    %cst_148 = arith.constant dense<0.000000e+00> : vector<8x64xf32>
    %563 = tpu.matmul %554, %319, %cst_148 {dimension_numbers = #tpu.dot_dimension_numbers<[1], [0], [0], [1], [0, 0, 1, 1], [], []>} : vector<8x64xf32>, vector<64x64xf32>, vector<8x64xf32> -> vector<8x64xf32>
    %564 = arith.addf %563, %326 : vector<8x64xf32>
    %cst_149 = arith.constant dense<0.000000e+00> : vector<8x64xf32>
    %565 = tpu.matmul %554, %320, %cst_149 {dimension_numbers = #tpu.dot_dimension_numbers<[1], [0], [0], [1], [0, 0, 1, 1], [], []>} : vector<8x64xf32>, vector<64x64xf32>, vector<8x64xf32> -> vector<8x64xf32>
    %566 = arith.addf %565, %329 : vector<8x64xf32>
    %567 = arith.addf %556, %562 : vector<8x64xf32>
    %568 = arith.negf %567 : vector<8x64xf32>
    %569 = math.exp %568 : vector<8x64xf32>
    %cst_150 = arith.constant 1.000000e+00 : f32
    %570 = vector.broadcast %cst_150 : f32 to vector<8x64xf32>
    %571 = arith.addf %570, %569 : vector<8x64xf32>
    %572 = arith.divf %570, %571 : vector<8x64xf32>
    %573 = arith.addf %558, %564 : vector<8x64xf32>
    %574 = arith.negf %573 : vector<8x64xf32>
    %575 = math.exp %574 : vector<8x64xf32>
    %cst_151 = arith.constant 1.000000e+00 : f32
    %576 = vector.broadcast %cst_151 : f32 to vector<8x64xf32>
    %577 = arith.addf %576, %575 : vector<8x64xf32>
    %578 = arith.divf %576, %577 : vector<8x64xf32>
    %579 = arith.mulf %572, %566 : vector<8x64xf32>
    %580 = arith.addf %560, %579 : vector<8x64xf32>
    %581 = math.tanh %580 : vector<8x64xf32>
    %cst_152 = arith.constant 1.000000e+00 : f32
    %582 = vector.broadcast %cst_152 : f32 to vector<8x64xf32>
    %583 = arith.subf %582, %578 : vector<8x64xf32>
    %584 = arith.mulf %583, %581 : vector<8x64xf32>
    %585 = arith.mulf %578, %554 : vector<8x64xf32>
    %586 = arith.addf %584, %585 : vector<8x64xf32>
    %587 = vector.shape_cast %362 : vector<8x64xf32> to vector<1x8x64xf32>
    %588 = vector.shape_cast %394 : vector<8x64xf32> to vector<1x8x64xf32>
    %589 = vector.shape_cast %426 : vector<8x64xf32> to vector<1x8x64xf32>
    %590 = vector.shape_cast %458 : vector<8x64xf32> to vector<1x8x64xf32>
    %591 = vector.shape_cast %490 : vector<8x64xf32> to vector<1x8x64xf32>
    %592 = vector.shape_cast %522 : vector<8x64xf32> to vector<1x8x64xf32>
    %593 = vector.shape_cast %554 : vector<8x64xf32> to vector<1x8x64xf32>
    %594 = vector.shape_cast %586 : vector<8x64xf32> to vector<1x8x64xf32>
    %595 = tpu.concatenate %587, %588, %589, %590, %591, %592, %593, %594 in 0 : vector<1x8x64xf32>, vector<1x8x64xf32>, vector<1x8x64xf32>, vector<1x8x64xf32>, vector<1x8x64xf32>, vector<1x8x64xf32>, vector<1x8x64xf32>, vector<1x8x64xf32> -> vector<8x8x64xf32>
    %596 = vector.shape_cast %595 : vector<8x8x64xf32> to vector<64x64xf32>
    %c0_153 = arith.constant 0 : index
    %c0_154 = arith.constant 0 : index
    %597 = vector.load %arg25[%c0_153, %c0_154] : memref<64x128xf32, #tpu.memory_space<vmem>>, vector<64x128xf32>
    %cst_155 = arith.constant dense<0.000000e+00> : vector<64x128xf32>
    %598 = tpu.matmul %596, %597, %cst_155 {dimension_numbers = #tpu.dot_dimension_numbers<[1], [0], [0], [1], [0, 0, 1, 1], [], []>} : vector<64x64xf32>, vector<64x128xf32>, vector<64x128xf32> -> vector<64x128xf32>
    %c0_156 = arith.constant 0 : index
    %c0_157 = arith.constant 0 : index
    %599 = vector.load %arg26[%c0_156, %c0_157] : memref<1x128xf32, #tpu.memory_space<vmem>>, vector<1x128xf32>
    %600 = vector.broadcast %599 : vector<1x128xf32> to vector<64x128xf32>
    %601 = arith.addf %598, %600 : vector<64x128xf32>
    %602 = vector.shape_cast %601 : vector<64x128xf32> to vector<8x8x128xf32>
    %603 = tpu.transpose %602, [1, 0, 2] : vector<8x8x128xf32> -> vector<8x8x128xf32>
    %c0_158 = arith.constant 0 : index
    %c0_159 = arith.constant 0 : index
    %c0_160 = arith.constant 0 : index
    %604 = vector.load %arg27[%c0_158, %c0_159, %c0_160] : memref<8x8x128xf32, #tpu.memory_space<vmem>>, vector<8x8x128xf32>
    tpu.vector_store %arg27[%c0_158, %c0_159, %c0_160], %603 {strides = array<i32>} : memref<8x8x128xf32, #tpu.memory_space<vmem>>, vector<8x8x128xf32>,
    return
  }
}

</mosaic_0001>

<bundles_post_ra>
// kernel: tpu_custom_call.1
= control target key start
LH: loop header
LB: loop body
LE: loop exit
PB: predicated region body
PF: predicated region fallthrough
CT: control target
= control target key end

     0   :  { %s9376_s0 = inlined_call_operand.hbm [shape: f32[8,8,32], index: 0, kind: input, shape index: {}]   ;;  %s9377_s1 = inlined_call_operand.hbm [shape: f32[32,32], index: 1, kind: input, shape index: {}]   ;;  %s9378_s2 = inlined_call_operand.hbm [shape: f32[32,32], index: 2, kind: input, shape index: {}]   ;;  %s9379_s3 = inlined_call_operand.hbm [shape: f32[32,32], index: 3, kind: input, shape index: {}]   ;;  %s9380_s4 = inlined_call_operand.hbm [shape: f32[32,32], index: 4, kind: input, shape index: {}]   ;;  %s9381_s5 = inlined_call_operand.hbm [shape: f32[32,32], index: 5, kind: input, shape index: {}]   ;;  %s9382_s6 = inlined_call_operand.hbm [shape: f32[32,32], index: 6, kind: input, shape index: {}]   ;;  %s9383_s7 = inlined_call_operand.hbm [shape: f32[1,32], index: 7, kind: input, shape index: {}]   ;;  %s9384_s8 = inlined_call_operand.hbm [shape: f32[1,32], index: 8, kind: input, shape index: {}]   ;;  %s9385_s9 = inlined_call_operand.hbm [shape: f32[1,32], index: 9, kind: input, shape index: {}]   ;;  %s9386_s10 = inlined_call_operand.hbm [shape: f32[1,32], index: 10, kind: input, shape index: {}]   ;;  %s9387_s11 = inlined_call_operand.hbm [shape: f32[1,32], index: 11, kind: input, shape index: {}]   ;;  %s9388_s12 = inlined_call_operand.hbm [shape: f32[1,32], index: 12, kind: input, shape index: {}]   ;;  %s9389_s13 = inlined_call_operand.hbm [shape: f32[32,64], index: 13, kind: input, shape index: {}]   ;;  %s9390_s14 = inlined_call_operand.hbm [shape: f32[32,64], index: 14, kind: input, shape index: {}]   ;;  %s9391_s15 = inlined_call_operand.hbm [shape: f32[32,64], index: 15, kind: input, shape index: {}]   ;;  %s9392_s16 = inlined_call_operand.hbm [shape: f32[64,64], index: 16, kind: input, shape index: {}]   ;;  %s9393_s17 = inlined_call_operand.vmem [shape: f32[64,64], index: 17, kind: input, shape index: {}]   ;;  %s9394_s18 = inlined_call_operand.hbm [shape: f32[64,64], index: 18, kind: input, shape index: {}]   ;;  %s9395_s19 = inlined_call_operand.vmem [shape: f32[1,64], index: 19, kind: input, shape index: {}]   ;;  %s9396_s20 = inlined_call_operand.vmem [shape: f32[1,64], index: 20, kind: input, shape index: {}]   ;;  %s9397_s21 = inlined_call_operand.vmem [shape: f32[1,64], index: 21, kind: input, shape index: {}]   ;;  %s9398_s22 = inlined_call_operand.vmem [shape: f32[1,64], index: 22, kind: input, shape index: {}]   ;;  %s9399_s23 = inlined_call_operand.vmem [shape: f32[1,64], index: 23, kind: input, shape index: {}]   ;;  %s9400_s24 = inlined_call_operand.vmem [shape: f32[1,64], index: 24, kind: input, shape index: {}]   ;;  %s9401_s25 = inlined_call_operand.hbm [shape: f32[64,128], index: 25, kind: input, shape index: {}]   ;;  %s9402_s26 = inlined_call_operand.vmem [shape: f32[1,128], index: 26, kind: input, shape index: {}]   ;;  %s9403_s27 = inlined_call_operand.hbm [shape: f32[8,8,128], index: 27, kind: output, shape index: {}]  }
   0x1   :  { %9417 = sst [smem:[#allocation44_spill]] %s9376_s0 }
   0x2   :  { %9418 = sst [smem:[#allocation45_spill]] %s9377_s1 }
   0x3   :  { %9419 = sst [smem:[#allocation46_spill]] %s9378_s2 }
   0x4   :  { %9420 = sst [smem:[#allocation47_spill]] %s9379_s3 }
   0x5   :  { %9421 = sst [smem:[#allocation48_spill]] %s9380_s4 }
   0x6   :  { %9422 = sst [smem:[#allocation49_spill]] %s9381_s5 }
   0x7   :  { %9423 = sst [smem:[#allocation50_spill]] %s9382_s6 }
   0x8   :  { %9424 = sst [smem:[#allocation51_spill]] %s9383_s7 }
   0x9   :  { %9425 = sst [smem:[#allocation52_spill]] %s9384_s8 }
   0xa   :  { %9426 = sst [smem:[#allocation53_spill]] %s9385_s9 }
   0xb   :  { %9427 = sst [smem:[#allocation54_spill]] %s9386_s10 }
   0xc   :  { %9428 = sst [smem:[#allocation55_spill]] %s9387_s11 }
   0xd   :  { %9429 = sst [smem:[#allocation56_spill]] %s9400_s24 }
   0xe   :  { %9430 = sst [smem:[#allocation57_spill]] %s9402_s26 }
   0xf   :  { %9431 = sst [smem:[#allocation58_spill]] %s9403_s27 }
  0x10   :  { %32 = vsyncpa [#allocation3], 0 }
  0x11   :  { %33 = vsyncpa [#allocation6], 0 }
  0x12   :  { %34 = vsyncpa [#allocation9], 0 }
  0x13   :  { %35 = vsyncpa [#allocation12], 0 }
  0x14   :  { %36 = vsyncpa [#allocation15], 0 }
  0x15   :  { %37 = vsyncpa [#allocation18], 0 }
  0x16   :  { %38 = vsyncpa [#allocation21], 0 }
  0x17   :  { %39 = vsyncpa [#allocation24], 0 }
  0x18   :  { %40 = vsyncpa [#allocation27], 0 }
  0x19   :  { %41 = vsyncpa [#allocation30], 0 }
  0x1a   :  { %42 = vsyncpa [#allocation4], 0  ;;  %s7911_s7 = smov [#allocation5]   ;;  %s7912_s8 = smov [#allocation8]  }
  0x1b   :  { %s60_s4 = sshll.u32 %s7911_s7, 4  ;;  %s84_s30 = sshll.u32 %s7912_s8, 4  ;;  %s61_s4 = int_to_ptr.vmem [resolvable:$true] %s60_s4  ;;  %s8078_s30 = int_to_ptr.vmem [resolvable:$true] %s84_s30 }
  0x1c   :  { %s9432_s28 = sld [smem:[#allocation45_spill]] }
  0x22   :  { %s7449_s0 = scalar_lea.hbm %s9432_s28, 512 }
  0x23   :  { %p7450_p0 = scmp.ne.s32.totalorder %s9432_s28, %s7449_s0  ;;  %p7453_p1 = scmp.lt.u32.totalorder %s7449_s0, %s9432_s28 }
  0x25   :  { %p7455_p2 = pnand %p7453_p1, %p7450_p0 }
  0x27   :  { %7458 = shalt.err (!%p7455_p2)
}
  0x28   :  { %s7459_s11 = scalar_lea.vmem %s61_s4, 512  ;;  %p7464_p4 = scmp.lt.s32.totalorder %s61_s4, %s61_s4 }
  0x29   :  { %p7460_p3 = scmp.ne.s32.totalorder %s61_s4, %s7459_s11  ;;  %p7465_p5 = scmp.lt.s32.totalorder %s7459_s11, %s7459_s11 }
  0x2b   :  { %p7466_p6 = por %p7465_p5, %p7464_p4 }
  0x2d   :  { %p7467_p7 = pnand %p7466_p6, %p7460_p3 }
  0x2f   :  { %7470 = shalt.err (!%p7467_p7)
}
  0x30   :  { %s7913_s2 = smov 128   ;;  %s7914_s3 = smov 8  }
  0x31   :  { %66 = dma.hbm_to_vmem [thread:$0]  %s9432_s28, 512, %s61_s4, [#allocation6], %s7913_s2, %s7913_s2, %s7914_s3  }
  0x32   :  { %s9433_s0 = sld [smem:[#allocation47_spill]] }
  0x38   :  { %s7471_s10 = scalar_lea.hbm %s9433_s0, 512 }
  0x39   :  { %p7472_p8 = scmp.ne.s32.totalorder %s9433_s0, %s7471_s10  ;;  %p7475_p9 = scmp.lt.u32.totalorder %s7471_s10, %s9433_s0 }
  0x3b   :  { %p7477_p10 = pnand %p7475_p9, %p7472_p8 }
  0x3d   :  { %7480 = shalt.err (!%p7477_p10)
}
  0x3e   :  { %s7481_s27 = scalar_lea.vmem %s8078_s30, 512  ;;  %p7486_p12 = scmp.lt.s32.totalorder %s8078_s30, %s8078_s30 }
  0x3f   :  { %p7482_p11 = scmp.ne.s32.totalorder %s8078_s30, %s7481_s27  ;;  %p7487_p13 = scmp.lt.s32.totalorder %s7481_s27, %s7481_s27 }
  0x41   :  { %p7488_p0 = por %p7487_p13, %p7486_p12 }
  0x43   :  { %p7489_p1 = pnand %p7488_p0, %p7482_p11 }
  0x45   :  { %7492 = shalt.err (!%p7489_p1)
}
  0x46   :  { %90 = dma.hbm_to_vmem [thread:$0]  %s9433_s0, 512, %s8078_s30, [#allocation9], %s7913_s2, %s7913_s2, %s7914_s3  }
  0x47   :  { %s7915_s7 = smov [#allocation11]   ;;  %s7916_s9 = smov [#allocation14]  }
  0x48   :  { %s108_s8 = sshll.u32 %s7915_s7, 4  ;;  %s133_s5 = sshll.u32 %s7916_s9, 4  ;;  %s109_s8 = int_to_ptr.vmem [resolvable:$true] %s108_s8  ;;  %s134_s5 = int_to_ptr.vmem [resolvable:$true] %s133_s5 }
  0x49   :  { %s9434_s27 = sld [smem:[#allocation49_spill]] }
  0x4f   :  { %s7493_s1 = scalar_lea.hbm %s9434_s27, 512 }
  0x50   :  { %p7494_p2 = scmp.ne.s32.totalorder %s9434_s27, %s7493_s1  ;;  %p7497_p3 = scmp.lt.u32.totalorder %s7493_s1, %s9434_s27 }
  0x52   :  { %p7499_p4 = pnand %p7497_p3, %p7494_p2 }
  0x54   :  { %7502 = shalt.err (!%p7499_p4)
}
  0x55   :  { %s7503_s30 = scalar_lea.vmem %s109_s8, 512  ;;  %p7508_p6 = scmp.lt.s32.totalorder %s109_s8, %s109_s8 }
  0x56   :  { %p7504_p5 = scmp.ne.s32.totalorder %s109_s8, %s7503_s30  ;;  %p7509_p7 = scmp.lt.s32.totalorder %s7503_s30, %s7503_s30 }
  0x58   :  { %p7510_p8 = por %p7509_p7, %p7508_p6 }
  0x5a   :  { %p7511_p9 = pnand %p7510_p8, %p7504_p5 }
  0x5c   :  { %7514 = shalt.err (!%p7511_p9)
}
  0x5d   :  { %114 = dma.hbm_to_vmem [thread:$0]  %s9434_s27, 512, %s109_s8, [#allocation12], %s7913_s2, %s7913_s2, %s7914_s3  }
  0x5e   :  { %s9435_s24 = sld [smem:[#allocation51_spill]] }
  0x64   :  { %s7515_s26 = scalar_lea.hbm %s9435_s24, 16 }
  0x65   :  { %p7516_p10 = scmp.ne.s32.totalorder %s9435_s24, %s7515_s26  ;;  %p7519_p11 = scmp.lt.u32.totalorder %s7515_s26, %s9435_s24 }
  0x67   :  { %p7521_p12 = pnand %p7519_p11, %p7516_p10 }
  0x69   :  { %7524 = shalt.err (!%p7521_p12)
}
  0x6a   :  { %s7525_s6 = scalar_lea.vmem %s134_s5, 16  ;;  %s7529_s11 = scalar_lea.vmem %s134_s5, 32 }
  0x6b   :  { %p7526_p13 = scmp.ne.s32.totalorder %s134_s5, %s7525_s6  ;;  %p7530_p0 = scmp.lt.s32.totalorder %s134_s5, %s134_s5 }
  0x6c   :  { %p7531_p1 = scmp.lt.s32.totalorder %s7529_s11, %s7525_s6 }
  0x6e   :  { %p7532_p2 = por %p7531_p1, %p7530_p0 }
  0x70   :  { %p7533_p3 = pnand %p7532_p2, %p7526_p13 }
  0x72   :  { %7536 = shalt.err (!%p7533_p3)
}
  0x73   :  { %136 = dma.hbm_to_vmem [thread:$0]  %s9435_s24, 16, %s134_s5, [#allocation15]  }
  0x74   :  { %s7917_s30 = smov [#allocation17]   ;;  %s7918_s4 = smov [#allocation20]  }
  0x75   :  { %s153_s0 = sshll.u32 %s7917_s30, 4  ;;  %s173_s28 = sshll.u32 %s7918_s4, 4  ;;  %s154_s0 = int_to_ptr.vmem [resolvable:$true] %s153_s0  ;;  %s174_s28 = int_to_ptr.vmem [resolvable:$true] %s173_s28 }
  0x76   :  { %s9436_s9 = sld [smem:[#allocation53_spill]] }
  0x7c   :  { %s7537_s10 = scalar_lea.hbm %s9436_s9, 16 }
  0x7d   :  { %p7538_p4 = scmp.ne.s32.totalorder %s9436_s9, %s7537_s10  ;;  %p7541_p5 = scmp.lt.u32.totalorder %s7537_s10, %s9436_s9 }
  0x7f   :  { %p7543_p6 = pnand %p7541_p5, %p7538_p4 }
  0x81   :  { %7546 = shalt.err (!%p7543_p6)
}
  0x82   :  { %s7547_s5 = scalar_lea.vmem %s154_s0, 16  ;;  %s7551_s24 = scalar_lea.vmem %s154_s0, 32 }
  0x83   :  { %p7548_p7 = scmp.ne.s32.totalorder %s154_s0, %s7547_s5  ;;  %p7552_p8 = scmp.lt.s32.totalorder %s154_s0, %s154_s0 }
  0x84   :  { %p7553_p9 = scmp.lt.s32.totalorder %s7551_s24, %s7547_s5 }
  0x86   :  { %p7554_p10 = por %p7553_p9, %p7552_p8 }
  0x88   :  { %p7555_p11 = pnand %p7554_p10, %p7548_p7 }
  0x8a   :  { %7558 = shalt.err (!%p7555_p11)
}
  0x8b   :  { %156 = dma.hbm_to_vmem [thread:$0]  %s9436_s9, 16, %s154_s0, [#allocation18]  }
  0x8c   :  { %s9437_s7 = sld [smem:[#allocation55_spill]] }
  0x92   :  { %s7559_s26 = scalar_lea.hbm %s9437_s7, 16 }
  0x93   :  { %p7560_p12 = scmp.ne.s32.totalorder %s9437_s7, %s7559_s26  ;;  %p7563_p13 = scmp.lt.u32.totalorder %s7559_s26, %s9437_s7 }
  0x95   :  { %p7565_p0 = pnand %p7563_p13, %p7560_p12 }
  0x97   :  { %7568 = shalt.err (!%p7565_p0)
}
  0x98   :  { %s7569_s11 = scalar_lea.vmem %s174_s28, 16  ;;  %s7573_s5 = scalar_lea.vmem %s174_s28, 32 }
  0x99   :  { %p7570_p1 = scmp.ne.s32.totalorder %s174_s28, %s7569_s11  ;;  %p7574_p2 = scmp.lt.s32.totalorder %s174_s28, %s174_s28 }
  0x9a   :  { %p7575_p3 = scmp.lt.s32.totalorder %s7573_s5, %s7569_s11 }
  0x9c   :  { %p7576_p4 = por %p7575_p3, %p7574_p2 }
  0x9e   :  { %p7577_p5 = pnand %p7576_p4, %p7570_p1 }
  0xa0   :  { %7580 = shalt.err (!%p7577_p5)
}
  0xa1   :  { %176 = dma.hbm_to_vmem [thread:$0]  %s9437_s7, 16, %s174_s28, [#allocation21]  }
  0xa2   :  { %s7919_s24 = smov [#allocation23]   ;;  %s7920_s27 = smov [#allocation26]  }
  0xa3   :  { %s192_s8 = sshll.u32 %s7919_s24, 4  ;;  %s216_s30 = sshll.u32 %s7920_s27, 4  ;;  %s193_s8 = int_to_ptr.vmem [resolvable:$true] %s192_s8  ;;  %s8166_s30 = int_to_ptr.vmem [resolvable:$true] %s216_s30 }
  0xa4   :  { %s7581_s29 = scalar_lea.hbm %s9389_s13, 512 }
  0xa5   :  { %p7582_p6 = scmp.ne.s32.totalorder %s9389_s13, %s7581_s29  ;;  %p7585_p7 = scmp.lt.u32.totalorder %s7581_s29, %s9389_s13 }
  0xa7   :  { %p7587_p8 = pnand %p7585_p7, %p7582_p6 }
  0xa9   :  { %7590 = shalt.err (!%p7587_p8)
}
  0xaa   :  { %s7591_s28 = scalar_lea.vmem %s193_s8, 512  ;;  %p7596_p10 = scmp.lt.s32.totalorder %s193_s8, %s193_s8 }
  0xab   :  { %p7592_p9 = scmp.ne.s32.totalorder %s193_s8, %s7591_s28  ;;  %p7597_p11 = scmp.lt.s32.totalorder %s7591_s28, %s7591_s28 }
  0xad   :  { %p7598_p12 = por %p7597_p11, %p7596_p10 }
  0xaf   :  { %p7599_p13 = pnand %p7598_p12, %p7592_p9 }
  0xb1   :  { %7602 = shalt.err (!%p7599_p13)
}
  0xb2   :  { %198 = dma.hbm_to_vmem [thread:$0]  %s9389_s13, 512, %s193_s8, [#allocation24], %s7913_s2, %s7913_s2, %s7914_s3  }
  0xb3   :  { %s7603_s24 = scalar_lea.hbm %s9391_s15, 512 }
  0xb4   :  { %p7604_p0 = scmp.ne.s32.totalorder %s9391_s15, %s7603_s24  ;;  %p7607_p1 = scmp.lt.u32.totalorder %s7603_s24, %s9391_s15 }
  0xb6   :  { %p7609_p2 = pnand %p7607_p1, %p7604_p0 }
  0xb8   :  { %7612 = shalt.err (!%p7609_p2)
}
  0xb9   :  { %s7613_s10 = scalar_lea.vmem %s8166_s30, 512  ;;  %p7618_p4 = scmp.lt.s32.totalorder %s8166_s30, %s8166_s30 }
  0xba   :  { %p7614_p3 = scmp.ne.s32.totalorder %s8166_s30, %s7613_s10  ;;  %p7619_p5 = scmp.lt.s32.totalorder %s7613_s10, %s7613_s10 }
  0xbc   :  { %p7620_p6 = por %p7619_p5, %p7618_p4 }
  0xbe   :  { %p7621_p7 = pnand %p7620_p6, %p7614_p3 }
  0xc0   :  { %7624 = shalt.err (!%p7621_p7)
}
  0xc1   :  { %222 = dma.hbm_to_vmem [thread:$0]  %s9391_s15, 512, %s8166_s30, [#allocation27], %s7913_s2, %s7913_s2, %s7914_s3  }
  0xc2   :  { %s7921_s1 = smov [#allocation29]   ;;  %s7922_s11 = smov [#allocation2]  }
  0xc3   :  { %s242_s6 = sshll.u32 %s7921_s1, 4  ;;  %s48_s28 = sshll.u32 %s7922_s11, 4  ;;  %s243_s6 = int_to_ptr.vmem [resolvable:$true] %s242_s6  ;;  %s8203_s28 = int_to_ptr.vmem [resolvable:$true] %s48_s28 }
  0xc4   :  { %s7625_s0 = scalar_lea.hbm %s9394_s18, 1024 }
  0xc5   :  { %p7626_p8 = scmp.ne.s32.totalorder %s9394_s18, %s7625_s0  ;;  %p7629_p9 = scmp.lt.u32.totalorder %s7625_s0, %s9394_s18 }
  0xc7   :  { %p7631_p10 = pnand %p7629_p9, %p7626_p8 }
  0xc9   :  { %7634 = shalt.err (!%p7631_p10)
}
  0xca   :  { %s7635_s15 = scalar_lea.vmem %s243_s6, 1024  ;;  %p7640_p12 = scmp.lt.s32.totalorder %s243_s6, %s243_s6 }
  0xcb   :  { %p7636_p11 = scmp.ne.s32.totalorder %s243_s6, %s7635_s15  ;;  %p7641_p13 = scmp.lt.s32.totalorder %s7635_s15, %s7635_s15 }
  0xcd   :  { %p7642_p0 = por %p7641_p13, %p7640_p12 }
  0xcf   :  { %p7643_p1 = pnand %p7642_p0, %p7636_p11 }
  0xd1   :  { %7646 = shalt.err (!%p7643_p1)
}
  0xd2   :  { %248 = dma.hbm_to_vmem [thread:$0]  %s9394_s18, 1024, %s243_s6, [#allocation30], %s7913_s2, %s7913_s2, %s7914_s3  }
  0xd3   :  { %s9438_s13 = sld [smem:[#allocation44_spill]] }
  0xd9   :  { %s7647_s8 = scalar_lea.hbm %s9438_s13, 1024 }
  0xda   :  { %p7648_p2 = scmp.ne.s32.totalorder %s9438_s13, %s7647_s8  ;;  %p7651_p3 = scmp.lt.u32.totalorder %s7647_s8, %s9438_s13 }
  0xdc   :  { %p7653_p4 = pnand %p7651_p3, %p7648_p2 }
  0xde   :  { %7656 = shalt.err (!%p7653_p4)
}
  0xdf   :  { %s7657_s0 = scalar_lea.vmem %s8203_s28, 1024  ;;  %p7662_p6 = scmp.lt.s32.totalorder %s8203_s28, %s8203_s28 }
  0xe0   :  { %p7658_p5 = scmp.ne.s32.totalorder %s8203_s28, %s7657_s0  ;;  %p7663_p7 = scmp.lt.s32.totalorder %s7657_s0, %s7657_s0 }
  0xe2   :  { %p7664_p8 = por %p7663_p7, %p7662_p6 }
  0xe4   :  { %p7665_p9 = pnand %p7664_p8, %p7658_p5 }
  0xe6   :  { %7668 = shalt.err (!%p7665_p9)
}
  0xe7   :  { %54 = dma.hbm_to_vmem [thread:$0]  %s9438_s13, 1024, %s8203_s28, [#allocation3], %s7913_s2, %s7913_s2, %s7914_s3  }
  0xe8   :  { %s7923_s9 = smov [#allocation7]   ;;  %s7924_s27 = smov [#allocation10]  }
  0xe9   :  { %s72_s24 = sshll.u32 %s7923_s9, 4  ;;  %s96_s4 = sshll.u32 %s7924_s27, 4  ;;  %s73_s24 = int_to_ptr.vmem [resolvable:$true] %s72_s24  ;;  %s8240_s4 = int_to_ptr.vmem [resolvable:$true] %s96_s4 }
  0xea   :  { %s9439_s26 = sld [smem:[#allocation46_spill]] }
  0xf0   :  { %s7669_s29 = scalar_lea.hbm %s9439_s26, 512 }
  0xf1   :  { %p7670_p10 = scmp.ne.s32.totalorder %s9439_s26, %s7669_s29  ;;  %p7673_p11 = scmp.lt.u32.totalorder %s7669_s29, %s9439_s26 }
  0xf3   :  { %p7675_p12 = pnand %p7673_p11, %p7670_p10 }
  0xf5   :  { %7678 = shalt.err (!%p7675_p12)
}
  0xf6   :  { %s7679_s28 = scalar_lea.vmem %s73_s24, 512  ;;  %p7684_p0 = scmp.lt.s32.totalorder %s73_s24, %s73_s24 }
  0xf7   :  { %p7680_p13 = scmp.ne.s32.totalorder %s73_s24, %s7679_s28  ;;  %p7685_p1 = scmp.lt.s32.totalorder %s7679_s28, %s7679_s28 }
  0xf9   :  { %p7686_p2 = por %p7685_p1, %p7684_p0 }
  0xfb   :  { %p7687_p3 = pnand %p7686_p2, %p7680_p13 }
  0xfd   :  { %7690 = shalt.err (!%p7687_p3)
}
  0xfe   :  { %78 = dma.hbm_to_vmem [thread:$0]  %s9439_s26, 512, %s73_s24, [#allocation6], %s7913_s2, %s7913_s2, %s7914_s3  }
  0xff   :  { %s9440_s18 = sld [smem:[#allocation48_spill]] }
 0x105   :  { %s7691_s6 = scalar_lea.hbm %s9440_s18, 512 }
 0x106   :  { %p7692_p4 = scmp.ne.s32.totalorder %s9440_s18, %s7691_s6  ;;  %p7695_p5 = scmp.lt.u32.totalorder %s7691_s6, %s9440_s18 }
 0x108   :  { %p7697_p6 = pnand %p7695_p5, %p7692_p4 }
 0x10a   :  { %7700 = shalt.err (!%p7697_p6)
}
 0x10b   :  { %s7701_s29 = scalar_lea.vmem %s8240_s4, 512  ;;  %p7706_p8 = scmp.lt.s32.totalorder %s8240_s4, %s8240_s4 }
 0x10c   :  { %p7702_p7 = scmp.ne.s32.totalorder %s8240_s4, %s7701_s29  ;;  %p7707_p9 = scmp.lt.s32.totalorder %s7701_s29, %s7701_s29 }
 0x10e   :  { %p7708_p10 = por %p7707_p9, %p7706_p8 }
 0x110   :  { %p7709_p11 = pnand %p7708_p10, %p7702_p7 }
 0x112   :  { %7712 = shalt.err (!%p7709_p11)
}
 0x113   :  { %102 = dma.hbm_to_vmem [thread:$0]  %s9440_s18, 512, %s8240_s4, [#allocation9], %s7913_s2, %s7913_s2, %s7914_s3  }
 0x114   :  { %s7925_s10 = smov [#allocation13]   ;;  %s7926_s1 = smov [#allocation16]  }
 0x115   :  { %s120_s8 = sshll.u32 %s7925_s10, 4  ;;  %s143_s11 = sshll.u32 %s7926_s1, 4  ;;  %s121_s8 = int_to_ptr.vmem [resolvable:$true] %s120_s8  ;;  %s144_s11 = int_to_ptr.vmem [resolvable:$true] %s143_s11 }
 0x116   :  { %s9441_s7 = sld [smem:[#allocation50_spill]] }
 0x11c   :  { %s7713_s5 = scalar_lea.hbm %s9441_s7, 512 }
 0x11d   :  { %p7714_p12 = scmp.ne.s32.totalorder %s9441_s7, %s7713_s5  ;;  %p7717_p13 = scmp.lt.u32.totalorder %s7713_s5, %s9441_s7 }
 0x11f   :  { %p7719_p0 = pnand %p7717_p13, %p7714_p12 }
 0x121   :  { %7722 = shalt.err (!%p7719_p0)
}
 0x122   :  { %s7723_s4 = scalar_lea.vmem %s121_s8, 512  ;;  %p7728_p2 = scmp.lt.s32.totalorder %s121_s8, %s121_s8 }
 0x123   :  { %p7724_p1 = scmp.ne.s32.totalorder %s121_s8, %s7723_s4  ;;  %p7729_p3 = scmp.lt.s32.totalorder %s7723_s4, %s7723_s4 }
 0x125   :  { %p7730_p4 = por %p7729_p3, %p7728_p2 }
 0x127   :  { %p7731_p5 = pnand %p7730_p4, %p7724_p1 }
 0x129   :  { %7734 = shalt.err (!%p7731_p5)
}
 0x12a   :  { %126 = dma.hbm_to_vmem [thread:$0]  %s9441_s7, 512, %s121_s8, [#allocation12], %s7913_s2, %s7913_s2, %s7914_s3  }
 0x12b   :  { %s9442_s24 = sld [smem:[#allocation52_spill]] }
 0x131   :  { %s7735_s26 = scalar_lea.hbm %s9442_s24, 16 }
 0x132   :  { %p7736_p6 = scmp.ne.s32.totalorder %s9442_s24, %s7735_s26  ;;  %p7739_p7 = scmp.lt.u32.totalorder %s7735_s26, %s9442_s24 }
 0x134   :  { %p7741_p8 = pnand %p7739_p7, %p7736_p6 }
 0x136   :  { %7744 = shalt.err (!%p7741_p8)
}
 0x137   :  { %s7745_s5 = scalar_lea.vmem %s144_s11, 16  ;;  %s7749_s0 = scalar_lea.vmem %s144_s11, 32 }
 0x138   :  { %p7746_p9 = scmp.ne.s32.totalorder %s144_s11, %s7745_s5  ;;  %p7750_p10 = scmp.lt.s32.totalorder %s144_s11, %s144_s11 }
 0x139   :  { %p7751_p11 = scmp.lt.s32.totalorder %s7749_s0, %s7745_s5 }
 0x13b   :  { %p7752_p12 = por %p7751_p11, %p7750_p10 }
 0x13d   :  { %p7753_p13 = pnand %p7752_p12, %p7746_p9 }
 0x13f   :  { %7756 = shalt.err (!%p7753_p13)
}
 0x140   :  { %146 = dma.hbm_to_vmem [thread:$0]  %s9442_s24, 16, %s144_s11, [#allocation15]  }
 0x141   :  { %s7927_s6 = smov [#allocation19]   ;;  %s7928_s27 = smov [#allocation22]  }
 0x142   :  { %s163_s9 = sshll.u32 %s7927_s6, 4  ;;  %s183_s4 = sshll.u32 %s7928_s27, 4  ;;  %s164_s9 = int_to_ptr.vmem [resolvable:$true] %s163_s9  ;;  %s184_s4 = int_to_ptr.vmem [resolvable:$true] %s183_s4 }
 0x143   :  { %s9443_s30 = sld [smem:[#allocation54_spill]] }
 0x149   :  { %s7757_s29 = scalar_lea.hbm %s9443_s30, 16 }
 0x14a   :  { %p7758_p0 = scmp.ne.s32.totalorder %s9443_s30, %s7757_s29  ;;  %p7761_p1 = scmp.lt.u32.totalorder %s7757_s29, %s9443_s30 }
 0x14c   :  { %p7763_p2 = pnand %p7761_p1, %p7758_p0 }
 0x14e   :  { %7766 = shalt.err (!%p7763_p2)
}
 0x14f   :  { %s7767_s11 = scalar_lea.vmem %s164_s9, 16  ;;  %s7771_s24 = scalar_lea.vmem %s164_s9, 32 }
 0x150   :  { %p7768_p3 = scmp.ne.s32.totalorder %s164_s9, %s7767_s11  ;;  %p7772_p4 = scmp.lt.s32.totalorder %s164_s9, %s164_s9 }
 0x151   :  { %p7773_p5 = scmp.lt.s32.totalorder %s7771_s24, %s7767_s11 }
 0x153   :  { %p7774_p6 = por %p7773_p5, %p7772_p4 }
 0x155   :  { %p7775_p7 = pnand %p7774_p6, %p7768_p3 }
 0x157   :  { %7778 = shalt.err (!%p7775_p7)
}
 0x158   :  { %166 = dma.hbm_to_vmem [thread:$0]  %s9443_s30, 16, %s164_s9, [#allocation18]  }
 0x159   :  { %s7779_s7 = scalar_lea.hbm %s9388_s12, 16 }
 0x15a   :  { %p7780_p8 = scmp.ne.s32.totalorder %s9388_s12, %s7779_s7  ;;  %p7783_p9 = scmp.lt.u32.totalorder %s7779_s7, %s9388_s12 }
 0x15c   :  { %p7785_p10 = pnand %p7783_p9, %p7780_p8 }
 0x15e   :  { %7788 = shalt.err (!%p7785_p10)
}
 0x15f   :  { %s7789_s29 = scalar_lea.vmem %s184_s4, 16  ;;  %s7793_s26 = scalar_lea.vmem %s184_s4, 32 }
 0x160   :  { %p7790_p11 = scmp.ne.s32.totalorder %s184_s4, %s7789_s29  ;;  %p7794_p12 = scmp.lt.s32.totalorder %s184_s4, %s184_s4 }
 0x161   :  { %p7795_p13 = scmp.lt.s32.totalorder %s7793_s26, %s7789_s29 }
 0x163   :  { %p7796_p0 = por %p7795_p13, %p7794_p12 }
 0x165   :  { %p7797_p1 = pnand %p7796_p0, %p7790_p11 }
 0x167   :  { %7800 = shalt.err (!%p7797_p1)
}
 0x168   :  { %186 = dma.hbm_to_vmem [thread:$0]  %s9388_s12, 16, %s184_s4, [#allocation21]  }
 0x169   :  { %s7929_s10 = smov [#allocation25]   ;;  %s7930_s28 = smov [#allocation28]  }
 0x16a   :  { %s204_s1 = sshll.u32 %s7929_s10, 4  ;;  %s228_s11 = sshll.u32 %s7930_s28, 4  ;;  %s205_s1 = int_to_ptr.vmem [resolvable:$true] %s204_s1  ;;  %s8328_s11 = int_to_ptr.vmem [resolvable:$true] %s228_s11 }
 0x16b   :  { %s7801_s5 = scalar_lea.hbm %s9390_s14, 512 }
 0x16c   :  { %p7802_p2 = scmp.ne.s32.totalorder %s9390_s14, %s7801_s5  ;;  %p7805_p3 = scmp.lt.u32.totalorder %s7801_s5, %s9390_s14 }
 0x16e   :  { %p7807_p4 = pnand %p7805_p3, %p7802_p2 }
 0x170   :  { %7810 = shalt.err (!%p7807_p4)
}
 0x171   :  { %s7811_s12 = scalar_lea.vmem %s205_s1, 512  ;;  %p7816_p6 = scmp.lt.s32.totalorder %s205_s1, %s205_s1 }
 0x172   :  { %p7812_p5 = scmp.ne.s32.totalorder %s205_s1, %s7811_s12  ;;  %p7817_p7 = scmp.lt.s32.totalorder %s7811_s12, %s7811_s12 }
 0x174   :  { %p7818_p8 = por %p7817_p7, %p7816_p6 }
 0x176   :  { %p7819_p9 = pnand %p7818_p8, %p7812_p5 }
 0x178   :  { %7822 = shalt.err (!%p7819_p9)
}
 0x179   :  { %210 = dma.hbm_to_vmem [thread:$0]  %s9390_s14, 512, %s205_s1, [#allocation24], %s7913_s2, %s7913_s2, %s7914_s3  }
 0x17a   :  { %s7823_s29 = scalar_lea.hbm %s9392_s16, 1024 }
 0x17b   :  { %p7824_p10 = scmp.ne.s32.totalorder %s9392_s16, %s7823_s29  ;;  %p7827_p11 = scmp.lt.u32.totalorder %s7823_s29, %s9392_s16 }
 0x17d   :  { %p7829_p12 = pnand %p7827_p11, %p7824_p10 }
 0x17f   :  { %7832 = shalt.err (!%p7829_p12)
}
 0x180   :  { %s7833_s28 = scalar_lea.vmem %s8328_s11, 1024  ;;  %p7838_p0 = scmp.lt.s32.totalorder %s8328_s11, %s8328_s11 }
 0x181   :  { %p7834_p13 = scmp.ne.s32.totalorder %s8328_s11, %s7833_s28  ;;  %p7839_p1 = scmp.lt.s32.totalorder %s7833_s28, %s7833_s28 }
 0x183   :  { %p7840_p2 = por %p7839_p1, %p7838_p0 }
 0x185   :  { %p7841_p3 = pnand %p7840_p2, %p7834_p13 }
 0x187   :  { %7844 = shalt.err (!%p7841_p3)
}
 0x188   :  { %234 = dma.hbm_to_vmem [thread:$0]  %s9392_s16, 1024, %s8328_s11, [#allocation27], %s7913_s2, %s7913_s2, %s7914_s3  }
 0x189   :  { %s7931_s24 = smov [#allocation31]   ;;  %s7845_s8 = scalar_lea.hbm %s9401_s25, 1024 }
 0x18a   :  { %s266_s13 = sshll.u32 %s7931_s24, 4  ;;  %p7846_p4 = scmp.ne.s32.totalorder %s9401_s25, %s7845_s8  ;;  %s267_s13 = int_to_ptr.vmem [resolvable:$true] %s266_s13 }
 0x18b   :  { %p7849_p5 = scmp.lt.u32.totalorder %s7845_s8, %s9401_s25 }
 0x18d   :  { %p7851_p6 = pnand %p7849_p5, %p7846_p4 }
 0x18f   :  { %7854 = shalt.err (!%p7851_p6)
}
 0x190   :  { %s7855_s27 = scalar_lea.vmem %s267_s13, 1024  ;;  %p7860_p8 = scmp.lt.s32.totalorder %s267_s13, %s267_s13 }
 0x191   :  { %p7856_p7 = scmp.ne.s32.totalorder %s267_s13, %s7855_s27  ;;  %p7861_p9 = scmp.lt.s32.totalorder %s7855_s27, %s7855_s27 }
 0x193   :  { %p7862_p10 = por %p7861_p9, %p7860_p8 }
 0x195   :  { %p7863_p11 = pnand %p7862_p10, %p7856_p7 }
 0x197   :  { %7866 = shalt.err (!%p7863_p11)
}
 0x198   :  { %272 = dma.hbm_to_vmem [thread:$0]  %s9401_s25, 1024, %s267_s13, [#allocation30], %s7913_s2, %s7913_s2, %s7914_s3  }
 0x199   :  { %7889 = dma.done.wait [#allocation3], 1024  }
 0x19a   :  { %7890 = vsyncadd [#allocation3], 4294966272 }
 0x19b   :  { %7891 = dma.done.wait [#allocation6], 1024  }
 0x19c   :  { %7892 = vsyncadd [#allocation6], 4294966272 }
 0x19d   :  { %7893 = dma.done.wait [#allocation9], 1024  }
 0x19e   :  { %7894 = vsyncadd [#allocation9], 4294966272 }
 0x19f   :  { %7895 = dma.done.wait [#allocation12], 1024  }
 0x1a0   :  { %7896 = vsyncadd [#allocation12], 4294966272 }
 0x1a1   :  { %7897 = dma.done.wait [#allocation15], 32  }
 0x1a2   :  { %7898 = vsyncadd [#allocation15], 4294967264 }
 0x1a3   :  { %7899 = dma.done.wait [#allocation18], 32  }
 0x1a4   :  { %7900 = vsyncadd [#allocation18], 4294967264 }
 0x1a5   :  { %7901 = dma.done.wait [#allocation21], 32  }
 0x1a6   :  { %7902 = vsyncadd [#allocation21], 4294967264 }
 0x1a7   :  { %7903 = dma.done.wait [#allocation24], 1024  }
 0x1a8   :  { %7904 = vsyncadd [#allocation24], 4294966272 }
 0x1a9   :  { %7905 = dma.done.wait [#allocation27], 1536  }
 0x1aa   :  { %7906 = vsyncadd [#allocation27], 4294965760 }
 0x1ab   :  { %7907 = dma.done.wait [#allocation30], 2048  }
 0x1ac   :  { %7908 = vsyncadd [#allocation30], 4294965248  ;;  %v7932_v0 = vmov 1983009808   ;;  %v345_v2 = vlaneseq  ;;  %v7933_v5 = vmov 1934713408  }
 0x1ad   :  { %v343_v1 = vunpack.c.l.s4 %v7932_v0  ;;  %v407_v6 = vunpack.c.l.s4 %v7933_v5  ;;  %v476_v7 = vld [vmem:[#allocation5] sm:$0xff]  ;;  %v477_v8 = vld [vmem:[#allocation5 + $0x8] sm:$0xff]  ;;  %v478_v12 = vld [vmem:[#allocation5 + $0x10] sm:$0xff]  ;;  %v7934_v40 = vmov 0.0|0.0   ;;  %vm487_vm0 = vcmask 261120   ;;  %s9444_s25 = sld [smem:[#allocation56_spill]] }
 0x1ae   :  { %v346_v4 = vshrl.u32 %v345_v2, 7  ;;  %v617_v9 = vld [vmem:[#allocation7] sm:$0xff]  ;;  %v6750_v10 = vpack.c.bf16 %v477_v8, %v476_v7  ;;  %v618_v11 = vld [vmem:[#allocation7 + $0x8] sm:$0xff]  ;;  %v479_v13 = vld [vmem:[#allocation5 + $0x18] sm:$0xff]  ;;  %vm7935_vm1 = vmmov 0   ;;  %vm3150_vm2 = vcmask 523264  }
 0x1af   :  { %v344_v3 = vunpack.c.0.s8 %v343_v1  ;;  %v8380_v14 = vpack.c.bf16 %v618_v11, %v617_v9  ;;  %v6754_v15 = vpack.c.bf16 %v479_v13, %v478_v12  ;;  %v619_v16 = vld [vmem:[#allocation7 + $0x10] sm:$0xff]  ;;  %v620_v17 = vld [vmem:[#allocation7 + $0x18] sm:$0xff]  ;;  %v408_v20 = vunpack.c.0.s8 %v407_v6  ;;  %v849_v51 = vld [vmem:[#allocation10] sm:$0xff]  ;;  %s9445_s15 = sld [smem:[#allocation57_spill]]  ;;  %s7937_s29 = smov [#allocation32]  }
 0x1b0   :  { %6751 = vmatprep.subr.bf16.mxu0 %v6750_v10  ;;  %v8382_v18 = vpack.c.bf16 %v620_v17, %v619_v16  ;;  %v7277_v21 = vld [vmem:[#allocation2] ss:$16 sps:$4 sm:$0xff]   ;;  %v7279_v22 = vld [vmem:[#allocation2 + $0x8] ss:$16 sps:$4 sm:$0xff]   ;;  %v7285_v25 = vld [vmem:[#allocation2 + $0x4] ss:$16 sps:$4 sm:$0xff]  }
 0x1b1   :  { %v8384_v19 = vsub.s32 %v344_v3, %v346_v4  ;;  %6753 = vmatpush3.bf16.msra.mxu0 %v6750_v10  ;;  %7246 = vmatprep.subr.bf16.mxu1 %v8380_v14  ;;  %v7281_v23 = vld [vmem:[#allocation2 + $0x20] ss:$16 sps:$4 sm:$0xff]   ;;  %v7283_v24 = vld [vmem:[#allocation2 + $0x28] ss:$16 sps:$4 sm:$0xff]   ;;  %v8391_v28 = vsub.s32 %v408_v20, %v346_v4  ;;  %v7286_v29 = vld [vmem:[#allocation2 + $0xc] ss:$16 sps:$4 sm:$0xff]  }
 0x1b2   :  { %7248 = vmatpush3.bf16.msra.mxu1 %v8380_v14  ;;  %6755 = vmatprep.subr.bf16.mxu0 %v6754_v15  ;;  %v7287_v30 = vld [vmem:[#allocation2 + $0x24] ss:$16 sps:$4 sm:$0xff]   ;;  %v7288_v31 = vld [vmem:[#allocation2 + $0x2c] ss:$16 sps:$4 sm:$0xff]   ;;  %v7936_v10 = vmov 0.0   ;;  %s5294_s26 = sshll.u32 %s7937_s29, 4  ;;  %s5295_s26 = int_to_ptr.vmem [resolvable:$true] %s5294_s26 }
 0x1b3   :  { %7247 = vmatprep.subr.bf16.mxu1 %v8382_v18  ;;  %v348_v26 = vrot.slane %v7277_v21, %v8384_v19  ;;  %v364_v27 = vrot.slane %v7279_v22, %v8384_v19  ;;  %v380_v32 = vrot.slane %v7281_v23, %v8384_v19  ;;  %v396_v33 = vrot.slane %v7283_v24, %v8384_v19  ;;  %v850_v52 = vld [vmem:[#allocation10 + $0x8] sm:$0xff]  ;;  %v851_v1 = vld [vmem:[#allocation10 + $0x10] sm:$0xff]  ;;  %v852_v2 = vld [vmem:[#allocation10 + $0x18] sm:$0xff]  ;;  %s7867_s9 = scalar_lea.vmem %s5295_s26, 1024  ;;  %p7872_p13 = scmp.lt.s32.totalorder %s5295_s26, %s5295_s26 }
 0x1b4   :  { %v355_v34 = vrot.slane %v7285_v25, %v8384_v19  ;;  %v371_v36 = vrot.slane %v7286_v29, %v8384_v19  ;;  %v387_v37 = vrot.slane %v7287_v30, %v8384_v19  ;;  %v403_v39 = vrot.slane %v7288_v31, %v8384_v19  ;;  %v733_v4 = vld [vmem:[#allocation8] sm:$0xff]  ;;  %v734_v5 = vld [vmem:[#allocation8 + $0x8] sm:$0xff]  ;;  %v855_v12 = vld [vmem:[#allocation11 + $0x10] sm:$0xff]  ;;  %p7868_p12 = scmp.ne.s32.totalorder %s5295_s26, %s7867_s9  ;;  %p7873_p0 = scmp.lt.s32.totalorder %s7867_s9, %s7867_s9 }
 0x1b5   :  { %6757 = vmatpush3.bf16.msra.mxu0 %v6754_v15  ;;  %v404_v35 = vcombine.low %v348_v26, %v364_v27  ;;  %v436_v38 = vcombine.low %v380_v32, %v396_v33  ;;  %v405_v41 = vcombine.high %v348_v26, %v364_v27  ;;  %v437_v44 = vcombine.high %v380_v32, %v396_v33  ;;  %v853_v7 = vld [vmem:[#allocation11] sm:$0xff]  ;;  %v854_v8 = vld [vmem:[#allocation11 + $0x8] sm:$0xff]  ;;  %v856_v13 = vld [vmem:[#allocation11 + $0x18] sm:$0xff] }
 0x1b6   :  { %7249 = vmatpush3.bf16.msra.mxu1 %v8382_v18  ;;  %6759 = vmatprep.subr.bf16.mxu0 %v8380_v14  ;;  %v420_v43 = vcombine.low %v355_v34, %v371_v36  ;;  %v421_v45 = vcombine.high %v355_v34, %v371_v36  ;;  %v452_v47 = vcombine.low %v387_v37, %v403_v39  ;;  %v735_v15 = vld [vmem:[#allocation8 + $0x10] sm:$0xff]  ;;  %v736_v16 = vld [vmem:[#allocation8 + $0x18] sm:$0xff]  ;;  %v858_v20 = vld [vmem:[#allocation13 + $0x8] sm:$0xff]  ;;  %p7874_p1 = por %p7873_p0, %p7872_p13 }
 0x1b7   :  { %6774 = vmatprep.subr.bf16.mxu1 %v7934_v40  ;;  %v412_v42 = vrot.slane %v404_v35, %v8391_v28  ;;  %v444_v46 = vrot.slane %v436_v38, %v8391_v28  ;;  %v419_v48 = vrot.slane %v405_v41, %v8391_v28  ;;  %v453_v49 = vcombine.high %v387_v37, %v403_v39  ;;  %v859_v22 = vld [vmem:[#allocation13 + $0x10] sm:$0xff]  ;;  %v860_v23 = vld [vmem:[#allocation13 + $0x18] sm:$0xff]  ;;  %v5315_v25 = vld [vmem:[#allocation14] ss:$0 sm:$0xff] }
 0x1b8   :  { %v428_v50 = vrot.slane %v420_v43, %v8391_v28  ;;  %v451_v53 = vrot.slane %v437_v44, %v8391_v28  ;;  %v435_v54 = vrot.slane %v421_v45, %v8391_v28  ;;  %v460_v56 = vrot.slane %v452_v47, %v8391_v28  ;;  %v5324_v27 = vld [vmem:[#allocation16] ss:$0 sm:$0xff]  ;;  %v8537_v45 = vld [vmem:[#allocation19] ss:$0 sm:$0xff]  ;;  %p7875_p2 = pnand %p7874_p1, %p7868_p12 }
 0x1b9   :  { %v8408_v55 = vcombine.low %v412_v42, %v444_v46  ;;  %v8411_v57 = vcombine.high %v412_v42, %v444_v46  ;;  %v467_v58 = vrot.slane %v453_v49, %v8391_v28  ;;  %v8422_v62 = vpack.c.bf16 %v850_v52, %v849_v51 }
 0x1ba   :  { %v8414_v59 = vcombine.low %v419_v48, %v451_v53  ;;  %v8418_v60 = vcombine.low %v428_v50, %v460_v56  ;;  %v8420_v61 = vcombine.high %v428_v50, %v460_v56  ;;  %v8428_v0 = vcombine.high %v419_v48, %v451_v53 }
 0x1bb   :  { %5890 = vmatprep.mubr.msk.f32.mxu0 %vm487_vm0, %v8408_v55  ;;  %v8424_v63 = vcombine.low %v435_v54, %v467_v58  ;;  %v8437_v3 = vcombine.high %v435_v54, %v467_v58  ;;  %v8442_v6 = vpack.c.bf16 %v852_v2, %v851_v1  ;;  %v6766_v9 = vpack.c.bf16 %v734_v5, %v733_v4 }
 0x1bc   :  { %5891 = vmatmul.mubr.msk.f32.vlgmr.msra.gmra.mrb[0].mxu0 %vm487_vm0, %v8411_v57  ;;  %5916 = vmatprep.mubr.msk.f32.mxu1 %vm487_vm0, %v8418_v60  ;;  %v8456_v11 = vpack.c.bf16 %v854_v8, %v853_v7  ;;  %v6770_v17 = vpack.c.bf16 %v736_v16, %v735_v15  ;;  %v8499_v24 = vpack.c.bf16 %v860_v23, %v859_v22 }
 0x1bd   :  { %6761 = vmatpush3.bf16.msra.mxu0 %v8380_v14  ;;  %5917 = vmatmul.mubr.msk.f32.vlgmr.msra.gmra.mrb[0].mxu1 %vm487_vm0, %v8420_v61  ;;  %v8465_v14 = vpack.c.bf16 %v856_v13, %v855_v12  ;;  %v5333_v12 = vld [vmem:[#allocation17] ss:$0 sm:$0xff] }
 0x1be   :  { %5893 = vmatprep.mubr.msk.f32.mxu0 %vm487_vm0, %v8414_v59  ;;  %6776 = vmatpush3.bf16.msra.mxu1 %v8422_v62 }
 0x1bf   :  { %5919 = vmatprep.mubr.msk.f32.mxu1 %vm487_vm0, %v8424_v63  ;;  %6777 = vmatprep.subr.bf16.mxu1 %v7934_v40 }
 0x1c0   :  { %5894 = vmatmul.mubr.msk.f32.gmra.mrb[2].mxu0 %vm487_vm0, %v8428_v0  ;;  %6763 = vmatprep.subr.bf16.mxu0 %v8382_v18 }
 0x1c1   :  { %5896 = vmatprep.mubr.msk.f32.mxu0 %vm487_vm0, %v8418_v60  ;;  %5920 = vmatmul.mubr.msk.f32.gmra.mrb[2].mxu1 %vm487_vm0, %v8437_v3 }
 0x1c2   :  { %6765 = vmatpush3.bf16.msra.mxu0 %v8382_v18  ;;  %6779 = vmatpush3.bf16.msra.mxu1 %v8442_v6  ;;  %v857_v18 = vld [vmem:[#allocation13] sm:$0xff] }
 0x1c3   :  { %5950 = vmatprep.mubr.msk.f32.mxu1 %vm7935_vm1, %v7936_v10  ;;  %6780 = vmatprep.subr.bf16.mxu1 %v7934_v40  ;;  %v8489_v21 = vpack.c.bf16 %v858_v20, %v857_v18 }
 0x1c4   :  { %5897 = vmatmul.mubr.msk.f32.gmra.mrb[4].mxu0 %vm487_vm0, %v8420_v61  ;;  %6767 = vmatprep.subr.bf16.mxu0 %v6766_v9 }
 0x1c5   :  { %5899 = vmatprep.mubr.msk.f32.mxu0 %vm487_vm0, %v8424_v63  ;;  %5951 = vmatmul.mubr.f32.vlgmr.msra.gmra.mrb[4].mxu1 %v7936_v10 }
 0x1c6   :  { %6782 = vmatpush3.bf16.msra.mxu1 %v8456_v11  ;;  %5961 = vmatprep.mubr.msk.f32.mxu1 %vm7935_vm1, %v7936_v10 }
 0x1c7   :  { %6783 = vmatprep.subr.bf16.mxu1 %v7934_v40 }
 0x1c8   :  { %5900 = vmatmul.mubr.msk.f32.gmra.mrb[6].mxu0 %vm487_vm0, %v8437_v3 }
 0x1c9   :  { %5910 = vmatprep.mubr.msk.f32.mxu0 %vm487_vm0, %v8408_v55 }
 0x1ca   :  { %6785 = vmatpush3.bf16.msra.mxu1 %v8465_v14 }
 0x1cb   :  { %6792 = vmatprep.subr.bf16.mxu1 %v7934_v40 }
 0x1cc   :  { %5911 = vmatmul.mubr.msk.f32.vlgmr.msra.gmra.mrb[8].mxu0 %vm487_vm0, %v8411_v57 }
 0x1cd   :  { %6769 = vmatpush3.bf16.msra.mxu0 %v6766_v9  ;;  %5913 = vmatprep.mubr.msk.f32.mxu0 %vm487_vm0, %v8414_v59 }
 0x1ce   :  { %5962 = vmatmul.mubr.f32.vlgmr.msra.gmra.mrb[6].mxu1 %v7936_v10  ;;  %6771 = vmatprep.subr.bf16.mxu0 %v6770_v17 }
 0x1cf   :  { %6794 = vmatpush3.bf16.msra.mxu1 %v8422_v62  ;;  %5983 = vmatprep.mubr.msk.f32.mxu1 %vm7935_vm1, %v7936_v10 }
 0x1d0   :  { %5914 = vmatmul.mubr.msk.f32.gmra.mrb[10].mxu0 %vm487_vm0, %v8428_v0  ;;  %6795 = vmatprep.subr.bf16.mxu1 %v7934_v40 }
 0x1d1   :  { %6773 = vmatpush3.bf16.msra.mxu0 %v6770_v17  ;;  %5930 = vmatprep.mubr.msk.f32.mxu0 %vm487_vm0, %v8408_v55 }
 0x1d2   :  { %6786 = vmatprep.subr.bf16.mxu0 %v7934_v40 }
 0x1d3   :  { %6797 = vmatpush3.bf16.msra.mxu1 %v8442_v6 }
 0x1d4   :  { %5931 = vmatmul.mubr.msk.f32.vlgmr.msra.gmra.mrb[12].mxu0 %vm487_vm0, %v8411_v57  ;;  %6804 = vmatprep.subr.bf16.mxu1 %v7934_v40 }
 0x1d5   :  { %6788 = vmatpush3.bf16.msra.mxu0 %v8489_v21  ;;  %5933 = vmatprep.mubr.msk.f32.mxu0 %vm487_vm0, %v8414_v59 }
 0x1d6   :  { %6789 = vmatprep.subr.bf16.mxu0 %v7934_v40 }
 0x1d8   :  { %5934 = vmatmul.mubr.msk.f32.gmra.mrb[14].mxu0 %vm487_vm0, %v8428_v0 }
 0x1d9   :  { %5936 = vmatprep.mubr.msk.f32.mxu0 %vm487_vm0, %v8418_v60  ;;  %6791 = vmatpush3.bf16.msra.mxu0 %v8499_v24  ;;  %v8548_v60 = vld [vmem:[#allocation20] ss:$0 sm:$0xff] }
 0x1da   :  { %6798 = vmatprep.subr.bf16.mxu0 %v7934_v40 }
 0x1dc   :  { %5937 = vmatmul.mubr.msk.f32.gmra.mrb[16].mxu0 %vm487_vm0, %v8420_v61 }
 0x1dd   :  { %5939 = vmatprep.mubr.msk.f32.mxu0 %vm487_vm0, %v8424_v63 }
 0x1e0   :  { %5940 = vmatmul.mubr.msk.f32.gmra.mrb[18].mxu0 %vm487_vm0, %v8437_v3 }
 0x1e1   :  { %5972 = vmatprep.mubr.msk.f32.mxu0 %vm7935_vm1, %v7936_v10 }
 0x1e4   :  { %5973 = vmatmul.mubr.f32.vlgmr.msra.gmra.mrb[20].mxu0 %v7936_v10 }
 0x1e5   :  { %6800 = vmatpush3.bf16.msra.mxu0 %v8456_v11  ;;  %5994 = vmatprep.mubr.msk.f32.mxu0 %vm7935_vm1, %v7936_v10 }
 0x1e6   :  { %6801 = vmatprep.subr.bf16.mxu0 %v7934_v40 }
 0x1e9   :  { %6803 = vmatpush3.bf16.msra.mxu0 %v8465_v14 }
 0x1ea   :  { %6810 = vmatprep.subr.bf16.mxu0 %v7934_v40 }
 0x28f   :  { %v5892_v26 = vpop.f32.mrb[0].mxu0 }
 0x290   :  { %v8523_v29 = vadd.f32 %v5892_v26, %v5315_v25  ;;  %v578_v30 = vpop.f32.mrb[1].mxu0  ;;  %v5918_v31 = vpop.f32.mrb[0].mxu1 }
 0x291   :  { %v8525_v32 = vadd.f32 %v5918_v31, %v5324_v27  ;;  %v714_v33 = vpop.f32.mrb[1].mxu1  ;;  %v579_v50 = vadd.f32 %v5315_v25, %v578_v30 }
 0x292   :  { %v8527_v35 = vadd.f32 %v5324_v27, %v714_v33 }
 0x293   :  { %v5895_v34 = vpop.f32.mrb[2].mxu0 }
 0x294   :  { %v8529_v36 = vadd.f32 %v5895_v34, %v5315_v25  ;;  %v588_v37 = vpop.f32.mrb[3].mxu0  ;;  %v5921_v39 = vpop.f32.mrb[2].mxu1 }
 0x295   :  { %v8531_v38 = vadd.f32 %v5315_v25, %v588_v37  ;;  %v8533_v41 = vadd.f32 %v5921_v39, %v5324_v27  ;;  %v724_v42 = vpop.f32.mrb[3].mxu1 }
 0x296   :  { %v8535_v43 = vadd.f32 %v5324_v27, %v724_v42 }
 0x297   :  { %v5898_v44 = vpop.f32.mrb[4].mxu0 }
 0x298   :  { %v8539_v46 = vadd.f32 %v5898_v44, %v5315_v25  ;;  %v598_v47 = vpop.f32.mrb[5].mxu0  ;;  %v951_v48 = vpop.f32.mrb[4].mxu1 }
 0x299   :  { %v8541_v49 = vadd.f32 %v5315_v25, %v598_v47  ;;  %v952_v51 = vadd.f32 %v8537_v45, %v951_v48  ;;  %v5952_v52 = vpop.f32.mrb[5].mxu1  ;;  %v8571_v47 = vld [vmem:[#allocation22] ss:$0 sm:$0xff] }
 0x29b   :  { %v5901_v53 = vpop.f32.mrb[6].mxu0  ;;  %v1095_v54 = vadd.f32 %v952_v51, %v579_v50 }
 0x29c   :  { %v8544_v55 = vadd.f32 %v5901_v53, %v5315_v25  ;;  %v608_v56 = vpop.f32.mrb[7].mxu0 }
 0x29d   :  { %v8546_v57 = vadd.f32 %v5315_v25, %v608_v56  ;;  %v5345_v58 = vmul.f32 -1.442695, %v1095_v54 }
 0x29f   :  { %v5912_v59 = vpop.f32.mrb[8].mxu0  ;;  %7289 = vpow2.f32 %v5345_v58 }
 0x2a0   :  { %v8550_v61 = vadd.f32 %v5912_v59, %v5324_v27  ;;  %v694_v63 = vpop.f32.mrb[9].mxu0 }
 0x2a1   :  { %v695_v0 = vadd.f32 %v5324_v27, %v694_v63  ;;  %v1021_v1 = vpop.f32.mrb[6].mxu1 }
 0x2a2   :  { %v1022_v2 = vadd.f32 %v8548_v60, %v1021_v1  ;;  %v5963_v3 = vpop.f32.mrb[7].mxu1 }
 0x2a3   :  { %v5915_v4 = vpop.f32.mrb[10].mxu0 }
 0x2a4   :  { %v1102_v5 = vadd.f32 %v1022_v2, %v695_v0  ;;  %v8553_v7 = vadd.f32 %v5915_v4, %v5324_v27  ;;  %v704_v8 = vpop.f32.mrb[11].mxu0 }
 0x2a5   :  { %v8555_v9 = vadd.f32 %v5324_v27, %v704_v8 }
 0x2a6   :  { %v5346_v13 = vmul.f32 -1.442695, %v1102_v5 }
 0x2a7   :  { %v5932_v15 = vpop.f32.mrb[12].mxu0 }
 0x2a8   :  { %v8557_v16 = vadd.f32 %v5932_v15, %v5333_v12  ;;  %v810_v17 = vpop.f32.mrb[13].mxu0  ;;  %7291 = vpow2.f32 %v5346_v13 }
 0x2a9   :  { %v7290_v18 = vpop.eup %7289  ;;  %v811_v54 = vadd.f32 %v5333_v12, %v810_v17 }
 0x2aa   :  { %v1099_v20 = vadd.f32 1.0, %v7290_v18 }
 0x2ab   :  { %v5935_v22 = vpop.f32.mrb[14].mxu0 }
 0x2ac   :  { %v8559_v23 = vadd.f32 %v5935_v22, %v5333_v12  ;;  %v820_v25 = vpop.f32.mrb[15].mxu0  ;;  %7293 = vrcp.f32 %v1099_v20 }
 0x2ad   :  { %v8561_v26 = vadd.f32 %v5333_v12, %v820_v25 }
 0x2af   :  { %v5938_v30 = vpop.f32.mrb[16].mxu0 }
 0x2b0   :  { %v8563_v31 = vadd.f32 %v5938_v30, %v5333_v12  ;;  %v830_v27 = vpop.f32.mrb[17].mxu0 }
 0x2b1   :  { %v8565_v33 = vadd.f32 %v5333_v12, %v830_v27 }
 0x2b2   :  { %v7292_v34 = vpop.eup %7291 }
 0x2b3   :  { %v5941_v37 = vpop.f32.mrb[18].mxu0  ;;  %v1106_v48 = vadd.f32 1.0, %v7292_v34 }
 0x2b4   :  { %v8567_v39 = vadd.f32 %v5941_v37, %v5333_v12  ;;  %v840_v42 = vpop.f32.mrb[19].mxu0 }
 0x2b5   :  { %v8569_v44 = vadd.f32 %v5333_v12, %v840_v42  ;;  %7295 = vrcp.f32 %v1106_v48 }
 0x2b6   :  { %v7294_v53 = vpop.eup %7293 }
 0x2b7   :  { %v1091_v50 = vpop.f32.mrb[20].mxu0 }
 0x2b8   :  { %v1092_v51 = vadd.f32 %v8571_v47, %v1091_v50  ;;  %v5974_v52 = vpop.f32.mrb[21].mxu0 }
 0x2ba   :  { %v1109_v56 = vmul.f32 %v7294_v53, %v1092_v51 }
 0x2bc   :  { %v1110_v58 = vadd.f32 %v1109_v56, %v811_v54 }
 0x2be   :  { %7297 = vtanh.f32 %v1110_v58 }
 0x2bf   :  { %v7296_v59 = vpop.eup %7295 }
 0x2c0   :  { %v1112_v63 = vsub.f32 1.0, %v7296_v59  ;;  %v1114_v1 = vmul.f32 0.0, %v7296_v59 }
 0x2c8   :  { %v7298_v0 = vpop.eup %7297 }
 0x2c9   :  { %v1113_v2 = vmul.f32 %v7298_v0, %v1112_v63 }
 0x2cb   :  { %v8574_v3 = vadd.f32 %v1114_v1, %v1113_v2 }
 0x2cd   :  { %5984 = vmatmul.mubr.msk.f32.vlgmr.msra.gmra.mrb[8].mxu1 %vm487_vm0, %v8574_v3  ;;  %5995 = vmatmul.mubr.msk.f32.vlgmr.msra.gmra.mrb[22].mxu0 %vm487_vm0, %v8574_v3 }
 0x2ce   :  { %6806 = vmatpush3.bf16.msra.mxu1 %v8489_v21  ;;  %6005 = vmatprep.mubr.msk.f32.mxu1 %vm7935_vm1, %v7936_v10 }
 0x2cf   :  { %6807 = vmatprep.subr.bf16.mxu1 %v7934_v40  ;;  %6812 = vmatpush3.bf16.msra.mxu0 %v8422_v62 }
 0x2d0   :  { %6813 = vmatprep.subr.bf16.mxu0 %v7934_v40  ;;  %6016 = vmatprep.mubr.msk.f32.mxu0 %vm7935_vm1, %v7936_v10 }
 0x2d2   :  { %6809 = vmatpush3.bf16.msra.mxu1 %v8499_v24 }
 0x2d3   :  { %6816 = vmatprep.subr.bf16.mxu1 %v7934_v40  ;;  %6815 = vmatpush3.bf16.msra.mxu0 %v8442_v6 }
 0x2d4   :  { %6822 = vmatprep.subr.bf16.mxu0 %v7934_v40 }
 0x2d5   :  { %6006 = vmatmul.mubr.msk.f32.vlgmr.msra.gmra.mrb[10].mxu1 %vm487_vm0, %v8574_v3 }
 0x2d6   :  { %6818 = vmatpush3.bf16.msra.mxu1 %v8456_v11  ;;  %6027 = vmatprep.mubr.msk.f32.mxu1 %vm7935_vm1, %v7936_v10 }
 0x2d7   :  { %6819 = vmatprep.subr.bf16.mxu1 %v7934_v40 }
 0x2da   :  { %6821 = vmatpush3.bf16.msra.mxu1 %v8465_v14 }
 0x2db   :  { %6828 = vmatprep.subr.bf16.mxu1 %v7934_v40 }
 0x3a0   :  { %v1185_v4 = vpop.f32.mrb[8].mxu1  ;;  %v1255_v5 = vpop.f32.mrb[22].mxu0 }
 0x3a1   :  { %v1186_v8 = vadd.f32 %v8537_v45, %v1185_v4  ;;  %v1256_v12 = vadd.f32 %v8548_v60, %v1255_v5  ;;  %v5985_v13 = vpop.f32.mrb[9].mxu1  ;;  %v5996_v15 = vpop.f32.mrb[23].mxu0 }
 0x3a3   :  { %v1329_v17 = vadd.f32 %v1186_v8, %v8523_v29  ;;  %v1336_v18 = vadd.f32 %v1256_v12, %v8550_v61 }
 0x3a5   :  { %v5350_v20 = vmul.f32 -1.442695, %v1329_v17  ;;  %v5351_v30 = vmul.f32 -1.442695, %v1336_v18 }
 0x3a7   :  { %7299 = vpow2.f32 %v5350_v20 }
 0x3a8   :  { %v1325_v22 = vpop.f32.mrb[10].mxu1  ;;  %7301 = vpow2.f32 %v5351_v30 }
 0x3a9   :  { %v6007_v25 = vpop.f32.mrb[11].mxu1  ;;  %v1326_v48 = vadd.f32 %v8571_v47, %v1325_v22 }
 0x3b1   :  { %v7300_v27 = vpop.eup %7299 }
 0x3b2   :  { %v1333_v34 = vadd.f32 1.0, %v7300_v27  ;;  %v7302_v37 = vpop.eup %7301 }
 0x3b3   :  { %v1340_v42 = vadd.f32 1.0, %v7302_v37 }
 0x3b4   :  { %7303 = vrcp.f32 %v1333_v34 }
 0x3b5   :  { %7305 = vrcp.f32 %v1340_v42 }
 0x3be   :  { %v7304_v50 = vpop.eup %7303 }
 0x3bf   :  { %v1343_v51 = vmul.f32 %v7304_v50, %v1326_v48  ;;  %v7306_v61 = vpop.eup %7305 }
 0x3c0   :  { %v1346_v52 = vsub.f32 1.0, %v7306_v61  ;;  %v1348_v54 = vmul.f32 %v7306_v61, %v8574_v3 }
 0x3c1   :  { %v1344_v29 = vadd.f32 %v1343_v51, %v8557_v16 }
 0x3c3   :  { %7307 = vtanh.f32 %v1344_v29 }
 0x3cd   :  { %v7308_v53 = vpop.eup %7307 }
 0x3ce   :  { %v1347_v56 = vmul.f32 %v7308_v53, %v1346_v52 }
 0x3d0   :  { %v8607_v58 = vadd.f32 %v1348_v54, %v1347_v56 }
 0x3d2   :  { %6017 = vmatmul.mubr.msk.f32.vlgmr.msra.gmra.mrb[24].mxu0 %vm487_vm0, %v8607_v58  ;;  %6028 = vmatmul.mubr.msk.f32.vlgmr.msra.gmra.mrb[12].mxu1 %vm487_vm0, %v8607_v58 }
 0x3d3   :  { %6824 = vmatpush3.bf16.msra.mxu0 %v8489_v21  ;;  %6038 = vmatprep.mubr.msk.f32.mxu0 %vm7935_vm1, %v7936_v10 }
 0x3d4   :  { %6825 = vmatprep.subr.bf16.mxu0 %v7934_v40  ;;  %6830 = vmatpush3.bf16.msra.mxu1 %v8422_v62 }
 0x3d5   :  { %6831 = vmatprep.subr.bf16.mxu1 %v7934_v40  ;;  %6049 = vmatprep.mubr.msk.f32.mxu1 %vm7935_vm1, %v7936_v10 }
 0x3d7   :  { %6827 = vmatpush3.bf16.msra.mxu0 %v8499_v24 }
 0x3d8   :  { %6834 = vmatprep.subr.bf16.mxu0 %v7934_v40  ;;  %6833 = vmatpush3.bf16.msra.mxu1 %v8442_v6 }
 0x3d9   :  { %6840 = vmatprep.subr.bf16.mxu1 %v7934_v40 }
 0x3da   :  { %6039 = vmatmul.mubr.msk.f32.vlgmr.msra.gmra.mrb[26].mxu0 %vm487_vm0, %v8607_v58 }
 0x3db   :  { %6836 = vmatpush3.bf16.msra.mxu0 %v8456_v11  ;;  %6060 = vmatprep.mubr.msk.f32.mxu0 %vm7935_vm1, %v7936_v10 }
 0x3dc   :  { %6837 = vmatprep.subr.bf16.mxu0 %v7934_v40 }
 0x3df   :  { %6839 = vmatpush3.bf16.msra.mxu0 %v8465_v14 }
 0x3e0   :  { %6846 = vmatprep.subr.bf16.mxu0 %v7934_v40 }
 0x4a5   :  { %v1419_v16 = vpop.f32.mrb[24].mxu0  ;;  %v1489_v59 = vpop.f32.mrb[12].mxu1 }
 0x4a6   :  { %v1420_v63 = vadd.f32 %v8537_v45, %v1419_v16  ;;  %v1490_v0 = vadd.f32 %v8548_v60, %v1489_v59  ;;  %v6018_v1 = vpop.f32.mrb[25].mxu0  ;;  %v6029_v2 = vpop.f32.mrb[13].mxu1 }
 0x4a8   :  { %v1563_v4 = vadd.f32 %v1420_v63, %v8531_v38  ;;  %v1570_v5 = vadd.f32 %v1490_v0, %v8555_v9 }
 0x4aa   :  { %v5355_v8 = vmul.f32 -1.442695, %v1563_v4  ;;  %v5356_v15 = vmul.f32 -1.442695, %v1570_v5 }
 0x4ac   :  { %7309 = vpow2.f32 %v5355_v8 }
 0x4ad   :  { %v1559_v12 = vpop.f32.mrb[26].mxu0  ;;  %7311 = vpow2.f32 %v5356_v15 }
 0x4ae   :  { %v6040_v13 = vpop.f32.mrb[27].mxu0  ;;  %v1560_v25 = vadd.f32 %v8571_v47, %v1559_v12 }
 0x4b6   :  { %v7310_v17 = vpop.eup %7309 }
 0x4b7   :  { %v1567_v18 = vadd.f32 1.0, %v7310_v17  ;;  %v7312_v20 = vpop.eup %7311 }
 0x4b8   :  { %v1574_v22 = vadd.f32 1.0, %v7312_v20 }
 0x4b9   :  { %7313 = vrcp.f32 %v1567_v18 }
 0x4ba   :  { %7315 = vrcp.f32 %v1574_v22 }
 0x4c3   :  { %v7314_v30 = vpop.eup %7313 }
 0x4c4   :  { %v1577_v27 = vmul.f32 %v7314_v30, %v1560_v25  ;;  %v7316_v9 = vpop.eup %7315 }
 0x4c5   :  { %v1580_v34 = vsub.f32 1.0, %v7316_v9  ;;  %v1582_v42 = vmul.f32 %v7316_v9, %v8607_v58 }
 0x4c6   :  { %v1578_v38 = vadd.f32 %v1577_v27, %v8561_v26 }
 0x4c8   :  { %7317 = vtanh.f32 %v1578_v38 }
 0x4d2   :  { %v7318_v37 = vpop.eup %7317 }
 0x4d3   :  { %v1581_v48 = vmul.f32 %v7318_v37, %v1580_v34 }
 0x4d5   :  { %v8640_v50 = vadd.f32 %v1582_v42, %v1581_v48 }
 0x4d7   :  { %6050 = vmatmul.mubr.msk.f32.vlgmr.msra.gmra.mrb[14].mxu1 %vm487_vm0, %v8640_v50  ;;  %6061 = vmatmul.mubr.msk.f32.vlgmr.msra.gmra.mrb[28].mxu0 %vm487_vm0, %v8640_v50 }
 0x4d8   :  { %6842 = vmatpush3.bf16.msra.mxu1 %v8489_v21  ;;  %6071 = vmatprep.mubr.msk.f32.mxu1 %vm7935_vm1, %v7936_v10 }
 0x4d9   :  { %6843 = vmatprep.subr.bf16.mxu1 %v7934_v40  ;;  %6848 = vmatpush3.bf16.msra.mxu0 %v8422_v62 }
 0x4da   :  { %6849 = vmatprep.subr.bf16.mxu0 %v7934_v40  ;;  %6082 = vmatprep.mubr.msk.f32.mxu0 %vm7935_vm1, %v7936_v10 }
 0x4dc   :  { %6845 = vmatpush3.bf16.msra.mxu1 %v8499_v24 }
 0x4dd   :  { %6852 = vmatprep.subr.bf16.mxu1 %v7934_v40  ;;  %6851 = vmatpush3.bf16.msra.mxu0 %v8442_v6 }
 0x4de   :  { %6858 = vmatprep.subr.bf16.mxu0 %v7934_v40 }
 0x4df   :  { %6072 = vmatmul.mubr.msk.f32.vlgmr.msra.gmra.mrb[16].mxu1 %vm487_vm0, %v8640_v50 }
 0x4e0   :  { %6854 = vmatpush3.bf16.msra.mxu1 %v8456_v11  ;;  %6093 = vmatprep.mubr.msk.f32.mxu1 %vm7935_vm1, %v7936_v10 }
 0x4e1   :  { %6855 = vmatprep.subr.bf16.mxu1 %v7934_v40 }
 0x4e4   :  { %6857 = vmatpush3.bf16.msra.mxu1 %v8465_v14 }
 0x4e5   :  { %6864 = vmatprep.subr.bf16.mxu1 %v7934_v40 }
 0x5aa   :  { %v1653_v26 = vpop.f32.mrb[14].mxu1  ;;  %v1723_v51 = vpop.f32.mrb[28].mxu0 }
 0x5ab   :  { %v1654_v29 = vadd.f32 %v8537_v45, %v1653_v26  ;;  %v1724_v61 = vadd.f32 %v8548_v60, %v1723_v51  ;;  %v6051_v52 = vpop.f32.mrb[15].mxu1  ;;  %v6062_v53 = vpop.f32.mrb[29].mxu0 }
 0x5ad   :  { %v1797_v54 = vadd.f32 %v1654_v29, %v8529_v36  ;;  %v1804_v56 = vadd.f32 %v1724_v61, %v8553_v7 }
 0x5af   :  { %v5360_v16 = vmul.f32 -1.442695, %v1797_v54  ;;  %v5361_v0 = vmul.f32 -1.442695, %v1804_v56 }
 0x5b1   :  { %7319 = vpow2.f32 %v5360_v16 }
 0x5b2   :  { %v1793_v59 = vpop.f32.mrb[16].mxu1  ;;  %7321 = vpow2.f32 %v5361_v0 }
 0x5b3   :  { %v6073_v63 = vpop.f32.mrb[17].mxu1  ;;  %v1794_v8 = vadd.f32 %v8571_v47, %v1793_v59 }
 0x5bb   :  { %v7320_v1 = vpop.eup %7319 }
 0x5bc   :  { %v1801_v2 = vadd.f32 1.0, %v7320_v1  ;;  %v7322_v4 = vpop.eup %7321 }
 0x5bd   :  { %v1808_v5 = vadd.f32 1.0, %v7322_v4 }
 0x5be   :  { %7323 = vrcp.f32 %v1801_v2 }
 0x5bf   :  { %7325 = vrcp.f32 %v1808_v5 }
 0x5c8   :  { %v7324_v12 = vpop.eup %7323 }
 0x5c9   :  { %v1811_v13 = vmul.f32 %v7324_v12, %v1794_v8  ;;  %v7326_v7 = vpop.eup %7325 }
 0x5ca   :  { %v1814_v15 = vsub.f32 1.0, %v7326_v7  ;;  %v1816_v18 = vmul.f32 %v7326_v7, %v8640_v50 }
 0x5cb   :  { %v1812_v36 = vadd.f32 %v1811_v13, %v8559_v23 }
 0x5cd   :  { %7327 = vtanh.f32 %v1812_v36 }
 0x5d7   :  { %v7328_v17 = vpop.eup %7327 }
 0x5d8   :  { %v1815_v20 = vmul.f32 %v7328_v17, %v1814_v15 }
 0x5da   :  { %v8673_v22 = vadd.f32 %v1816_v18, %v1815_v20 }
 0x5dc   :  { %6083 = vmatmul.mubr.msk.f32.vlgmr.msra.gmra.mrb[30].mxu0 %vm487_vm0, %v8673_v22  ;;  %6094 = vmatmul.mubr.msk.f32.vlgmr.msra.gmra.mrb[18].mxu1 %vm487_vm0, %v8673_v22 }
 0x5dd   :  { %6860 = vmatpush3.bf16.msra.mxu0 %v8489_v21  ;;  %6104 = vmatprep.mubr.msk.f32.mxu0 %vm7935_vm1, %v7936_v10 }
 0x5de   :  { %6861 = vmatprep.subr.bf16.mxu0 %v7934_v40  ;;  %6866 = vmatpush3.bf16.msra.mxu1 %v8422_v62 }
 0x5df   :  { %6867 = vmatprep.subr.bf16.mxu1 %v7934_v40  ;;  %6115 = vmatprep.mubr.msk.f32.mxu1 %vm7935_vm1, %v7936_v10 }
 0x5e1   :  { %6863 = vmatpush3.bf16.msra.mxu0 %v8499_v24 }
 0x5e2   :  { %6870 = vmatprep.subr.bf16.mxu0 %v7934_v40  ;;  %6869 = vmatpush3.bf16.msra.mxu1 %v8442_v6 }
 0x5e3   :  { %6876 = vmatprep.subr.bf16.mxu1 %v7934_v40 }
 0x5e4   :  { %6105 = vmatmul.mubr.msk.f32.vlgmr.msra.gmra.mrb[32].mxu0 %vm487_vm0, %v8673_v22 }
 0x5e5   :  { %6872 = vmatpush3.bf16.msra.mxu0 %v8456_v11  ;;  %6126 = vmatprep.mubr.msk.f32.mxu0 %vm7935_vm1, %v7936_v10 }
 0x5e6   :  { %6873 = vmatprep.subr.bf16.mxu0 %v7934_v40 }
 0x5e9   :  { %6875 = vmatpush3.bf16.msra.mxu0 %v8465_v14 }
 0x5ea   :  { %6882 = vmatprep.subr.bf16.mxu0 %v7934_v40 }
 0x6af   :  { %v1887_v23 = vpop.f32.mrb[30].mxu0  ;;  %v1957_v25 = vpop.f32.mrb[18].mxu1 }
 0x6b0   :  { %v1888_v30 = vadd.f32 %v8537_v45, %v1887_v23  ;;  %v1958_v27 = vadd.f32 %v8548_v60, %v1957_v25  ;;  %v6084_v38 = vpop.f32.mrb[31].mxu0  ;;  %v6095_v9 = vpop.f32.mrb[19].mxu1 }
 0x6b2   :  { %v2031_v34 = vadd.f32 %v1888_v30, %v8541_v49  ;;  %v2038_v37 = vadd.f32 %v1958_v27, %v8527_v35 }
 0x6b4   :  { %v5365_v42 = vmul.f32 -1.442695, %v2031_v34  ;;  %v5366_v51 = vmul.f32 -1.442695, %v2038_v37 }
 0x6b6   :  { %7329 = vpow2.f32 %v5365_v42 }
 0x6b7   :  { %v2027_v48 = vpop.f32.mrb[32].mxu0  ;;  %7331 = vpow2.f32 %v5366_v51 }
 0x6b8   :  { %v6106_v26 = vpop.f32.mrb[33].mxu0  ;;  %v2028_v54 = vadd.f32 %v8571_v47, %v2027_v48 }
 0x6c0   :  { %v7330_v29 = vpop.eup %7329 }
 0x6c1   :  { %v2035_v61 = vadd.f32 1.0, %v7330_v29  ;;  %v7332_v52 = vpop.eup %7331 }
 0x6c2   :  { %v2042_v53 = vadd.f32 1.0, %v7332_v52 }
 0x6c3   :  { %7333 = vrcp.f32 %v2035_v61 }
 0x6c4   :  { %7335 = vrcp.f32 %v2042_v53 }
 0x6cd   :  { %v7334_v56 = vpop.eup %7333 }
 0x6ce   :  { %v2045_v16 = vmul.f32 %v7334_v56, %v2028_v54  ;;  %v7336_v35 = vpop.eup %7335 }
 0x6cf   :  { %v2048_v59 = vsub.f32 1.0, %v7336_v35  ;;  %v2050_v0 = vmul.f32 %v7336_v35, %v8673_v22 }
 0x6d0   :  { %v2046_v49 = vadd.f32 %v2045_v16, %v8565_v33 }
 0x6d2   :  { %7337 = vtanh.f32 %v2046_v49 }
 0x6dc   :  { %v7338_v63 = vpop.eup %7337 }
 0x6dd   :  { %v2049_v1 = vmul.f32 %v7338_v63, %v2048_v59 }
 0x6df   :  { %v8706_v2 = vadd.f32 %v2050_v0, %v2049_v1 }
 0x6e1   :  { %6116 = vmatmul.mubr.msk.f32.vlgmr.msra.gmra.mrb[20].mxu1 %vm487_vm0, %v8706_v2  ;;  %6127 = vmatmul.mubr.msk.f32.vlgmr.msra.gmra.mrb[34].mxu0 %vm487_vm0, %v8706_v2 }
 0x6e2   :  { %6878 = vmatpush3.bf16.msra.mxu1 %v8489_v21  ;;  %6137 = vmatprep.mubr.msk.f32.mxu1 %vm7935_vm1, %v7936_v10 }
 0x6e3   :  { %6879 = vmatprep.subr.bf16.mxu1 %v7934_v40  ;;  %6884 = vmatpush3.bf16.msra.mxu0 %v8422_v62 }
 0x6e4   :  { %6885 = vmatprep.subr.bf16.mxu0 %v7934_v40  ;;  %6148 = vmatprep.mubr.msk.f32.mxu0 %vm7935_vm1, %v7936_v10 }
 0x6e6   :  { %6881 = vmatpush3.bf16.msra.mxu1 %v8499_v24 }
 0x6e7   :  { %6888 = vmatprep.subr.bf16.mxu1 %v7934_v40  ;;  %6887 = vmatpush3.bf16.msra.mxu0 %v8442_v6 }
 0x6e8   :  { %6894 = vmatprep.subr.bf16.mxu0 %v7934_v40 }
 0x6e9   :  { %6138 = vmatmul.mubr.msk.f32.vlgmr.msra.gmra.mrb[22].mxu1 %vm487_vm0, %v8706_v2 }
 0x6ea   :  { %6890 = vmatpush3.bf16.msra.mxu1 %v8456_v11  ;;  %6159 = vmatprep.mubr.msk.f32.mxu1 %vm7935_vm1, %v7936_v10 }
 0x6eb   :  { %6891 = vmatprep.subr.bf16.mxu1 %v7934_v40 }
 0x6ee   :  { %6893 = vmatpush3.bf16.msra.mxu1 %v8465_v14 }
 0x6ef   :  { %6900 = vmatprep.subr.bf16.mxu1 %v7934_v40 }
 0x7b4   :  { %v2121_v33 = vpop.f32.mrb[20].mxu1  ;;  %v2191_v4 = vpop.f32.mrb[34].mxu0 }
 0x7b5   :  { %v2122_v5 = vadd.f32 %v8537_v45, %v2121_v33  ;;  %v2192_v8 = vadd.f32 %v8548_v60, %v2191_v4  ;;  %v6117_v12 = vpop.f32.mrb[21].mxu1  ;;  %v6128_v13 = vpop.f32.mrb[35].mxu0 }
 0x7b7   :  { %v2265_v36 = vadd.f32 %v2122_v5, %v8539_v46  ;;  %v2272_v7 = vadd.f32 %v2192_v8, %v8525_v32 }
 0x7b9   :  { %v5370_v15 = vmul.f32 -1.442695, %v2265_v36  ;;  %v5371_v20 = vmul.f32 -1.442695, %v2272_v7 }
 0x7bb   :  { %7339 = vpow2.f32 %v5370_v15  ;;  %v2756_v15 = vld [vmem:[#allocation23 + $0x10] sm:$0xff] }
 0x7bc   :  { %v2261_v17 = vpop.f32.mrb[22].mxu1  ;;  %7341 = vpow2.f32 %v5371_v20 }
 0x7bd   :  { %v6139_v18 = vpop.f32.mrb[23].mxu1  ;;  %v2262_v38 = vadd.f32 %v8571_v47, %v2261_v17  ;;  %v2757_v17 = vld [vmem:[#allocation23 + $0x18] sm:$0xff] }
 0x7be   :  { %v6922_v20 = vpack.c.bf16 %v2757_v17, %v2756_v15 }
 0x7c5   :  { %v7340_v23 = vpop.eup %7339 }
 0x7c6   :  { %v2269_v25 = vadd.f32 1.0, %v7340_v23  ;;  %v7342_v30 = vpop.eup %7341  ;;  %v2873_v23 = vld [vmem:[#allocation25] sm:$0xff] }
 0x7c7   :  { %v2276_v27 = vadd.f32 1.0, %v7342_v30  ;;  %v2875_v30 = vld [vmem:[#allocation25 + $0x10] sm:$0xff] }
 0x7c8   :  { %7343 = vrcp.f32 %v2269_v25  ;;  %v2874_v25 = vld [vmem:[#allocation25 + $0x8] sm:$0xff] }
 0x7c9   :  { %7345 = vrcp.f32 %v2276_v27  ;;  %v2876_v27 = vld [vmem:[#allocation25 + $0x18] sm:$0xff] }
 0x7d2   :  { %v7344_v9 = vpop.eup %7343 }
 0x7d3   :  { %v2279_v34 = vmul.f32 %v7344_v9, %v2262_v38  ;;  %v7346_v32 = vpop.eup %7345  ;;  %v6930_v38 = vpack.c.bf16 %v2876_v27, %v2875_v30  ;;  %v3105_v9 = vld [vmem:[#allocation28] sm:$0xff] }
 0x7d4   :  { %v2282_v37 = vsub.f32 1.0, %v7346_v32  ;;  %v2284_v48 = vmul.f32 %v7346_v32, %v8706_v2  ;;  %v3107_v32 = vld [vmem:[#allocation28 + $0x10] sm:$0xff] }
 0x7d5   :  { %v2280_v46 = vadd.f32 %v2279_v34, %v8563_v31  ;;  %v2755_v31 = vld [vmem:[#allocation23 + $0x8] sm:$0xff] }
 0x7d7   :  { %7347 = vtanh.f32 %v2280_v46  ;;  %v3106_v46 = vld [vmem:[#allocation28 + $0x8] sm:$0xff] }
 0x7e1   :  { %v7348_v42 = vpop.eup %7347 }
 0x7e2   :  { %v2283_v26 = vmul.f32 %v7348_v42, %v2282_v37  ;;  %v3108_v37 = vld [vmem:[#allocation28 + $0x18] sm:$0xff]  ;;  %v8813_v42 = vpack.c.bf16 %v3106_v46, %v3105_v9 }
 0x7e4   :  { %v8739_v51 = vadd.f32 %v2284_v48, %v2283_v26  ;;  %v2991_v48 = vld [vmem:[#allocation26 + $0x10] sm:$0xff]  ;;  %v2992_v26 = vld [vmem:[#allocation26 + $0x18] sm:$0xff] }
 0x7e6   :  { %6149 = vmatmul.mubr.msk.f32.vlgmr.msra.gmra.mrb[36].mxu0 %vm487_vm0, %v8739_v51  ;;  %6160 = vmatmul.mubr.msk.f32.vlgmr.msra.gmra.mrb[24].mxu1 %vm487_vm0, %v8739_v51 }
 0x7e7   :  { %6896 = vmatpush3.bf16.msra.mxu0 %v8489_v21  ;;  %6170 = vmatprep.mubr.msk.f32.mxu0 %vm7935_vm1, %v7936_v10 }
 0x7e8   :  { %6897 = vmatprep.subr.bf16.mxu0 %v7934_v40  ;;  %6902 = vmatpush3.bf16.msra.mxu1 %v8422_v62  ;;  %v2754_v62 = vld [vmem:[#allocation23] sm:$0xff] }
 0x7e9   :  { %6903 = vmatprep.subr.bf16.mxu1 %v7934_v40  ;;  %6181 = vmatprep.mubr.msk.f32.mxu1 %vm7935_vm1, %v7936_v10  ;;  %v6918_v29 = vpack.c.bf16 %v2755_v31, %v2754_v62  ;;  %v6938_v62 = vpack.c.bf16 %v2992_v26, %v2991_v48  ;;  %v8816_v31 = vpack.c.bf16 %v3108_v37, %v3107_v32  ;;  %v3113_v32 = vld [vmem:[%s9393_s17] sm:$0xff]  ;;  %v3121_v37 = vld [vmem:[#allocation29] sm:$0xff]  ;;  %v3122_v48 = vld [vmem:[#allocation29 + $0x8] sm:$0xff] }
 0x7ea   :  { %v3115_v26 = vld [vmem:[%s9393_s17 + $0x10] sm:$0xff] }
 0x7eb   :  { %6899 = vmatpush3.bf16.msra.mxu0 %v8499_v24 }
 0x7ec   :  { %6906 = vmatprep.subr.bf16.mxu0 %v7934_v40  ;;  %6905 = vmatpush3.bf16.msra.mxu1 %v8442_v6 }
 0x7ed   :  { %6912 = vmatprep.subr.bf16.mxu1 %v7934_v40 }
 0x7ee   :  { %6171 = vmatmul.mubr.msk.f32.vlgmr.msra.gmra.mrb[38].mxu0 %vm487_vm0, %v8739_v51 }
 0x7ef   :  { %6908 = vmatpush3.bf16.msra.mxu0 %v8456_v11  ;;  %6192 = vmatprep.mubr.msk.f32.mxu0 %vm7935_vm1, %v7936_v10 }
 0x7f0   :  { %6909 = vmatprep.subr.bf16.mxu0 %v7934_v40 }
 0x7f3   :  { %6911 = vmatpush3.bf16.msra.mxu0 %v8465_v14 }
 0x7f4   :  { %6919 = vmatprep.subr.bf16.mxu0 %v6918_v29 }
 0x8b9   :  { %v2355_v61 = vpop.f32.mrb[36].mxu0  ;;  %v2425_v6 = vpop.f32.mrb[24].mxu1 }
 0x8ba   :  { %v2356_v52 = vadd.f32 %v8537_v45, %v2355_v61  ;;  %v2426_v53 = vadd.f32 %v8548_v60, %v2425_v6  ;;  %v6150_v54 = vpop.f32.mrb[37].mxu0  ;;  %v6161_v56 = vpop.f32.mrb[25].mxu1  ;;  %v3110_v61 = vld [vmem:[#allocation28 + $0x28] sm:$0xff] }
 0x8bc   :  { %v2499_v11 = vadd.f32 %v2356_v52, %v8546_v57  ;;  %v2506_v16 = vadd.f32 %v2426_v53, %v8535_v43  ;;  %v3111_v52 = vld [vmem:[#allocation28 + $0x30] sm:$0xff]  ;;  %v3112_v53 = vld [vmem:[#allocation28 + $0x38] sm:$0xff] }
 0x8bd   :  { %v8826_v54 = vpack.c.bf16 %v3112_v53, %v3111_v52  ;;  %v3124_v52 = vld [vmem:[#allocation29 + $0x18] sm:$0xff] }
 0x8be   :  { %v5375_v49 = vmul.f32 -1.442695, %v2499_v11  ;;  %v5376_v59 = vmul.f32 -1.442695, %v2506_v16  ;;  %v3117_v53 = vld [vmem:[%s9393_s17 + $0x20] sm:$0xff] }
 0x8c0   :  { %7349 = vpow2.f32 %v5375_v49 }
 0x8c1   :  { %v2495_v35 = vpop.f32.mrb[38].mxu0  ;;  %7351 = vpow2.f32 %v5376_v59 }
 0x8c2   :  { %v6172_v14 = vpop.f32.mrb[39].mxu0  ;;  %v2496_v4 = vadd.f32 %v8571_v47, %v2495_v35 }
 0x8ca   :  { %v7350_v63 = vpop.eup %7349 }
 0x8cb   :  { %v2503_v0 = vadd.f32 1.0, %v7350_v63  ;;  %v7352_v1 = vpop.eup %7351 }
 0x8cc   :  { %v2510_v33 = vadd.f32 1.0, %v7352_v1 }
 0x8cd   :  { %7353 = vrcp.f32 %v2503_v0 }
 0x8ce   :  { %7355 = vrcp.f32 %v2510_v33 }
 0x8d7   :  { %v7354_v5 = vpop.eup %7353 }
 0x8d8   :  { %v2513_v8 = vmul.f32 %v7354_v5, %v2496_v4  ;;  %v7356_v43 = vpop.eup %7355 }
 0x8d9   :  { %v2516_v12 = vsub.f32 1.0, %v7356_v43  ;;  %v2518_v36 = vmul.f32 %v7356_v43, %v8739_v51 }
 0x8da   :  { %v2514_v57 = vadd.f32 %v2513_v8, %v8569_v44  ;;  %v6926_v44 = vpack.c.bf16 %v2874_v25, %v2873_v23 }
 0x8dc   :  { %7357 = vtanh.f32 %v2514_v57 }
 0x8e6   :  { %v7358_v13 = vpop.eup %7357 }
 0x8e7   :  { %v2517_v7 = vmul.f32 %v7358_v13, %v2516_v12 }
 0x8e9   :  { %v8771_v18 = vadd.f32 %v2518_v36, %v2517_v7 }
 0x8eb   :  { %6182 = vmatmul.mubr.msk.f32.vlgmr.msra.gmra.mrb[26].mxu1 %vm487_vm0, %v8771_v18  ;;  %6193 = vmatmul.mubr.msk.f32.vlgmr.msra.gmra.mrb[40].mxu0 %vm487_vm0, %v8771_v18 }
 0x8ec   :  { %6914 = vmatpush3.bf16.msra.mxu1 %v8489_v21  ;;  %6921 = vmatpush3.bf16.msra.mxu0 %v6918_v29  ;;  %v2989_v21 = vld [vmem:[#allocation26] sm:$0xff] }
 0x8ed   :  { %6214 = vmatprep.mubr.msk.f32.mxu0 %vm487_vm0, %v8574_v3  ;;  %6915 = vmatprep.subr.bf16.mxu1 %v7934_v40  ;;  %v3109_v29 = vld [vmem:[#allocation28 + $0x20] sm:$0xff] }
 0x8ee   :  { %6923 = vmatprep.subr.bf16.mxu0 %v6922_v20  ;;  %6203 = vmatprep.mubr.msk.f32.mxu1 %vm7935_vm1, %v7936_v10  ;;  %v8820_v6 = vpack.c.bf16 %v3110_v61, %v3109_v29  ;;  %v8881_v29 = vpack.c.bf16 %v3122_v48, %v3121_v37  ;;  %v3123_v61 = vld [vmem:[#allocation29 + $0x10] sm:$0xff] }
 0x8f0   :  { %6917 = vmatpush3.bf16.msra.mxu1 %v8499_v24  ;;  %6925 = vmatpush3.bf16.msra.mxu0 %v6922_v20  ;;  %v2990_v24 = vld [vmem:[#allocation26 + $0x8] sm:$0xff] }
 0x8f1   :  { %6927 = vmatprep.subr.bf16.mxu1 %v6926_v44  ;;  %v6934_v34 = vpack.c.bf16 %v2990_v24, %v2989_v21 }
 0x8f3   :  { %6204 = vmatmul.mubr.msk.f32.vlgmr.msra.gmra.mrb[28].mxu1 %vm487_vm0, %v8771_v18  ;;  %6215 = vmatmul.mubr.msk.f32.vlgmr.msra.gmra.mrb[42].mxu0 %vm487_vm0, %v8607_v58 }
 0x8f4   :  { %6217 = vmatprep.mubr.msk.f32.mxu0 %vm487_vm0, %v8640_v50  ;;  %6929 = vmatpush3.bf16.msra.mxu1 %v6926_v44 }
 0x8f5   :  { %6234 = vmatprep.mubr.msk.f32.mxu1 %vm487_vm0, %v8574_v3  ;;  %6931 = vmatprep.subr.bf16.mxu1 %v6930_v38 }
 0x8f6   :  { %6935 = vmatprep.subr.bf16.mxu0 %v6934_v34 }
 0x8f7   :  { %6218 = vmatmul.mubr.msk.f32.gmra.mrb[44].mxu0 %vm487_vm0, %v8673_v22 }
 0x8f8   :  { %6220 = vmatprep.mubr.msk.f32.mxu0 %vm487_vm0, %v8706_v2  ;;  %6933 = vmatpush3.bf16.msra.mxu1 %v6930_v38 }
 0x8f9   :  { %6942 = vmatprep.subr.bf16.mxu1 %v7934_v40  ;;  %6937 = vmatpush3.bf16.msra.mxu0 %v6934_v34 }
 0x8fa   :  { %6939 = vmatprep.subr.bf16.mxu0 %v6938_v62 }
 0x8fb   :  { %6221 = vmatmul.mubr.msk.f32.gmra.mrb[46].mxu0 %vm487_vm0, %v8739_v51  ;;  %6235 = vmatmul.mubr.msk.f32.vlgmr.msra.gmra.mrb[30].mxu1 %vm487_vm0, %v8607_v58 }
 0x8fc   :  { %6223 = vmatprep.mubr.msk.f32.mxu0 %vm487_vm0, %v8771_v18  ;;  %6237 = vmatprep.mubr.msk.f32.mxu1 %vm487_vm0, %v8640_v50 }
 0x8fd   :  { %6944 = vmatpush3.bf16.msra.mxu1 %v8813_v42  ;;  %6941 = vmatpush3.bf16.msra.mxu0 %v6938_v62  ;;  %v3116_v62 = vld [vmem:[%s9393_s17 + $0x18] sm:$0xff] }
 0x8fe   :  { %6945 = vmatprep.subr.bf16.mxu1 %v7934_v40  ;;  %6954 = vmatprep.subr.bf16.mxu0 %v7934_v40 }
 0x8ff   :  { %6238 = vmatmul.mubr.msk.f32.gmra.mrb[32].mxu1 %vm487_vm0, %v8673_v22 }
 0x900   :  { %6240 = vmatprep.mubr.msk.f32.mxu1 %vm487_vm0, %v8706_v2 }
 0x901   :  { %6947 = vmatpush3.bf16.msra.mxu1 %v8816_v31 }
 0x902   :  { %6948 = vmatprep.subr.bf16.mxu1 %v7934_v40 }
 0x903   :  { %6241 = vmatmul.mubr.msk.f32.gmra.mrb[34].mxu1 %vm487_vm0, %v8739_v51 }
 0x904   :  { %6243 = vmatprep.mubr.msk.f32.mxu1 %vm487_vm0, %v8771_v18 }
 0x905   :  { %6950 = vmatpush3.bf16.msra.mxu1 %v8820_v6 }
 0x906   :  { %6951 = vmatprep.subr.bf16.mxu1 %v7934_v40 }
 0x909   :  { %6953 = vmatpush3.bf16.msra.mxu1 %v8826_v54 }
 0x90a   :  { %6966 = vmatprep.subr.bf16.mxu1 %v7934_v40 }
 0x9be   :  { %v2589_v56 = vpop.f32.mrb[26].mxu1  ;;  %v2659_v11 = vpop.f32.mrb[40].mxu0 }
 0x9bf   :  { %v2590_v16 = vadd.f32 %v8537_v45, %v2589_v56  ;;  %v2660_v49 = vadd.f32 %v8548_v60, %v2659_v11  ;;  %v6183_v35 = vpop.f32.mrb[27].mxu1  ;;  %v6194_v14 = vpop.f32.mrb[41].mxu0  ;;  %v3118_v56 = vld [vmem:[%s9393_s17 + $0x28] sm:$0xff] }
 0x9c0   :  { %v3125_v11 = vld [vmem:[#allocation29 + $0x20] sm:$0xff]  ;;  %v3120_v35 = vld [vmem:[%s9393_s17 + $0x38] sm:$0xff] }
 0x9c1   :  { %v2733_v59 = vadd.f32 %v2590_v16, %v8544_v55  ;;  %v2740_v63 = vadd.f32 %v2660_v49, %v8533_v41  ;;  %v8909_v16 = vpack.c.bf16 %v3118_v56, %v3117_v53  ;;  %v3119_v49 = vld [vmem:[%s9393_s17 + $0x30] sm:$0xff]  ;;  %v3127_v14 = vld [vmem:[#allocation29 + $0x30] sm:$0xff] }
 0x9c2   :  { %v9009_v53 = vld [vmem:[%s9399_s23] ss:$0 sm:$0xff] }
 0x9c3   :  { %v5380_v0 = vmul.f32 -1.442695, %v2733_v59  ;;  %v5381_v8 = vmul.f32 -1.442695, %v2740_v63  ;;  %v8927_v59 = vpack.c.bf16 %v3120_v35, %v3119_v49 }
 0x9c5   :  { %7359 = vpow2.f32 %v5380_v0 }
 0x9c6   :  { %v2729_v1 = vpop.f32.mrb[28].mxu1  ;;  %v8834_v33 = vpop.f32.mrb[42].mxu0  ;;  %7361 = vpow2.f32 %v5381_v8  ;;  %v5400_v8 = vld [vmem:[%s9397_s21] ss:$0 sm:$0xff] }
 0x9c7   :  { %v6205_v4 = vpop.f32.mrb[29].mxu1  ;;  %v8836_v5 = vpop.f32.mrb[43].mxu0  ;;  %v2730_v25 = vadd.f32 %v8571_v47, %v2729_v1  ;;  %v3114_v47 = vld [vmem:[%s9393_s17 + $0x8] sm:$0xff] }
 0x9c8   :  { %v8974_v4 = vld [vmem:[%s9395_s19] ss:$0 sm:$0xff] }
 0x9ca   :  { %v8838_v57 = vpop.f32.mrb[44].mxu0 }
 0x9cb   :  { %v8840_v45 = vpop.f32.mrb[45].mxu0 }
 0x9ce   :  { %v8842_v60 = vpop.f32.mrb[46].mxu0  ;;  %v8844_v43 = vpop.f32.mrb[30].mxu1 }
 0x9cf   :  { %v7360_v55 = vpop.eup %7359  ;;  %v8846_v41 = vpop.f32.mrb[47].mxu0 }
 0x9d0   :  { %v8848_v12 = vpop.f32.mrb[31].mxu1  ;;  %v2737_v13 = vadd.f32 1.0, %v7360_v55  ;;  %v7362_v15 = vpop.eup %7361  ;;  %v8982_v55 = vld [vmem:[%s9398_s22] ss:$0 sm:$0xff] }
 0x9d1   :  { %v2744_v23 = vadd.f32 1.0, %v7362_v15 }
 0x9d2   :  { %7363 = vrcp.f32 %v2737_v13  ;;  %v8850_v36 = vpop.f32.mrb[32].mxu1 }
 0x9d3   :  { %v8852_v7 = vpop.f32.mrb[33].mxu1  ;;  %7365 = vrcp.f32 %v2744_v23  ;;  %v2835_v23 = vadd.f32 %v8974_v4, %v8836_v5 }
 0x9d6   :  { %v8854_v17 = vpop.f32.mrb[34].mxu1 }
 0x9d7   :  { %v8856_v20 = vpop.f32.mrb[35].mxu1 }
 0x9dc   :  { %v7364_v44 = vpop.eup %7363 }
 0x9dd   :  { %v2747_v30 = vmul.f32 %v7364_v44, %v2730_v25  ;;  %v7366_v38 = vpop.eup %7365 }
 0x9de   :  { %v2750_v21 = vsub.f32 1.0, %v7366_v38  ;;  %v2752_v34 = vmul.f32 %v7366_v38, %v8771_v18 }
 0x9df   :  { %v2748_v27 = vadd.f32 %v2747_v30, %v8567_v39  ;;  %v8873_v39 = vpack.c.bf16 %v3114_v47, %v3113_v32 }
 0x9e1   :  { %7367 = vtanh.f32 %v2748_v27 }
 0x9eb   :  { %v7368_v24 = vpop.eup %7367 }
 0x9ec   :  { %v2751_v9 = vmul.f32 %v7368_v24, %v2750_v21 }
 0x9ee   :  { %v2753_v46 = vadd.f32 %v2752_v34, %v2751_v9 }
 0x9f0   :  { %6224 = vmatmul.mubr.msk.f32.gmra.mrb[48].mxu0 %vm487_vm0, %v2753_v46  ;;  %6244 = vmatmul.mubr.msk.f32.gmra.mrb[36].mxu1 %vm487_vm0, %v2753_v46 }
 0x9f1   :  { %6254 = vmatprep.mubr.msk.f32.mxu0 %vm487_vm0, %v8574_v3  ;;  %6282 = vmatprep.mubr.msk.f32.mxu1 %vm7935_vm1, %v7936_v10  ;;  %v8889_v3 = vpack.c.bf16 %v3116_v62, %v3115_v26 }
 0x9f4   :  { %6255 = vmatmul.mubr.msk.f32.vlgmr.msra.gmra.mrb[50].mxu0 %vm487_vm0, %v8607_v58  ;;  %6283 = vmatmul.mubr.f32.vlgmr.msra.gmra.mrb[38].mxu1 %v7936_v10  ;;  %v8899_v58 = vpack.c.bf16 %v3124_v52, %v3123_v61  ;;  %v9002_v61 = vld [vmem:[%s9396_s20] ss:$0 sm:$0xff] }
 0x9f5   :  { %6956 = vmatpush3.bf16.msra.mxu0 %v8873_v39  ;;  %6257 = vmatprep.mubr.msk.f32.mxu0 %vm487_vm0, %v8640_v50  ;;  %v3126_v50 = vld [vmem:[#allocation29 + $0x28] sm:$0xff] }
 0x9f6   :  { %6957 = vmatprep.subr.bf16.mxu0 %v7934_v40  ;;  %6968 = vmatpush3.bf16.msra.mxu1 %v8881_v29 }
 0x9f7   :  { %6969 = vmatprep.subr.bf16.mxu1 %v7934_v40  ;;  %6320 = vmatprep.mubr.msk.f32.mxu1 %vm7935_vm1, %v7936_v10 }
 0x9f8   :  { %6258 = vmatmul.mubr.msk.f32.gmra.mrb[52].mxu0 %vm487_vm0, %v8673_v22  ;;  %v8919_v22 = vpack.c.bf16 %v3126_v50, %v3125_v11  ;;  %v2951_v50 = vadd.f32 %v9002_v61, %v8848_v12 }
 0x9f9   :  { %6959 = vmatpush3.bf16.msra.mxu0 %v8889_v3  ;;  %6260 = vmatprep.mubr.msk.f32.mxu0 %vm487_vm0, %v8706_v2  ;;  %v3128_v2 = vld [vmem:[#allocation29 + $0x38] sm:$0xff] }
 0x9fa   :  { %6960 = vmatprep.subr.bf16.mxu0 %v7934_v40  ;;  %6971 = vmatpush3.bf16.msra.mxu1 %v8899_v58  ;;  %v8931_v63 = vpack.c.bf16 %v3128_v2, %v3127_v14 }
 0x9fb   :  { %6972 = vmatprep.subr.bf16.mxu1 %v7934_v40 }
 0x9fc   :  { %6261 = vmatmul.mubr.msk.f32.gmra.mrb[54].mxu0 %vm487_vm0, %v8739_v51 }
 0x9fd   :  { %6962 = vmatpush3.bf16.msra.mxu0 %v8909_v16  ;;  %6263 = vmatprep.mubr.msk.f32.mxu0 %vm487_vm0, %v8771_v18 }
 0x9fe   :  { %6963 = vmatprep.subr.bf16.mxu0 %v7934_v40  ;;  %6974 = vmatpush3.bf16.msra.mxu1 %v8919_v22 }
 0x9ff   :  { %6975 = vmatprep.subr.bf16.mxu1 %v7934_v40 }
 0xa00   :  { %6264 = vmatmul.mubr.msk.f32.gmra.mrb[56].mxu0 %vm487_vm0, %v2753_v46 }
 0xa01   :  { %6965 = vmatpush3.bf16.msra.mxu0 %v8927_v59  ;;  %6301 = vmatprep.mubr.msk.f32.mxu0 %vm7935_vm1, %v7936_v10 }
 0xa02   :  { %6977 = vmatpush3.bf16.msra.mxu1 %v8931_v63  ;;  %6978 = vmatprep.subr.bf16.mxu0 %v7934_v40 }
 0xa03   :  { %6990 = vmatprep.subr.bf16.mxu1 %v7934_v40 }
 0xa04   :  { %6302 = vmatmul.mubr.f32.vlgmr.msra.gmra.mrb[58].mxu0 %v7936_v10 }
 0xa05   :  { %6321 = vmatmul.mubr.f32.vlgmr.msra.gmra.mrb[40].mxu1 %v7936_v10  ;;  %6980 = vmatpush3.bf16.msra.mxu0 %v8813_v42 }
 0xa06   :  { %6992 = vmatpush3.bf16.msra.mxu1 %v8873_v39  ;;  %6981 = vmatprep.subr.bf16.mxu0 %v7934_v40 }
 0xa07   :  { %6993 = vmatprep.subr.bf16.mxu1 %v7934_v40  ;;  %6339 = vmatprep.mubr.msk.f32.mxu0 %vm7935_vm1, %v7936_v10 }
 0xa08   :  { %6358 = vmatprep.mubr.msk.f32.mxu1 %vm7935_vm1, %v7936_v10 }
 0xa09   :  { %6983 = vmatpush3.bf16.msra.mxu0 %v8816_v31 }
 0xa0a   :  { %6995 = vmatpush3.bf16.msra.mxu1 %v8889_v3  ;;  %6984 = vmatprep.subr.bf16.mxu0 %v7934_v40 }
 0xa0b   :  { %6996 = vmatprep.subr.bf16.mxu1 %v7934_v40 }
 0xa0d   :  { %6986 = vmatpush3.bf16.msra.mxu0 %v8820_v6 }
 0xa0e   :  { %6998 = vmatpush3.bf16.msra.mxu1 %v8909_v16  ;;  %6987 = vmatprep.subr.bf16.mxu0 %v7934_v40 }
 0xa0f   :  { %6999 = vmatprep.subr.bf16.mxu1 %v7934_v40 }
 0xa11   :  { %6989 = vmatpush3.bf16.msra.mxu0 %v8826_v54 }
 0xa12   :  { %7001 = vmatpush3.bf16.msra.mxu1 %v8927_v59  ;;  %7002 = vmatprep.subr.bf16.mxu0 %v7934_v40 }
 0xa13   :  { %7014 = vmatprep.subr.bf16.mxu1 %v7934_v40 }
 0xac3   :  { %v8963_v51 = vpop.f32.mrb[48].mxu0  ;;  %v8965_v18 = vpop.f32.mrb[36].mxu1 }
 0xac4   :  { %v8967_v0 = vpop.f32.mrb[49].mxu0  ;;  %v8969_v1 = vpop.f32.mrb[37].mxu1 }
 0xac7   :  { %v6256_v13 = vpop.f32.mrb[50].mxu0  ;;  %v3219_v15 = vpop.f32.mrb[38].mxu1 }
 0xac8   :  { %v8986_v25 = vadd.f32 %v6256_v13, %v5400_v8  ;;  %v3220_v44 = vadd.f32 %v8982_v55, %v3219_v15  ;;  %v3066_v30 = vpop.f32.mrb[51].mxu0  ;;  %v6284_v27 = vpop.f32.mrb[39].mxu1 }
 0xaca   :  { %v3363_v38 = vadd.f32 %v3220_v44, %v2835_v23  ;;  %v9017_v44 = vld [vmem:[%s9444_s25] ss:$0 sm:$0xff] }
 0xacb   :  { %v6259_v21 = vpop.f32.mrb[52].mxu0 }
 0xacc   :  { %v5412_v24 = vmul.f32 -1.442695, %v3363_v38  ;;  %v8989_v9 = vadd.f32 %v6259_v21, %v5400_v8  ;;  %v3076_v34 = vpop.f32.mrb[53].mxu0  ;;  %v3067_v21 = vadd.f32 %v5400_v8, %v3066_v30 }
 0xacd   :  { %v8991_v46 = vadd.f32 %v5400_v8, %v3076_v34 }
 0xace   :  { %7369 = vpow2.f32 %v5412_v24 }
 0xacf   :  { %v6262_v32 = vpop.f32.mrb[54].mxu0 }
 0xad0   :  { %v8993_v47 = vadd.f32 %v6262_v32, %v5400_v8  ;;  %v3086_v37 = vpop.f32.mrb[55].mxu0 }
 0xad1   :  { %v8995_v5 = vadd.f32 %v5400_v8, %v3086_v37 }
 0xad3   :  { %v6265_v48 = vpop.f32.mrb[56].mxu0 }
 0xad4   :  { %v8997_v26 = vadd.f32 %v6265_v48, %v5400_v8  ;;  %v3096_v62 = vpop.f32.mrb[57].mxu0 }
 0xad5   :  { %v9004_v52 = vadd.f32 %v5400_v8, %v3096_v62 }
 0xad7   :  { %v3289_v56 = vpop.f32.mrb[58].mxu0 }
 0xad8   :  { %v7370_v11 = vpop.eup %7369  ;;  %v3290_v49 = vadd.f32 %v9009_v53, %v3289_v56  ;;  %v6303_v35 = vpop.f32.mrb[59].mxu0 }
 0xad9   :  { %v3359_v14 = vpop.f32.mrb[40].mxu1  ;;  %v3367_v2 = vadd.f32 1.0, %v7370_v11  ;;  %v2956_v35 = vadd.f32 %v8844_v43, %v9002_v61 }
 0xada   :  { %v6322_v13 = vpop.f32.mrb[41].mxu1  ;;  %v3370_v15 = vadd.f32 %v3290_v49, %v2951_v50  ;;  %v3360_v27 = vadd.f32 %v9017_v44, %v3359_v14  ;;  %v2840_v49 = vadd.f32 %v8834_v33, %v8974_v4 }
 0xadb   :  { %7371 = vrcp.f32 %v3367_v2 }
 0xadc   :  { %v5413_v23 = vmul.f32 -1.442695, %v3370_v15 }
 0xade   :  { %7373 = vpow2.f32 %v5413_v23 }
 0xae5   :  { %v7372_v38 = vpop.eup %7371 }
 0xae6   :  { %v3377_v12 = vmul.f32 %v7372_v38, %v3360_v27 }
 0xae8   :  { %v7374_v24 = vpop.eup %7373  ;;  %v3378_v34 = vadd.f32 %v3377_v12, %v3067_v21 }
 0xae9   :  { %v3374_v32 = vadd.f32 1.0, %v7374_v24 }
 0xaeb   :  { %7375 = vrcp.f32 %v3374_v32 }
 0xaec   :  { %7377 = vtanh.f32 %v3378_v34 }
 0xaf5   :  { %v7376_v37 = vpop.eup %7375 }
 0xaf6   :  { %v3380_v48 = vsub.f32 1.0, %v7376_v37  ;;  %v7378_v62 = vpop.eup %7377  ;;  %v3382_v11 = vmul.f32 0.0, %v7376_v37 }
 0xaf8   :  { %v3381_v56 = vmul.f32 %v7378_v62, %v3380_v48 }
 0xafa   :  { %v9020_v50 = vadd.f32 %v3382_v11, %v3381_v56 }
 0xafc   :  { %6340 = vmatmul.mubr.msk.f32.vlgmr.msra.gmra.mrb[60].mxu0 %vm3150_vm2, %v9020_v50  ;;  %6359 = vmatmul.mubr.msk.f32.vlgmr.msra.gmra.mrb[42].mxu1 %vm3150_vm2, %v9020_v50 }
 0xafd   :  { %7004 = vmatpush3.bf16.msra.mxu0 %v8881_v29  ;;  %6377 = vmatprep.mubr.msk.f32.mxu0 %vm7935_vm1, %v7936_v10 }
 0xafe   :  { %7005 = vmatprep.subr.bf16.mxu0 %v7934_v40  ;;  %7016 = vmatpush3.bf16.msra.mxu1 %v8813_v42 }
 0xaff   :  { %7017 = vmatprep.subr.bf16.mxu1 %v7934_v40  ;;  %6396 = vmatprep.mubr.msk.f32.mxu1 %vm7935_vm1, %v7936_v10 }
 0xb01   :  { %7007 = vmatpush3.bf16.msra.mxu0 %v8899_v58 }
 0xb02   :  { %7008 = vmatprep.subr.bf16.mxu0 %v7934_v40  ;;  %7019 = vmatpush3.bf16.msra.mxu1 %v8816_v31 }
 0xb03   :  { %7020 = vmatprep.subr.bf16.mxu1 %v7934_v40 }
 0xb05   :  { %7010 = vmatpush3.bf16.msra.mxu0 %v8919_v22 }
 0xb06   :  { %7011 = vmatprep.subr.bf16.mxu0 %v7934_v40  ;;  %7022 = vmatpush3.bf16.msra.mxu1 %v8820_v6 }
 0xb07   :  { %7023 = vmatprep.subr.bf16.mxu1 %v7934_v40 }
 0xb09   :  { %7013 = vmatpush3.bf16.msra.mxu0 %v8931_v63 }
 0xb0a   :  { %7026 = vmatprep.subr.bf16.mxu0 %v7934_v40  ;;  %7025 = vmatpush3.bf16.msra.mxu1 %v8826_v54 }
 0xb0b   :  { %7038 = vmatprep.subr.bf16.mxu1 %v7934_v40 }
 0xb0c   :  { %6378 = vmatmul.mubr.msk.f32.vlgmr.msra.gmra.mrb[62].mxu0 %vm3150_vm2, %v9020_v50 }
 0xb0d   :  { %7028 = vmatpush3.bf16.msra.mxu0 %v8873_v39  ;;  %6415 = vmatprep.mubr.msk.f32.mxu0 %vm7935_vm1, %v7936_v10 }
 0xb0e   :  { %7029 = vmatprep.subr.bf16.mxu0 %v7934_v40 }
 0xb11   :  { %7031 = vmatpush3.bf16.msra.mxu0 %v8889_v3 }
 0xb12   :  { %7032 = vmatprep.subr.bf16.mxu0 %v7934_v40 }
 0xb15   :  { %7034 = vmatpush3.bf16.msra.mxu0 %v8909_v16 }
 0xb16   :  { %7035 = vmatprep.subr.bf16.mxu0 %v7934_v40 }
 0xb19   :  { %7037 = vmatpush3.bf16.msra.mxu0 %v8927_v59 }
 0xb1a   :  { %7050 = vmatprep.subr.bf16.mxu0 %v7934_v40 }
 0xbcf   :  { %v3453_v8 = vpop.f32.mrb[60].mxu0  ;;  %v3523_v30 = vpop.f32.mrb[42].mxu1 }
 0xbd0   :  { %v3454_v14 = vadd.f32 %v8982_v55, %v3453_v8  ;;  %v3524_v2 = vadd.f32 %v9009_v53, %v3523_v30  ;;  %v6341_v13 = vpop.f32.mrb[61].mxu0  ;;  %v6360_v15 = vpop.f32.mrb[43].mxu1 }
 0xbd1   :  { %v2845_v13 = vadd.f32 %v8974_v4, %v8840_v45  ;;  %v2961_v15 = vadd.f32 %v9002_v61, %v8852_v7 }
 0xbd2   :  { %v3597_v23 = vadd.f32 %v3454_v14, %v2840_v49  ;;  %v3604_v27 = vadd.f32 %v3524_v2, %v2956_v35 }
 0xbd4   :  { %v5417_v38 = vmul.f32 -1.442695, %v3597_v23  ;;  %v5418_v21 = vmul.f32 -1.442695, %v3604_v27 }
 0xbd6   :  { %7379 = vpow2.f32 %v5417_v38 }
 0xbd7   :  { %7381 = vpow2.f32 %v5418_v21 }
 0xbdf   :  { %v3593_v12 = vpop.f32.mrb[62].mxu0 }
 0xbe0   :  { %v7380_v24 = vpop.eup %7379  ;;  %v6379_v34 = vpop.f32.mrb[63].mxu0  ;;  %v3594_v43 = vadd.f32 %v9017_v44, %v3593_v12 }
 0xbe1   :  { %v3601_v32 = vadd.f32 1.0, %v7380_v24  ;;  %v7382_v33 = vpop.eup %7381 }
 0xbe2   :  { %v3608_v37 = vadd.f32 1.0, %v7382_v33 }
 0xbe3   :  { %7383 = vrcp.f32 %v3601_v32 }
 0xbe4   :  { %7385 = vrcp.f32 %v3608_v37 }
 0xbed   :  { %v7384_v48 = vpop.eup %7383 }
 0xbee   :  { %v3611_v62 = vmul.f32 %v7384_v48, %v3594_v43  ;;  %v7386_v11 = vpop.eup %7385 }
 0xbef   :  { %v3614_v8 = vsub.f32 1.0, %v7386_v11  ;;  %v3616_v35 = vmul.f32 %v7386_v11, %v9020_v50 }
 0xbf0   :  { %v3612_v56 = vadd.f32 %v3611_v62, %v8986_v25 }
 0xbf2   :  { %7387 = vtanh.f32 %v3612_v56 }
 0xbfc   :  { %v7388_v30 = vpop.eup %7387 }
 0xbfd   :  { %v3615_v49 = vmul.f32 %v7388_v30, %v3614_v8 }
 0xbff   :  { %v9067_v14 = vadd.f32 %v3616_v35, %v3615_v49 }
 0xc01   :  { %6397 = vmatmul.mubr.msk.f32.vlgmr.msra.gmra.mrb[44].mxu1 %vm3150_vm2, %v9067_v14  ;;  %6416 = vmatmul.mubr.msk.f32.vlgmr.msra.gmra.mrb[64].mxu0 %vm3150_vm2, %v9067_v14 }
 0xc02   :  { %7040 = vmatpush3.bf16.msra.mxu1 %v8881_v29  ;;  %6434 = vmatprep.mubr.msk.f32.mxu1 %vm7935_vm1, %v7936_v10 }
 0xc03   :  { %7041 = vmatprep.subr.bf16.mxu1 %v7934_v40  ;;  %7052 = vmatpush3.bf16.msra.mxu0 %v8813_v42 }
 0xc04   :  { %7053 = vmatprep.subr.bf16.mxu0 %v7934_v40  ;;  %6453 = vmatprep.mubr.msk.f32.mxu0 %vm7935_vm1, %v7936_v10 }
 0xc06   :  { %7043 = vmatpush3.bf16.msra.mxu1 %v8899_v58 }
 0xc07   :  { %7044 = vmatprep.subr.bf16.mxu1 %v7934_v40  ;;  %7055 = vmatpush3.bf16.msra.mxu0 %v8816_v31 }
 0xc08   :  { %7056 = vmatprep.subr.bf16.mxu0 %v7934_v40 }
 0xc0a   :  { %7046 = vmatpush3.bf16.msra.mxu1 %v8919_v22 }
 0xc0b   :  { %7047 = vmatprep.subr.bf16.mxu1 %v7934_v40  ;;  %7058 = vmatpush3.bf16.msra.mxu0 %v8820_v6 }
 0xc0c   :  { %7059 = vmatprep.subr.bf16.mxu0 %v7934_v40 }
 0xc0e   :  { %7049 = vmatpush3.bf16.msra.mxu1 %v8931_v63 }
 0xc0f   :  { %7062 = vmatprep.subr.bf16.mxu1 %v7934_v40  ;;  %7061 = vmatpush3.bf16.msra.mxu0 %v8826_v54 }
 0xc10   :  { %7074 = vmatprep.subr.bf16.mxu0 %v7934_v40 }
 0xc11   :  { %6435 = vmatmul.mubr.msk.f32.vlgmr.msra.gmra.mrb[46].mxu1 %vm3150_vm2, %v9067_v14 }
 0xc12   :  { %7064 = vmatpush3.bf16.msra.mxu1 %v8873_v39  ;;  %6472 = vmatprep.mubr.msk.f32.mxu1 %vm7935_vm1, %v7936_v10 }
 0xc13   :  { %7065 = vmatprep.subr.bf16.mxu1 %v7934_v40 }
 0xc16   :  { %7067 = vmatpush3.bf16.msra.mxu1 %v8889_v3 }
 0xc17   :  { %7068 = vmatprep.subr.bf16.mxu1 %v7934_v40 }
 0xc1a   :  { %7070 = vmatpush3.bf16.msra.mxu1 %v8909_v16 }
 0xc1b   :  { %7071 = vmatprep.subr.bf16.mxu1 %v7934_v40 }
 0xc1e   :  { %7073 = vmatpush3.bf16.msra.mxu1 %v8927_v59 }
 0xc1f   :  { %7086 = vmatprep.subr.bf16.mxu1 %v7934_v40 }
 0xcd4   :  { %v3687_v25 = vpop.f32.mrb[44].mxu1  ;;  %v3757_v2 = vpop.f32.mrb[64].mxu0 }
 0xcd5   :  { %v3688_v23 = vadd.f32 %v8982_v55, %v3687_v25  ;;  %v3758_v27 = vadd.f32 %v9009_v53, %v3757_v2  ;;  %v6398_v38 = vpop.f32.mrb[45].mxu1  ;;  %v6417_v21 = vpop.f32.mrb[65].mxu0 }
 0xcd7   :  { %v3831_v12 = vadd.f32 %v3688_v23, %v2845_v13  ;;  %v3838_v24 = vadd.f32 %v3758_v27, %v2961_v15  ;;  %v2850_v23 = vadd.f32 %v8838_v57, %v8974_v4  ;;  %v2966_v27 = vadd.f32 %v8850_v36, %v9002_v61 }
 0xcd9   :  { %v5422_v34 = vmul.f32 -1.442695, %v3831_v12  ;;  %v5423_v32 = vmul.f32 -1.442695, %v3838_v24 }
 0xcdb   :  { %7389 = vpow2.f32 %v5422_v34 }
 0xcdc   :  { %7391 = vpow2.f32 %v5423_v32 }
 0xce4   :  { %v3827_v33 = vpop.f32.mrb[46].mxu1 }
 0xce5   :  { %v7390_v37 = vpop.eup %7389  ;;  %v6436_v43 = vpop.f32.mrb[47].mxu1  ;;  %v3828_v7 = vadd.f32 %v9017_v44, %v3827_v33 }
 0xce6   :  { %v3835_v48 = vadd.f32 1.0, %v7390_v37  ;;  %v7392_v45 = vpop.eup %7391 }
 0xce7   :  { %v3842_v62 = vadd.f32 1.0, %v7392_v45 }
 0xce8   :  { %7393 = vrcp.f32 %v3835_v48 }
 0xce9   :  { %7395 = vrcp.f32 %v3842_v62 }
 0xcf2   :  { %v7394_v56 = vpop.eup %7393 }
 0xcf3   :  { %v3845_v11 = vmul.f32 %v7394_v56, %v3828_v7  ;;  %v7396_v30 = vpop.eup %7395 }
 0xcf4   :  { %v3848_v49 = vsub.f32 1.0, %v7396_v30  ;;  %v3850_v2 = vmul.f32 %v7396_v30, %v9067_v14 }
 0xcf5   :  { %v3846_v8 = vadd.f32 %v3845_v11, %v8991_v46 }
 0xcf7   :  { %7397 = vtanh.f32 %v3846_v8 }
 0xd01   :  { %v7398_v35 = vpop.eup %7397 }
 0xd02   :  { %v3849_v25 = vmul.f32 %v7398_v35, %v3848_v49 }
 0xd04   :  { %v9114_v13 = vadd.f32 %v3850_v2, %v3849_v25 }
 0xd06   :  { %6454 = vmatmul.mubr.msk.f32.vlgmr.msra.gmra.mrb[66].mxu0 %vm3150_vm2, %v9114_v13  ;;  %6473 = vmatmul.mubr.msk.f32.vlgmr.msra.gmra.mrb[48].mxu1 %vm3150_vm2, %v9114_v13 }
 0xd07   :  { %7076 = vmatpush3.bf16.msra.mxu0 %v8881_v29  ;;  %6491 = vmatprep.mubr.msk.f32.mxu0 %vm7935_vm1, %v7936_v10 }
 0xd08   :  { %7077 = vmatprep.subr.bf16.mxu0 %v7934_v40  ;;  %7088 = vmatpush3.bf16.msra.mxu1 %v8813_v42 }
 0xd09   :  { %7089 = vmatprep.subr.bf16.mxu1 %v7934_v40  ;;  %6510 = vmatprep.mubr.msk.f32.mxu1 %vm7935_vm1, %v7936_v10 }
 0xd0b   :  { %7079 = vmatpush3.bf16.msra.mxu0 %v8899_v58 }
 0xd0c   :  { %7080 = vmatprep.subr.bf16.mxu0 %v7934_v40  ;;  %7091 = vmatpush3.bf16.msra.mxu1 %v8816_v31 }
 0xd0d   :  { %7092 = vmatprep.subr.bf16.mxu1 %v7934_v40 }
 0xd0f   :  { %7082 = vmatpush3.bf16.msra.mxu0 %v8919_v22 }
 0xd10   :  { %7083 = vmatprep.subr.bf16.mxu0 %v7934_v40  ;;  %7094 = vmatpush3.bf16.msra.mxu1 %v8820_v6 }
 0xd11   :  { %7095 = vmatprep.subr.bf16.mxu1 %v7934_v40 }
 0xd13   :  { %7085 = vmatpush3.bf16.msra.mxu0 %v8931_v63 }
 0xd14   :  { %7098 = vmatprep.subr.bf16.mxu0 %v7934_v40  ;;  %7097 = vmatpush3.bf16.msra.mxu1 %v8826_v54 }
 0xd15   :  { %7110 = vmatprep.subr.bf16.mxu1 %v7934_v40 }
 0xd16   :  { %6492 = vmatmul.mubr.msk.f32.vlgmr.msra.gmra.mrb[68].mxu0 %vm3150_vm2, %v9114_v13 }
 0xd17   :  { %7100 = vmatpush3.bf16.msra.mxu0 %v8873_v39  ;;  %6529 = vmatprep.mubr.msk.f32.mxu0 %vm7935_vm1, %v7936_v10 }
 0xd18   :  { %7101 = vmatprep.subr.bf16.mxu0 %v7934_v40 }
 0xd1b   :  { %7103 = vmatpush3.bf16.msra.mxu0 %v8889_v3 }
 0xd1c   :  { %7104 = vmatprep.subr.bf16.mxu0 %v7934_v40 }
 0xd1f   :  { %7106 = vmatpush3.bf16.msra.mxu0 %v8909_v16 }
 0xd20   :  { %7107 = vmatprep.subr.bf16.mxu0 %v7934_v40 }
 0xd23   :  { %7109 = vmatpush3.bf16.msra.mxu0 %v8927_v59 }
 0xd24   :  { %7122 = vmatprep.subr.bf16.mxu0 %v7934_v40 }
 0xdd9   :  { %v3921_v46 = vpop.f32.mrb[66].mxu0  ;;  %v3991_v15 = vpop.f32.mrb[48].mxu1 }
 0xdda   :  { %v3922_v38 = vadd.f32 %v8982_v55, %v3921_v46  ;;  %v3992_v21 = vadd.f32 %v9009_v53, %v3991_v15  ;;  %v6455_v12 = vpop.f32.mrb[67].mxu0  ;;  %v6474_v24 = vpop.f32.mrb[49].mxu1 }
 0xddc   :  { %v4065_v34 = vadd.f32 %v3922_v38, %v2850_v23  ;;  %v4072_v32 = vadd.f32 %v3992_v21, %v2966_v27  ;;  %v2855_v23 = vadd.f32 %v8974_v4, %v8846_v41  ;;  %v2971_v27 = vadd.f32 %v9002_v61, %v8856_v20 }
 0xdde   :  { %v5427_v33 = vmul.f32 -1.442695, %v4065_v34  ;;  %v5428_v37 = vmul.f32 -1.442695, %v4072_v32 }
 0xde0   :  { %7399 = vpow2.f32 %v5427_v33 }
 0xde1   :  { %7401 = vpow2.f32 %v5428_v37 }
 0xde9   :  { %v4061_v43 = vpop.f32.mrb[68].mxu0 }
 0xdea   :  { %v7400_v48 = vpop.eup %7399  ;;  %v6493_v45 = vpop.f32.mrb[69].mxu0  ;;  %v4062_v36 = vadd.f32 %v9017_v44, %v4061_v43 }
 0xdeb   :  { %v4069_v62 = vadd.f32 1.0, %v7400_v48  ;;  %v7402_v57 = vpop.eup %7401 }
 0xdec   :  { %v4076_v7 = vadd.f32 1.0, %v7402_v57 }
 0xded   :  { %7403 = vrcp.f32 %v4069_v62 }
 0xdee   :  { %7405 = vrcp.f32 %v4076_v7 }
 0xdf7   :  { %v7404_v56 = vpop.eup %7403 }
 0xdf8   :  { %v4079_v11 = vmul.f32 %v7404_v56, %v4062_v36  ;;  %v7406_v30 = vpop.eup %7405 }
 0xdf9   :  { %v4082_v49 = vsub.f32 1.0, %v7406_v30  ;;  %v4084_v2 = vmul.f32 %v7406_v30, %v9114_v13 }
 0xdfa   :  { %v4080_v8 = vadd.f32 %v4079_v11, %v8989_v9 }
 0xdfc   :  { %7407 = vtanh.f32 %v4080_v8 }
 0xe06   :  { %v7408_v35 = vpop.eup %7407 }
 0xe07   :  { %v4083_v25 = vmul.f32 %v7408_v35, %v4082_v49 }
 0xe09   :  { %v9161_v46 = vadd.f32 %v4084_v2, %v4083_v25 }
 0xe0b   :  { %6511 = vmatmul.mubr.msk.f32.vlgmr.msra.gmra.mrb[50].mxu1 %vm3150_vm2, %v9161_v46  ;;  %6530 = vmatmul.mubr.msk.f32.vlgmr.msra.gmra.mrb[70].mxu0 %vm3150_vm2, %v9161_v46 }
 0xe0c   :  { %7112 = vmatpush3.bf16.msra.mxu1 %v8881_v29  ;;  %6548 = vmatprep.mubr.msk.f32.mxu1 %vm7935_vm1, %v7936_v10 }
 0xe0d   :  { %7113 = vmatprep.subr.bf16.mxu1 %v7934_v40  ;;  %7124 = vmatpush3.bf16.msra.mxu0 %v8813_v42 }
 0xe0e   :  { %7125 = vmatprep.subr.bf16.mxu0 %v7934_v40  ;;  %6567 = vmatprep.mubr.msk.f32.mxu0 %vm7935_vm1, %v7936_v10 }
 0xe10   :  { %7115 = vmatpush3.bf16.msra.mxu1 %v8899_v58 }
 0xe11   :  { %7116 = vmatprep.subr.bf16.mxu1 %v7934_v40  ;;  %7127 = vmatpush3.bf16.msra.mxu0 %v8816_v31 }
 0xe12   :  { %7128 = vmatprep.subr.bf16.mxu0 %v7934_v40 }
 0xe14   :  { %7118 = vmatpush3.bf16.msra.mxu1 %v8919_v22 }
 0xe15   :  { %7119 = vmatprep.subr.bf16.mxu1 %v7934_v40  ;;  %7130 = vmatpush3.bf16.msra.mxu0 %v8820_v6 }
 0xe16   :  { %7131 = vmatprep.subr.bf16.mxu0 %v7934_v40 }
 0xe18   :  { %7121 = vmatpush3.bf16.msra.mxu1 %v8931_v63 }
 0xe19   :  { %7134 = vmatprep.subr.bf16.mxu1 %v7934_v40  ;;  %7133 = vmatpush3.bf16.msra.mxu0 %v8826_v54 }
 0xe1a   :  { %7146 = vmatprep.subr.bf16.mxu0 %v7934_v40 }
 0xe1b   :  { %6549 = vmatmul.mubr.msk.f32.vlgmr.msra.gmra.mrb[52].mxu1 %vm3150_vm2, %v9161_v46 }
 0xe1c   :  { %7136 = vmatpush3.bf16.msra.mxu1 %v8873_v39  ;;  %6586 = vmatprep.mubr.msk.f32.mxu1 %vm7935_vm1, %v7936_v10 }
 0xe1d   :  { %7137 = vmatprep.subr.bf16.mxu1 %v7934_v40 }
 0xe20   :  { %7139 = vmatpush3.bf16.msra.mxu1 %v8889_v3 }
 0xe21   :  { %7140 = vmatprep.subr.bf16.mxu1 %v7934_v40 }
 0xe24   :  { %7142 = vmatpush3.bf16.msra.mxu1 %v8909_v16 }
 0xe25   :  { %7143 = vmatprep.subr.bf16.mxu1 %v7934_v40 }
 0xe28   :  { %7145 = vmatpush3.bf16.msra.mxu1 %v8927_v59 }
 0xe29   :  { %7158 = vmatprep.subr.bf16.mxu1 %v7934_v40 }
 0xede   :  { %v4155_v9 = vpop.f32.mrb[50].mxu1  ;;  %v4225_v15 = vpop.f32.mrb[70].mxu0 }
 0xedf   :  { %v4156_v38 = vadd.f32 %v8982_v55, %v4155_v9  ;;  %v4226_v21 = vadd.f32 %v9009_v53, %v4225_v15  ;;  %v6512_v12 = vpop.f32.mrb[51].mxu1  ;;  %v6531_v24 = vpop.f32.mrb[71].mxu0  ;;  %v2860_v9 = vadd.f32 %v8842_v60, %v8974_v4  ;;  %v2976_v15 = vadd.f32 %v8854_v17, %v9002_v61 }
 0xee1   :  { %v4299_v34 = vadd.f32 %v4156_v38, %v2855_v23  ;;  %v4306_v32 = vadd.f32 %v4226_v21, %v2971_v27 }
 0xee3   :  { %v5432_v33 = vmul.f32 -1.442695, %v4299_v34  ;;  %v5433_v37 = vmul.f32 -1.442695, %v4306_v32 }
 0xee5   :  { %7409 = vpow2.f32 %v5432_v33 }
 0xee6   :  { %7411 = vpow2.f32 %v5433_v37 }
 0xeee   :  { %v4295_v43 = vpop.f32.mrb[52].mxu1 }
 0xeef   :  { %v7410_v48 = vpop.eup %7409  ;;  %v6550_v45 = vpop.f32.mrb[53].mxu1  ;;  %v4296_v20 = vadd.f32 %v9017_v44, %v4295_v43 }
 0xef0   :  { %v4303_v62 = vadd.f32 1.0, %v7410_v48  ;;  %v7412_v41 = vpop.eup %7411 }
 0xef1   :  { %v4310_v57 = vadd.f32 1.0, %v7412_v41 }
 0xef2   :  { %7413 = vrcp.f32 %v4303_v62 }
 0xef3   :  { %7415 = vrcp.f32 %v4310_v57 }
 0xefc   :  { %v7414_v7 = vpop.eup %7413 }
 0xefd   :  { %v4313_v36 = vmul.f32 %v7414_v7, %v4296_v20  ;;  %v7416_v11 = vpop.eup %7415 }
 0xefe   :  { %v4316_v8 = vsub.f32 1.0, %v7416_v11  ;;  %v4318_v35 = vmul.f32 %v7416_v11, %v9161_v46 }
 0xeff   :  { %v4314_v56 = vadd.f32 %v4313_v36, %v8995_v5 }
 0xf01   :  { %7417 = vtanh.f32 %v4314_v56 }
 0xf0b   :  { %v7418_v30 = vpop.eup %7417 }
 0xf0c   :  { %v4317_v49 = vmul.f32 %v7418_v30, %v4316_v8 }
 0xf0e   :  { %v9208_v25 = vadd.f32 %v4318_v35, %v4317_v49 }
 0xf10   :  { %6568 = vmatmul.mubr.msk.f32.vlgmr.msra.gmra.mrb[72].mxu0 %vm3150_vm2, %v9208_v25  ;;  %6587 = vmatmul.mubr.msk.f32.vlgmr.msra.gmra.mrb[54].mxu1 %vm3150_vm2, %v9208_v25 }
 0xf11   :  { %7148 = vmatpush3.bf16.msra.mxu0 %v8881_v29  ;;  %6605 = vmatprep.mubr.msk.f32.mxu0 %vm7935_vm1, %v7936_v10 }
 0xf12   :  { %7149 = vmatprep.subr.bf16.mxu0 %v7934_v40  ;;  %7160 = vmatpush3.bf16.msra.mxu1 %v8813_v42 }
 0xf13   :  { %7161 = vmatprep.subr.bf16.mxu1 %v7934_v40  ;;  %6624 = vmatprep.mubr.msk.f32.mxu1 %vm7935_vm1, %v7936_v10 }
 0xf15   :  { %7151 = vmatpush3.bf16.msra.mxu0 %v8899_v58 }
 0xf16   :  { %7152 = vmatprep.subr.bf16.mxu0 %v7934_v40  ;;  %7163 = vmatpush3.bf16.msra.mxu1 %v8816_v31 }
 0xf17   :  { %7164 = vmatprep.subr.bf16.mxu1 %v7934_v40 }
 0xf19   :  { %7154 = vmatpush3.bf16.msra.mxu0 %v8919_v22 }
 0xf1a   :  { %7155 = vmatprep.subr.bf16.mxu0 %v7934_v40  ;;  %7166 = vmatpush3.bf16.msra.mxu1 %v8820_v6 }
 0xf1b   :  { %7167 = vmatprep.subr.bf16.mxu1 %v7934_v40 }
 0xf1d   :  { %7157 = vmatpush3.bf16.msra.mxu0 %v8931_v63 }
 0xf1e   :  { %7170 = vmatprep.subr.bf16.mxu0 %v7934_v40  ;;  %7169 = vmatpush3.bf16.msra.mxu1 %v8826_v54 }
 0xf1f   :  { %7182 = vmatprep.subr.bf16.mxu1 %v7934_v40 }
 0xf20   :  { %6606 = vmatmul.mubr.msk.f32.vlgmr.msra.gmra.mrb[74].mxu0 %vm3150_vm2, %v9208_v25 }
 0xf21   :  { %7172 = vmatpush3.bf16.msra.mxu0 %v8873_v39  ;;  %6643 = vmatprep.mubr.msk.f32.mxu0 %vm7935_vm1, %v7936_v10 }
 0xf22   :  { %7173 = vmatprep.subr.bf16.mxu0 %v7934_v40 }
 0xf25   :  { %7175 = vmatpush3.bf16.msra.mxu0 %v8889_v3 }
 0xf26   :  { %7176 = vmatprep.subr.bf16.mxu0 %v7934_v40 }
 0xf29   :  { %7178 = vmatpush3.bf16.msra.mxu0 %v8909_v16 }
 0xf2a   :  { %7179 = vmatprep.subr.bf16.mxu0 %v7934_v40 }
 0xf2d   :  { %7181 = vmatpush3.bf16.msra.mxu0 %v8927_v59 }
 0xf2e   :  { %7194 = vmatprep.subr.bf16.mxu0 %v7934_v40 }
 0xfe3   :  { %v4389_v5 = vpop.f32.mrb[72].mxu0  ;;  %v4459_v2 = vpop.f32.mrb[54].mxu1 }
 0xfe4   :  { %v4390_v23 = vadd.f32 %v8982_v55, %v4389_v5  ;;  %v4460_v27 = vadd.f32 %v9009_v53, %v4459_v2  ;;  %v6569_v38 = vpop.f32.mrb[73].mxu0  ;;  %v6588_v21 = vpop.f32.mrb[55].mxu1 }
 0xfe6   :  { %v4533_v12 = vadd.f32 %v4390_v23, %v2860_v9  ;;  %v4540_v24 = vadd.f32 %v4460_v27, %v2976_v15 }
 0xfe8   :  { %v5437_v34 = vmul.f32 -1.442695, %v4533_v12  ;;  %v5438_v32 = vmul.f32 -1.442695, %v4540_v24 }
 0xfea   :  { %7419 = vpow2.f32 %v5437_v34 }
 0xfeb   :  { %7421 = vpow2.f32 %v5438_v32 }
 0xff3   :  { %v4529_v33 = vpop.f32.mrb[74].mxu0 }
 0xff4   :  { %v7420_v37 = vpop.eup %7419  ;;  %v6607_v43 = vpop.f32.mrb[75].mxu0  ;;  %v4530_v17 = vadd.f32 %v9017_v44, %v4529_v33 }
 0xff5   :  { %v4537_v48 = vadd.f32 1.0, %v7420_v37  ;;  %v7422_v60 = vpop.eup %7421 }
 0xff6   :  { %v4544_v45 = vadd.f32 1.0, %v7422_v60  ;;  %v5024_v60 = vld [vmem:[#allocation31 + $0x10] sm:$0xff] }
 0xff7   :  { %7423 = vrcp.f32 %v4537_v48 }
 0xff8   :  { %7425 = vrcp.f32 %v4544_v45  ;;  %v5025_v45 = vld [vmem:[#allocation31 + $0x18] sm:$0xff] }
0x1001   :  { %v7424_v62 = vpop.eup %7423 }
0x1002   :  { %v4547_v41 = vmul.f32 %v7424_v62, %v4530_v17  ;;  %v7426_v20 = vpop.eup %7425  ;;  %v7234_v62 = vpack.c.bf16 %v5025_v45, %v5024_v60 }
0x1003   :  { %v4550_v7 = vsub.f32 1.0, %v7426_v20  ;;  %v4552_v11 = vmul.f32 %v7426_v20, %v9208_v25  ;;  %v5028_v20 = vld [vmem:[#allocation31 + $0x30] sm:$0xff] }
0x1004   :  { %v4548_v57 = vadd.f32 %v4547_v41, %v8993_v47  ;;  %v2865_v47 = vadd.f32 %v8974_v4, %v8967_v0  ;;  %v5026_v41 = vld [vmem:[#allocation31 + $0x20] sm:$0xff] }
0x1006   :  { %7427 = vtanh.f32 %v4548_v57  ;;  %v5027_v57 = vld [vmem:[#allocation31 + $0x28] sm:$0xff] }
0x1010   :  { %v7428_v36 = vpop.eup %7427 }
0x1011   :  { %v4551_v56 = vmul.f32 %v7428_v36, %v4550_v7  ;;  %v5029_v7 = vld [vmem:[#allocation31 + $0x38] sm:$0xff] }
0x1013   :  { %v9255_v8 = vadd.f32 %v4552_v11, %v4551_v56 }
0x1015   :  { %6625 = vmatmul.mubr.msk.f32.vlgmr.msra.gmra.mrb[56].mxu1 %vm3150_vm2, %v9255_v8  ;;  %6644 = vmatmul.mubr.msk.f32.vlgmr.msra.gmra.mrb[76].mxu0 %vm3150_vm2, %v9255_v8 }
0x1016   :  { %7184 = vmatpush3.bf16.msra.mxu1 %v8881_v29  ;;  %6662 = vmatprep.mubr.msk.f32.mxu1 %vm7935_vm1, %v7936_v10 }
0x1017   :  { %7185 = vmatprep.subr.bf16.mxu1 %v7934_v40  ;;  %7196 = vmatpush3.bf16.msra.mxu0 %v8813_v42  ;;  %v5022_v42 = vld [vmem:[#allocation31] sm:$0xff] }
0x1018   :  { %7197 = vmatprep.subr.bf16.mxu0 %v7934_v40  ;;  %6681 = vmatprep.mubr.msk.f32.mxu0 %vm7935_vm1, %v7936_v10 }
0x101a   :  { %7187 = vmatpush3.bf16.msra.mxu1 %v8899_v58 }
0x101b   :  { %7188 = vmatprep.subr.bf16.mxu1 %v7934_v40  ;;  %7199 = vmatpush3.bf16.msra.mxu0 %v8816_v31  ;;  %v5023_v31 = vld [vmem:[#allocation31 + $0x8] sm:$0xff] }
0x101c   :  { %7200 = vmatprep.subr.bf16.mxu0 %v7934_v40 }
0x101e   :  { %7190 = vmatpush3.bf16.msra.mxu1 %v8919_v22 }
0x101f   :  { %7191 = vmatprep.subr.bf16.mxu1 %v7934_v40  ;;  %7202 = vmatpush3.bf16.msra.mxu0 %v8820_v6  ;;  %v7230_v6 = vpack.c.bf16 %v5023_v31, %v5022_v42 }
0x1020   :  { %7203 = vmatprep.subr.bf16.mxu0 %v7934_v40 }
0x1022   :  { %7193 = vmatpush3.bf16.msra.mxu1 %v8931_v63 }
0x1023   :  { %7206 = vmatprep.subr.bf16.mxu1 %v7934_v40  ;;  %7205 = vmatpush3.bf16.msra.mxu0 %v8826_v54 }
0x1024   :  { %7218 = vmatprep.subr.bf16.mxu0 %v7934_v40 }
0x1025   :  { %6663 = vmatmul.mubr.msk.f32.vlgmr.msra.gmra.mrb[58].mxu1 %vm3150_vm2, %v9255_v8 }
0x1026   :  { %7208 = vmatpush3.bf16.msra.mxu1 %v8873_v39  ;;  %6700 = vmatprep.mubr.msk.f32.mxu1 %vm7935_vm1, %v7936_v10 }
0x1027   :  { %7209 = vmatprep.subr.bf16.mxu1 %v7934_v40 }
0x102a   :  { %7211 = vmatpush3.bf16.msra.mxu1 %v8889_v3  ;;  %v2981_v3 = vadd.f32 %v9002_v61, %v8969_v1 }
0x102b   :  { %7212 = vmatprep.subr.bf16.mxu1 %v7934_v40 }
0x102e   :  { %7214 = vmatpush3.bf16.msra.mxu1 %v8909_v16 }
0x102f   :  { %7215 = vmatprep.subr.bf16.mxu1 %v7934_v40 }
0x1032   :  { %7217 = vmatpush3.bf16.msra.mxu1 %v8927_v59 }
0x1033   :  { %7231 = vmatprep.subr.bf16.mxu1 %v7230_v6 }
0x10e8   :  { %v4623_v54 = vpop.f32.mrb[56].mxu1  ;;  %v4693_v39 = vpop.f32.mrb[76].mxu0 }
0x10e9   :  { %v4624_v30 = vadd.f32 %v8982_v55, %v4623_v54  ;;  %v4694_v16 = vadd.f32 %v9009_v53, %v4693_v39  ;;  %v6626_v49 = vpop.f32.mrb[57].mxu1  ;;  %v6645_v35 = vpop.f32.mrb[77].mxu0 }
0x10eb   :  { %v4767_v5 = vadd.f32 %v4624_v30, %v2865_v47  ;;  %v4774_v59 = vadd.f32 %v4694_v16, %v2981_v3 }
0x10ed   :  { %v5442_v2 = vmul.f32 -1.442695, %v4767_v5  ;;  %v5443_v9 = vmul.f32 -1.442695, %v4774_v59 }
0x10ef   :  { %7429 = vpow2.f32 %v5442_v2 }
0x10f0   :  { %7431 = vpow2.f32 %v5443_v9 }
0x10f8   :  { %v4763_v15 = vpop.f32.mrb[58].mxu1 }
0x10f9   :  { %v7430_v23 = vpop.eup %7429  ;;  %v6664_v27 = vpop.f32.mrb[59].mxu1  ;;  %v4764_v1 = vadd.f32 %v9017_v44, %v4763_v15 }
0x10fa   :  { %v4771_v38 = vadd.f32 1.0, %v7430_v23  ;;  %v7432_v0 = vpop.eup %7431 }
0x10fb   :  { %v4778_v21 = vadd.f32 1.0, %v7432_v0 }
0x10fc   :  { %7433 = vrcp.f32 %v4771_v38 }
0x10fd   :  { %7435 = vrcp.f32 %v4778_v21 }
0x1106   :  { %v7434_v12 = vpop.eup %7433 }
0x1107   :  { %v4781_v24 = vmul.f32 %v7434_v12, %v4764_v1  ;;  %v7436_v32 = vpop.eup %7435 }
0x1108   :  { %v4784_v33 = vsub.f32 1.0, %v7436_v32  ;;  %v4786_v48 = vmul.f32 %v7436_v32, %v9255_v8 }
0x1109   :  { %v4782_v34 = vadd.f32 %v4781_v24, %v9004_v52  ;;  %v7238_v52 = vpack.c.bf16 %v5027_v57, %v5026_v41 }
0x110b   :  { %7437 = vtanh.f32 %v4782_v34 }
0x1115   :  { %v7438_v37 = vpop.eup %7437 }
0x1116   :  { %v4785_v43 = vmul.f32 %v7438_v37, %v4784_v33 }
0x1118   :  { %v9301_v17 = vadd.f32 %v4786_v48, %v4785_v43 }
0x111a   :  { %6682 = vmatmul.mubr.msk.f32.vlgmr.msra.gmra.mrb[78].mxu0 %vm3150_vm2, %v9301_v17  ;;  %6701 = vmatmul.mubr.msk.f32.vlgmr.msra.gmra.mrb[60].mxu1 %vm3150_vm2, %v9301_v17 }
0x111b   :  { %7220 = vmatpush3.bf16.msra.mxu0 %v8881_v29  ;;  %7233 = vmatpush3.bf16.msra.mxu1 %v7230_v6  ;;  %v7242_v29 = vpack.c.bf16 %v5029_v7, %v5028_v20 }
0x111c   :  { %6738 = vmatprep.mubr.msk.f32.mxu1 %vm3150_vm2, %v9020_v50  ;;  %7221 = vmatprep.subr.bf16.mxu0 %v7934_v40 }
0x111d   :  { %7235 = vmatprep.subr.bf16.mxu1 %v7234_v62  ;;  %6719 = vmatprep.mubr.msk.f32.mxu0 %vm7935_vm1, %v7936_v10 }
0x111f   :  { %7223 = vmatpush3.bf16.msra.mxu0 %v8899_v58  ;;  %7237 = vmatpush3.bf16.msra.mxu1 %v7234_v62  ;;  %v2870_v58 = vadd.f32 %v8963_v51, %v8974_v4 }
0x1120   :  { %7224 = vmatprep.subr.bf16.mxu0 %v7934_v40  ;;  %7239 = vmatprep.subr.bf16.mxu1 %v7238_v52 }
0x1123   :  { %7226 = vmatpush3.bf16.msra.mxu0 %v8919_v22  ;;  %7241 = vmatpush3.bf16.msra.mxu1 %v7238_v52  ;;  %v2986_v22 = vadd.f32 %v8965_v18, %v9002_v61  ;;  %v5449_v18 = vld [vmem:[%s9445_s15] ss:$0 sm:$0xff] }
0x1124   :  { %7227 = vmatprep.subr.bf16.mxu0 %v7934_v40  ;;  %7243 = vmatprep.subr.bf16.mxu1 %v7242_v29 }
0x1127   :  { %7229 = vmatpush3.bf16.msra.mxu0 %v8931_v63  ;;  %7245 = vmatpush3.bf16.msra.mxu1 %v7242_v29 }
0x112a   :  { %6720 = vmatmul.mubr.msk.f32.vlgmr.msra.gmra.mrb[80].mxu0 %vm3150_vm2, %v9301_v17  ;;  %6739 = vmatmul.mubr.msk.f32.vlgmr.msra.gmra.mrb[62].mxu1 %vm3150_vm2, %v9067_v14 }
0x112b   :  { %6741 = vmatprep.mubr.msk.f32.mxu1 %vm3150_vm2, %v9114_v13 }
0x112e   :  { %6742 = vmatmul.mubr.msk.f32.gmra.mrb[64].mxu1 %vm3150_vm2, %v9161_v46 }
0x112f   :  { %6744 = vmatprep.mubr.msk.f32.mxu1 %vm3150_vm2, %v9208_v25 }
0x1132   :  { %6745 = vmatmul.mubr.msk.f32.gmra.mrb[66].mxu1 %vm3150_vm2, %v9255_v8 }
0x1133   :  { %6747 = vmatprep.mubr.msk.f32.mxu1 %vm3150_vm2, %v9301_v17 }
0x11ed   :  { %v4857_v40 = vpop.f32.mrb[78].mxu0  ;;  %v4927_v10 = vpop.f32.mrb[60].mxu1 }
0x11ee   :  { %v4858_v63 = vadd.f32 %v8982_v55, %v4857_v40  ;;  %v4928_v50 = vadd.f32 %v9009_v53, %v4927_v10  ;;  %v6683_v14 = vpop.f32.mrb[79].mxu0  ;;  %v6702_v13 = vpop.f32.mrb[61].mxu1 }
0x11f0   :  { %v5001_v46 = vadd.f32 %v4858_v63, %v2870_v58  ;;  %v5008_v25 = vadd.f32 %v4928_v50, %v2986_v22 }
0x11f2   :  { %v5447_v36 = vmul.f32 -1.442695, %v5001_v46  ;;  %v5448_v56 = vmul.f32 -1.442695, %v5008_v25 }
0x11f4   :  { %7439 = vpow2.f32 %v5447_v36 }
0x11f5   :  { %7441 = vpow2.f32 %v5448_v56 }
0x11fd   :  { %v4997_v11 = vpop.f32.mrb[80].mxu0  ;;  %v6740_v8 = vpop.f32.mrb[62].mxu1 }
0x11fe   :  { %v7440_v42 = vpop.eup %7439  ;;  %v6721_v31 = vpop.f32.mrb[81].mxu0  ;;  %v5112_v61 = vadd.f32 %v6740_v8, %v5449_v18  ;;  %v4998_v1 = vadd.f32 %v9017_v44, %v4997_v11 }
0x11ff   :  { %v5106_v51 = vpop.f32.mrb[63].mxu1  ;;  %v5005_v4 = vadd.f32 1.0, %v7440_v42  ;;  %v7442_v30 = vpop.eup %7441 }
0x1200   :  { %v5107_v54 = vadd.f32 %v5449_v18, %v5106_v51  ;;  %v5012_v23 = vadd.f32 1.0, %v7442_v30 }
0x1201   :  { %7443 = vrcp.f32 %v5005_v4  ;;  %v6743_v55 = vpop.f32.mrb[64].mxu1 }
0x1202   :  { %v5122_v53 = vadd.f32 %v6743_v55, %v5449_v18  ;;  %v5116_v6 = vpop.f32.mrb[65].mxu1  ;;  %7445 = vrcp.f32 %v5012_v23 }
0x1203   :  { %v5117_v39 = vadd.f32 %v5449_v18, %v5116_v6 }
0x1204   :  { %v5161_v47 = vcombine.low %v5112_v61, %v5122_v53  ;;  %v5162_v3 = vcombine.high %v5112_v61, %v5122_v53 }
0x1205   :  { %v5145_v16 = vcombine.low %v5107_v54, %v5117_v39  ;;  %v5146_v49 = vcombine.high %v5107_v54, %v5117_v39  ;;  %v6746_v35 = vpop.f32.mrb[66].mxu1 }
0x1206   :  { %v5169_v5 = vrot.slane %v5161_v47, %v8384_v19  ;;  %v5176_v59 = vrot.slane %v5162_v3, %v8384_v19  ;;  %v5126_v2 = vpop.f32.mrb[67].mxu1  ;;  %v5132_v62 = vadd.f32 %v6746_v35, %v5449_v18 }
0x1207   :  { %v5153_v9 = vrot.slane %v5145_v16, %v8384_v19  ;;  %v5160_v15 = vrot.slane %v5146_v49, %v8384_v19  ;;  %v5127_v44 = vadd.f32 %v5449_v18, %v5126_v2 }
0x1209   :  { %v5209_v27 = vcombine.low %v5153_v9, %v5169_v5  ;;  %v5210_v38 = vcombine.high %v5153_v9, %v5169_v5  ;;  %v5225_v0 = vcombine.low %v5160_v15, %v5176_v59  ;;  %v5226_v21 = vcombine.high %v5160_v15, %v5176_v59 }
0x120b   :  { %v7444_v12 = vpop.eup %7443  ;;  %v5217_v13 = vrot.slane %v5209_v27, %v8391_v28  ;;  %v5224_v46 = vrot.slane %v5210_v38, %v8391_v28  ;;  %v5240_v8 = vrot.slane %v5226_v21, %v8391_v28 }
0x120c   :  { %v5015_v24 = vmul.f32 %v7444_v12, %v4998_v1  ;;  %v7446_v32 = vpop.eup %7445 }
0x120d   :  { %v5018_v33 = vsub.f32 1.0, %v7446_v32  ;;  %v5020_v48 = vmul.f32 %v7446_v32, %v9301_v17 }
0x120e   :  { %v5016_v34 = vadd.f32 %v5015_v24, %v8997_v26 }
0x1210   :  { %7447 = vtanh.f32 %v5016_v34 }
0x121a   :  { %v7448_v37 = vpop.eup %7447 }
0x121b   :  { %v5019_v43 = vmul.f32 %v7448_v37, %v5018_v33 }
0x121d   :  { %v5021_v60 = vadd.f32 %v5020_v48, %v5019_v43 }
0x121f   :  { %6748 = vmatmul.mubr.msk.f32.gmra.mrb[68].mxu1 %vm3150_vm2, %v5021_v60 }
0x12f2   :  { %v6749_v45 = vpop.f32.mrb[68].mxu1 }
0x12f3   :  { %v5142_v41 = vadd.f32 %v6749_v45, %v5449_v18  ;;  %v5136_v57 = vpop.f32.mrb[69].mxu1 }
0x12f4   :  { %v5137_v52 = vadd.f32 %v5449_v18, %v5136_v57 }
0x12f5   :  { %v5193_v20 = vcombine.low %v5132_v62, %v5142_v41  ;;  %v5194_v7 = vcombine.high %v5132_v62, %v5142_v41 }
0x12f6   :  { %v5177_v29 = vcombine.low %v5127_v44, %v5137_v52  ;;  %v5178_v26 = vcombine.high %v5127_v44, %v5137_v52 }
0x12f7   :  { %v5201_v40 = vrot.slane %v5193_v20, %v8384_v19  ;;  %v5208_v10 = vrot.slane %v5194_v7, %v8384_v19 }
0x12f8   :  { %v5185_v58 = vrot.slane %v5177_v29, %v8384_v19  ;;  %v5192_v17 = vrot.slane %v5178_v26, %v8384_v19  ;;  %v5233_v19 = vrot.slane %v5225_v0, %v8391_v28 }
0x12fa   :  { %v5241_v22 = vcombine.low %v5185_v58, %v5201_v40  ;;  %v5242_v63 = vcombine.high %v5185_v58, %v5201_v40  ;;  %v5257_v50 = vcombine.low %v5192_v17, %v5208_v10  ;;  %v5258_v14 = vcombine.high %v5192_v17, %v5208_v10 }
0x12fc   :  { %v5249_v25 = vrot.slane %v5241_v22, %v8391_v28  ;;  %v5256_v36 = vrot.slane %v5242_v63, %v8391_v28  ;;  %v5265_v56 = vrot.slane %v5257_v50, %v8391_v28  ;;  %v5272_v11 = vrot.slane %v5258_v14, %v8391_v28 }
0x12fe   :  { %v5273_v42 = vcombine.low %v5217_v13, %v5249_v25  ;;  %v5274_v31 = vcombine.high %v5217_v13, %v5249_v25  ;;  %v5275_v51 = vcombine.low %v5224_v46, %v5256_v36  ;;  %v5276_v4 = vcombine.high %v5224_v46, %v5256_v36 }
0x12ff   :  { %v5277_v18 = vcombine.low %v5233_v19, %v5265_v56  ;;  %v5278_v55 = vcombine.high %v5233_v19, %v5265_v56  ;;  %v5279_v61 = vcombine.low %v5240_v8, %v5272_v11  ;;  %v5280_v53 = vcombine.high %v5240_v8, %v5272_v11 }
0x1300   :  { %5281 = vst [vmem:[#allocation32] sm:$0xff] %v5273_v42  ;;  %5282 = vst [vmem:[#allocation32 + $0x8] sm:$0xff] %v5274_v31 }
0x1301   :  { %5283 = vst [vmem:[#allocation32 + $0x10] sm:$0xff] %v5275_v51  ;;  %5284 = vst [vmem:[#allocation32 + $0x18] sm:$0xff] %v5276_v4 }
0x1302   :  { %5285 = vst [vmem:[#allocation32 + $0x20] sm:$0xff] %v5277_v18  ;;  %5286 = vst [vmem:[#allocation32 + $0x28] sm:$0xff] %v5278_v55 }
0x1303   :  { %5287 = vst [vmem:[#allocation32 + $0x30] sm:$0xff] %v5279_v61  ;;  %5288 = vst [vmem:[#allocation32 + $0x38] sm:$0xff] %v5280_v53 }
0x1304   :  { %7878 = shalt.err (!%p7875_p2)
}
0x1305   :  { %s9446_s28 = sld [smem:[#allocation58_spill]] }
0x130b   :  { %s7879_s14 = scalar_lea.hbm %s9446_s28, 1024 }
0x130c   :  { %p7880_p3 = scmp.ne.s32.totalorder %s9446_s28, %s7879_s14  ;;  %p7883_p4 = scmp.lt.u32.totalorder %s7879_s14, %s9446_s28 }
0x130e   :  { %p7885_p5 = pnand %p7883_p4, %p7880_p3 }
0x1310   :  { %7888 = shalt.err (!%p7885_p5)
}
0x1311   :  { %5300 = dma.vmem_to_hbm [thread:$0]  %s5295_s26, 1024, %s9446_s28, [#allocation4], %s7913_s2, %s7913_s2, %s7914_s3  }
0x1312   :  { %7909 = dma.done.wait [#allocation4], 1024  }
0x1313   :  { %7910 = vsyncadd [#allocation4], 4294966272 }
0x1314   :  { %5304 = vsyncpa [#allocation3], 1 }
0x1315   :  { %5305 = vsyncpa [#allocation6], 1 }
0x1316   :  { %5306 = vsyncpa [#allocation9], 1 }
0x1317   :  { %5307 = vsyncpa [#allocation12], 1 }
0x1318   :  { %5308 = vsyncpa [#allocation15], 1 }
0x1319   :  { %5309 = vsyncpa [#allocation18], 1 }
0x131a   :  { %5310 = vsyncpa [#allocation21], 1 }
0x131b   :  { %5311 = vsyncpa [#allocation24], 1 }
0x131c   :  { %5312 = vsyncpa [#allocation27], 1 }
0x131d   :  { %5313 = vsyncpa [#allocation30], 1 }
0x131e   :  { %5314 = vsyncpa [#allocation4], 1 }

</bundles_post_ra>
